<compile_context>
chip_gen: v6e
topology: v6e:2x2x1
jax: 0.10.0
libtpu: 0.0.40
codegen_flags: <defaults>
</compile_context>

<pallas_src>
import jax
import jax.numpy as jnp
from jax.experimental import pallas as pl
from jax.experimental.pallas import tpu as pltpu


def _lstm_gates(g, c_prev, H):
    """PyTorch gate order i | f | g | o on a (B, 4H) pre-activation."""
    i = jax.nn.sigmoid(g[:, 0 * H:1 * H])
    f = jax.nn.sigmoid(g[:, 1 * H:2 * H])
    gg = jnp.tanh(g[:, 2 * H:3 * H])
    o = jax.nn.sigmoid(g[:, 3 * H:4 * H])
    c_new = f * c_prev + i * gg
    h_new = o * jnp.tanh(c_new)
    return h_new, c_new


def separation_recurrent_kernel(
    xw1_ref,      # (Tc, B, 4H) f32   x @ Wih1 + b1, time-major chunk
    whh1_ref,     # (H, 4H)     bf16  LSTM1 recurrent weight
    w2_ref,       # (2H, 4H)    bf16  [Wih2 ; Whh2] stacked
    b2_ref,       # (1, 4H)     f32   LSTM2 bias (b_ih + b_hh)
    h2_out_ref,   # (Tc, B, H)  f32   LSTM2 hidden states (dense applied outside)
    h1_sc, c1_sc, h2_sc, c2_sc,   # (B, H) f32 scratch: recurrent state
):
    chunk = pl.program_id(0)
    Tc = xw1_ref.shape[0]
    H = h1_sc.shape[-1]

    @pl.when(chunk == 0)
    def _():
        h1_sc[...] = jnp.zeros_like(h1_sc)
        c1_sc[...] = jnp.zeros_like(c1_sc)
        h2_sc[...] = jnp.zeros_like(h2_sc)
        c2_sc[...] = jnp.zeros_like(c2_sc)

    # Hoist weight/bias loads out of the unrolled time loop (stay in vregs).
    whh1 = whh1_ref[...]
    w2 = w2_ref[...]
    b2 = b2_ref[...]
    mxu_dt = whh1.dtype

    def step(s, carry):
        h1, c1, h2, c2 = carry
        # LSTM1: input projection was precomputed; only the recurrent dot here.
        xw1_t = xw1_ref[s]                                        # (B, 4H)
        g1 = xw1_t + jnp.dot(h1.astype(mxu_dt), whh1,
                             preferred_element_type=jnp.float32)
        h1n, c1n = _lstm_gates(g1, c1, H)
        # (dropout == identity in inference)
        # LSTM2: fused input+recurrent dot with stacked [Wih2; Whh2].
        hh = jnp.concatenate([h1n, h2], axis=-1).astype(mxu_dt)   # (B, 2H)
        g2 = jnp.dot(hh, w2, preferred_element_type=jnp.float32) + b2
        h2n, c2n = _lstm_gates(g2, c2, H)
        h2_out_ref[s] = h2n.astype(h2_out_ref.dtype)
        return (h1n, c1n, h2n, c2n)

    carry0 = (h1_sc[...], c1_sc[...], h2_sc[...], c2_sc[...])
    h1f, c1f, h2f, c2f = jax.lax.fori_loop(0, Tc, step, carry0, unroll=True)

    # Persist recurrent state for the next time chunk.
    h1_sc[...] = h1f
    c1_sc[...] = c1f
    h2_sc[...] = h2f
    c2_sc[...] = c2f


def separation_block(x, params, *, time_chunk=16):
    """x: (B, T, I) batch-first, like the PyTorch module. Returns (B, T, I) mask."""
    B, T, I = x.shape
    H = params["whh1_bf"].shape[0]
    f32 = jnp.float32

    # ---- Hoisted LSTM1 input projection: one big matmul (M = T*B), bias folded,
    #      produced directly time-major so no separate materialized transpose. ----
    xw1 = jnp.einsum("bti,ig->tbg", x.astype(f32), params["wih1_t"],
                     preferred_element_type=f32) + params["b1"]        # (T, B, 4H)

    Tc = min(time_chunk, T)
    n_chunks = pl.cdiv(T, Tc)
    T_pad = n_chunks * Tc
    if T_pad != T:
        # Zero-pad trailing steps; the recurrence is causal so valid outputs are
        # unaffected by the padded tail.
        xw1 = jnp.pad(xw1, ((0, T_pad - T), (0, 0), (0, 0)))

    vmem_full = lambda: pl.BlockSpec(memory_space=pltpu.MemorySpace.VMEM)

    h2_tm = pl.pallas_call(
        separation_recurrent_kernel,
        out_shape=jax.ShapeDtypeStruct((T_pad, B, H), f32),
        grid_spec=pltpu.PrefetchScalarGridSpec(
            num_scalar_prefetch=0,
            grid=(n_chunks,),
            in_specs=[
                pl.BlockSpec((Tc, B, 4 * H), lambda c: (c, 0, 0)),  # xw1 chunk
                vmem_full(),   # whh1_bf   (H, 4H)   resident, single-buffered
                vmem_full(),   # w2_bf     (2H, 4H)
                vmem_full(),   # b2        (1, 4H)
            ],
            out_specs=pl.BlockSpec((Tc, B, H), lambda c: (c, 0, 0)),
            scratch_shapes=[
                pltpu.VMEM((B, H), f32),   # h1
                pltpu.VMEM((B, H), f32),   # c1
                pltpu.VMEM((B, H), f32),   # h2
                pltpu.VMEM((B, H), f32),   # c2
            ],
        ),
        compiler_params=pltpu.CompilerParams(
            dimension_semantics=("arbitrary",),   # serial recurrence over time
        ),
    )(xw1, params["whh1_bf"], params["w2_bf"], params["b2"])

    h2_tm = h2_tm[:T]                                                 # (T, B, H)

    # ---- Hoisted dense + sigmoid: one big matmul over all (t, b) rows. ----
    mask = jax.nn.sigmoid(
        jnp.einsum("tbh,hi->bti", h2_tm, params["wd_t"],
                   preferred_element_type=f32) + params["bd"])        # (B, T, I)
    return mask.astype(x.dtype)


def init_params(key, input_size, hidden_size):
    """Mirror PyTorch LSTM/Linear default uniform(-k, k) init; pre-pack for kernel."""
    H, I = hidden_size, input_size
    k_lstm = 1.0 / jnp.sqrt(jnp.float32(H))
    k_lin = 1.0 / jnp.sqrt(jnp.float32(H))
    keys = jax.random.split(key, 10)
    u = lambda kk, shape, k: jax.random.uniform(
        kk, shape, dtype=jnp.float32, minval=-k, maxval=k)

    # PyTorch layout: weight_ih (4H, in), weight_hh (4H, H); gate order i|f|g|o.
    wih1 = u(keys[0], (4 * H, I), k_lstm)
    whh1 = u(keys[1], (4 * H, H), k_lstm)
    b1 = u(keys[2], (4 * H,), k_lstm) + u(keys[3], (4 * H,), k_lstm)   # b_ih + b_hh
    wih2 = u(keys[4], (4 * H, H), k_lstm)
    whh2 = u(keys[5], (4 * H, H), k_lstm)
    b2 = u(keys[6], (4 * H,), k_lstm) + u(keys[7], (4 * H,), k_lstm)
    wd = u(keys[8], (I, H), k_lin)          # nn.Linear(H, I).weight is (I, H)
    bd = u(keys[9], (I,), k_lin)

    return {
        # Hoisted input projection (wrapper-side, f32).
        "wih1_t": wih1.T,                                        # (I, 4H)
        "b1": b1,                                                # (4H,)
        # In-kernel recurrent weights, MXU-native bf16.
        "whh1_bf": whh1.T.astype(jnp.bfloat16),                  # (H, 4H)
        "w2_bf": jnp.concatenate([wih2.T, whh2.T],
                                 axis=0).astype(jnp.bfloat16),   # (2H, 4H)
        "b2": b2.reshape(1, 4 * H),                              # (1, 4H) f32
        # Hoisted dense (wrapper-side, f32).
        "wd_t": wd.T,                                            # (H, I)
        "bd": bd,                                                # (I,)
    }


if __name__ == "__main__":
    # Small shapes consistent with the module's forward (real model: I=257, H=128).
    B, T, I, H = 2, 40, 64, 32

    key = jax.random.PRNGKey(0)
    kx, kp = jax.random.split(key)
    x = jax.random.normal(kx, (B, T, I), dtype=jnp.float32)
    params = init_params(kp, input_size=I, hidden_size=H)

    mask = jax.jit(separation_block)(x, params)
    mask = jax.block_until_ready(mask)

    assert mask.shape == (B, T, I)
    assert bool(jnp.all(jnp.isfinite(mask)))
    assert bool(jnp.all((mask >= 0.0) & (mask <= 1.0)))
    print("KERNEL_OK")
</pallas_src>

<mosaic_0001>
module attributes {stable_mosaic.version = 11 : i64} {
  func.func @separation_recurrent_kernel(%arg0: i32, %arg1: memref<16x2x128xf32, #tpu.memory_space<vmem>>, %arg2: memref<32x128xbf16, #tpu.memory_space<vmem>>, %arg3: memref<64x128xbf16, #tpu.memory_space<vmem>>, %arg4: memref<1x128xf32, #tpu.memory_space<vmem>>, %arg5: memref<16x2x32xf32, #tpu.memory_space<vmem>>, %arg6: memref<2x32xf32, #tpu.memory_space<vmem>>, %arg7: memref<2x32xf32, #tpu.memory_space<vmem>>, %arg8: memref<2x32xf32, #tpu.memory_space<vmem>>, %arg9: memref<2x32xf32, #tpu.memory_space<vmem>>) attributes {dimension_semantics = [#tpu.dimension_semantics<arbitrary>], iteration_bounds = array<i64: 3>, scalar_prefetch = 0 : i64, scratch_operands = 4 : i64, tpu.core_type = #tpu.core_type<tc>, window_params = [{transform_indices = @transform_0, window_bounds = array<i64: 16, 2, 128>}, {pipeline_mode = #tpu.pipeline_mode<synchronous>, transform_indices = @transform_1, window_bounds = array<i64: 32, 128>}, {pipeline_mode = #tpu.pipeline_mode<synchronous>, transform_indices = @transform_2, window_bounds = array<i64: 64, 128>}, {pipeline_mode = #tpu.pipeline_mode<synchronous>, transform_indices = @transform_3, window_bounds = array<i64: 1, 128>}, {transform_indices = @transform_4, window_bounds = array<i64: 16, 2, 32>}]} {
    %c0_i32 = arith.constant 0 : i32
    %0 = arith.cmpi eq, %arg0, %c0_i32 : i32
    %1 = arith.extui %0 : i1 to i32
    %c0_i32_0 = arith.constant 0 : i32
    %2 = arith.cmpi ne, %1, %c0_i32_0 : i32
    scf.if %2 {
      %cst_214 = arith.constant 0.000000e+00 : f32
      %1054 = vector.broadcast %cst_214 : f32 to vector<2x32xf32>
      %c0_215 = arith.constant 0 : index
      %c0_216 = arith.constant 0 : index
      %1055 = vector.load %arg6[%c0_215, %c0_216] : memref<2x32xf32, #tpu.memory_space<vmem>>, vector<2x32xf32>
      tpu.vector_store %arg6[%c0_215, %c0_216], %1054 {strides = array<i32>} : memref<2x32xf32, #tpu.memory_space<vmem>>, vector<2x32xf32>,
      %cst_217 = arith.constant 0.000000e+00 : f32
      %1056 = vector.broadcast %cst_217 : f32 to vector<2x32xf32>
      %c0_218 = arith.constant 0 : index
      %c0_219 = arith.constant 0 : index
      %1057 = vector.load %arg7[%c0_218, %c0_219] : memref<2x32xf32, #tpu.memory_space<vmem>>, vector<2x32xf32>
      tpu.vector_store %arg7[%c0_218, %c0_219], %1056 {strides = array<i32>} : memref<2x32xf32, #tpu.memory_space<vmem>>, vector<2x32xf32>,
      %cst_220 = arith.constant 0.000000e+00 : f32
      %1058 = vector.broadcast %cst_220 : f32 to vector<2x32xf32>
      %c0_221 = arith.constant 0 : index
      %c0_222 = arith.constant 0 : index
      %1059 = vector.load %arg8[%c0_221, %c0_222] : memref<2x32xf32, #tpu.memory_space<vmem>>, vector<2x32xf32>
      tpu.vector_store %arg8[%c0_221, %c0_222], %1058 {strides = array<i32>} : memref<2x32xf32, #tpu.memory_space<vmem>>, vector<2x32xf32>,
      %cst_223 = arith.constant 0.000000e+00 : f32
      %1060 = vector.broadcast %cst_223 : f32 to vector<2x32xf32>
      %c0_224 = arith.constant 0 : index
      %c0_225 = arith.constant 0 : index
      %1061 = vector.load %arg9[%c0_224, %c0_225] : memref<2x32xf32, #tpu.memory_space<vmem>>, vector<2x32xf32>
      tpu.vector_store %arg9[%c0_224, %c0_225], %1060 {strides = array<i32>} : memref<2x32xf32, #tpu.memory_space<vmem>>, vector<2x32xf32>,
    } else {
    }
    %c0 = arith.constant 0 : index
    %c0_1 = arith.constant 0 : index
    %3 = vector.load %arg2[%c0, %c0_1] : memref<32x128xbf16, #tpu.memory_space<vmem>>, vector<32x128xbf16>
    %c0_2 = arith.constant 0 : index
    %c0_3 = arith.constant 0 : index
    %4 = vector.load %arg3[%c0_2, %c0_3] : memref<64x128xbf16, #tpu.memory_space<vmem>>, vector<64x128xbf16>
    %c0_4 = arith.constant 0 : index
    %c0_5 = arith.constant 0 : index
    %5 = vector.load %arg4[%c0_4, %c0_5] : memref<1x128xf32, #tpu.memory_space<vmem>>, vector<1x128xf32>
    %c0_6 = arith.constant 0 : index
    %c0_7 = arith.constant 0 : index
    %6 = vector.load %arg6[%c0_6, %c0_7] : memref<2x32xf32, #tpu.memory_space<vmem>>, vector<2x32xf32>
    %c0_8 = arith.constant 0 : index
    %c0_9 = arith.constant 0 : index
    %7 = vector.load %arg7[%c0_8, %c0_9] : memref<2x32xf32, #tpu.memory_space<vmem>>, vector<2x32xf32>
    %c0_10 = arith.constant 0 : index
    %c0_11 = arith.constant 0 : index
    %8 = vector.load %arg8[%c0_10, %c0_11] : memref<2x32xf32, #tpu.memory_space<vmem>>, vector<2x32xf32>
    %c0_12 = arith.constant 0 : index
    %c0_13 = arith.constant 0 : index
    %9 = vector.load %arg9[%c0_12, %c0_13] : memref<2x32xf32, #tpu.memory_space<vmem>>, vector<2x32xf32>
    %c0_i32_14 = arith.constant 0 : i32
    %10 = arith.index_cast %c0_i32_14 : i32 to index
    %c0_15 = arith.constant 0 : index
    %c0_16 = arith.constant 0 : index
    %11 = vector.load %arg1[%10, %c0_15, %c0_16] : memref<16x2x128xf32, #tpu.memory_space<vmem>>, vector<1x2x128xf32>
    %12 = vector.shape_cast %11 : vector<1x2x128xf32> to vector<2x128xf32>
    %13 = arith.truncf %6 : vector<2x32xf32> to vector<2x32xbf16>
    %cst = arith.constant dense<0.000000e+00> : vector<2x128xf32>
    %14 = tpu.matmul %13, %3, %cst {dimension_numbers = #tpu.dot_dimension_numbers<[1], [0], [0], [1], [0, 0, 1, 1], [], []>} : vector<2x32xbf16>, vector<32x128xbf16>, vector<2x128xf32> -> vector<2x128xf32>
    %15 = arith.addf %12, %14 : vector<2x128xf32>
    %16 = vector.extract_strided_slice %15 {offsets = [0, 0], sizes = [2, 32], strides = [1, 1]} : vector<2x128xf32> to vector<2x32xf32>
    %17 = arith.negf %16 : vector<2x32xf32>
    %18 = math.exp %17 : vector<2x32xf32>
    %cst_17 = arith.constant 1.000000e+00 : f32
    %19 = vector.broadcast %cst_17 : f32 to vector<2x32xf32>
    %20 = arith.addf %19, %18 : vector<2x32xf32>
    %21 = arith.divf %19, %20 : vector<2x32xf32>
    %22 = vector.extract_strided_slice %15 {offsets = [0, 32], sizes = [2, 32], strides = [1, 1]} : vector<2x128xf32> to vector<2x32xf32>
    %23 = arith.negf %22 : vector<2x32xf32>
    %24 = math.exp %23 : vector<2x32xf32>
    %cst_18 = arith.constant 1.000000e+00 : f32
    %25 = vector.broadcast %cst_18 : f32 to vector<2x32xf32>
    %26 = arith.addf %25, %24 : vector<2x32xf32>
    %27 = arith.divf %25, %26 : vector<2x32xf32>
    %28 = vector.extract_strided_slice %15 {offsets = [0, 64], sizes = [2, 32], strides = [1, 1]} : vector<2x128xf32> to vector<2x32xf32>
    %29 = math.tanh %28 : vector<2x32xf32>
    %30 = vector.extract_strided_slice %15 {offsets = [0, 96], sizes = [2, 32], strides = [1, 1]} : vector<2x128xf32> to vector<2x32xf32>
    %31 = arith.negf %30 : vector<2x32xf32>
    %32 = math.exp %31 : vector<2x32xf32>
    %cst_19 = arith.constant 1.000000e+00 : f32
    %33 = vector.broadcast %cst_19 : f32 to vector<2x32xf32>
    %34 = arith.addf %33, %32 : vector<2x32xf32>
    %35 = arith.divf %33, %34 : vector<2x32xf32>
    %36 = arith.mulf %27, %7 : vector<2x32xf32>
    %37 = arith.mulf %21, %29 : vector<2x32xf32>
    %38 = arith.addf %36, %37 : vector<2x32xf32>
    %39 = math.tanh %38 : vector<2x32xf32>
    %40 = arith.mulf %35, %39 : vector<2x32xf32>
    %41 = tpu.concatenate %40, %8 in 1 : vector<2x32xf32>, vector<2x32xf32> -> vector<2x64xf32>
    %42 = arith.truncf %41 : vector<2x64xf32> to vector<2x64xbf16>
    %cst_20 = arith.constant dense<0.000000e+00> : vector<2x128xf32>
    %43 = tpu.matmul %42, %4, %cst_20 {dimension_numbers = #tpu.dot_dimension_numbers<[1], [0], [0], [1], [0, 0, 1, 1], [], []>} : vector<2x64xbf16>, vector<64x128xbf16>, vector<2x128xf32> -> vector<2x128xf32>
    %44 = vector.broadcast %5 : vector<1x128xf32> to vector<2x128xf32>
    %45 = arith.addf %43, %44 : vector<2x128xf32>
    %46 = vector.extract_strided_slice %45 {offsets = [0, 0], sizes = [2, 32], strides = [1, 1]} : vector<2x128xf32> to vector<2x32xf32>
    %47 = arith.negf %46 : vector<2x32xf32>
    %48 = math.exp %47 : vector<2x32xf32>
    %cst_21 = arith.constant 1.000000e+00 : f32
    %49 = vector.broadcast %cst_21 : f32 to vector<2x32xf32>
    %50 = arith.addf %49, %48 : vector<2x32xf32>
    %51 = arith.divf %49, %50 : vector<2x32xf32>
    %52 = vector.extract_strided_slice %45 {offsets = [0, 32], sizes = [2, 32], strides = [1, 1]} : vector<2x128xf32> to vector<2x32xf32>
    %53 = arith.negf %52 : vector<2x32xf32>
    %54 = math.exp %53 : vector<2x32xf32>
    %cst_22 = arith.constant 1.000000e+00 : f32
    %55 = vector.broadcast %cst_22 : f32 to vector<2x32xf32>
    %56 = arith.addf %55, %54 : vector<2x32xf32>
    %57 = arith.divf %55, %56 : vector<2x32xf32>
    %58 = vector.extract_strided_slice %45 {offsets = [0, 64], sizes = [2, 32], strides = [1, 1]} : vector<2x128xf32> to vector<2x32xf32>
    %59 = math.tanh %58 : vector<2x32xf32>
    %60 = vector.extract_strided_slice %45 {offsets = [0, 96], sizes = [2, 32], strides = [1, 1]} : vector<2x128xf32> to vector<2x32xf32>
    %61 = arith.negf %60 : vector<2x32xf32>
    %62 = math.exp %61 : vector<2x32xf32>
    %cst_23 = arith.constant 1.000000e+00 : f32
    %63 = vector.broadcast %cst_23 : f32 to vector<2x32xf32>
    %64 = arith.addf %63, %62 : vector<2x32xf32>
    %65 = arith.divf %63, %64 : vector<2x32xf32>
    %66 = arith.mulf %57, %9 : vector<2x32xf32>
    %67 = arith.mulf %51, %59 : vector<2x32xf32>
    %68 = arith.addf %66, %67 : vector<2x32xf32>
    %69 = math.tanh %68 : vector<2x32xf32>
    %70 = arith.mulf %65, %69 : vector<2x32xf32>
    %71 = arith.index_cast %c0_i32_14 : i32 to index
    %c0_24 = arith.constant 0 : index
    %c0_25 = arith.constant 0 : index
    %72 = vector.load %arg5[%71, %c0_24, %c0_25] : memref<16x2x32xf32, #tpu.memory_space<vmem>>, vector<1x2x32xf32>
    %73 = vector.shape_cast %72 : vector<1x2x32xf32> to vector<2x32xf32>
    %74 = vector.shape_cast %70 : vector<2x32xf32> to vector<1x2x32xf32>
    tpu.vector_store %arg5[%71, %c0_24, %c0_25], %74 {strides = array<i32>} : memref<16x2x32xf32, #tpu.memory_space<vmem>>, vector<1x2x32xf32>,
    %c1_i32 = arith.constant 1 : i32
    %75 = arith.index_cast %c1_i32 : i32 to index
    %c0_26 = arith.constant 0 : index
    %c0_27 = arith.constant 0 : index
    %76 = vector.load %arg1[%75, %c0_26, %c0_27] : memref<16x2x128xf32, #tpu.memory_space<vmem>>, vector<1x2x128xf32>
    %77 = vector.shape_cast %76 : vector<1x2x128xf32> to vector<2x128xf32>
    %78 = arith.truncf %40 : vector<2x32xf32> to vector<2x32xbf16>
    %cst_28 = arith.constant dense<0.000000e+00> : vector<2x128xf32>
    %79 = tpu.matmul %78, %3, %cst_28 {dimension_numbers = #tpu.dot_dimension_numbers<[1], [0], [0], [1], [0, 0, 1, 1], [], []>} : vector<2x32xbf16>, vector<32x128xbf16>, vector<2x128xf32> -> vector<2x128xf32>
    %80 = arith.addf %77, %79 : vector<2x128xf32>
    %81 = vector.extract_strided_slice %80 {offsets = [0, 0], sizes = [2, 32], strides = [1, 1]} : vector<2x128xf32> to vector<2x32xf32>
    %82 = arith.negf %81 : vector<2x32xf32>
    %83 = math.exp %82 : vector<2x32xf32>
    %cst_29 = arith.constant 1.000000e+00 : f32
    %84 = vector.broadcast %cst_29 : f32 to vector<2x32xf32>
    %85 = arith.addf %84, %83 : vector<2x32xf32>
    %86 = arith.divf %84, %85 : vector<2x32xf32>
    %87 = vector.extract_strided_slice %80 {offsets = [0, 32], sizes = [2, 32], strides = [1, 1]} : vector<2x128xf32> to vector<2x32xf32>
    %88 = arith.negf %87 : vector<2x32xf32>
    %89 = math.exp %88 : vector<2x32xf32>
    %cst_30 = arith.constant 1.000000e+00 : f32
    %90 = vector.broadcast %cst_30 : f32 to vector<2x32xf32>
    %91 = arith.addf %90, %89 : vector<2x32xf32>
    %92 = arith.divf %90, %91 : vector<2x32xf32>
    %93 = vector.extract_strided_slice %80 {offsets = [0, 64], sizes = [2, 32], strides = [1, 1]} : vector<2x128xf32> to vector<2x32xf32>
    %94 = math.tanh %93 : vector<2x32xf32>
    %95 = vector.extract_strided_slice %80 {offsets = [0, 96], sizes = [2, 32], strides = [1, 1]} : vector<2x128xf32> to vector<2x32xf32>
    %96 = arith.negf %95 : vector<2x32xf32>
    %97 = math.exp %96 : vector<2x32xf32>
    %cst_31 = arith.constant 1.000000e+00 : f32
    %98 = vector.broadcast %cst_31 : f32 to vector<2x32xf32>
    %99 = arith.addf %98, %97 : vector<2x32xf32>
    %100 = arith.divf %98, %99 : vector<2x32xf32>
    %101 = arith.mulf %92, %38 : vector<2x32xf32>
    %102 = arith.mulf %86, %94 : vector<2x32xf32>
    %103 = arith.addf %101, %102 : vector<2x32xf32>
    %104 = math.tanh %103 : vector<2x32xf32>
    %105 = arith.mulf %100, %104 : vector<2x32xf32>
    %106 = tpu.concatenate %105, %70 in 1 : vector<2x32xf32>, vector<2x32xf32> -> vector<2x64xf32>
    %107 = arith.truncf %106 : vector<2x64xf32> to vector<2x64xbf16>
    %cst_32 = arith.constant dense<0.000000e+00> : vector<2x128xf32>
    %108 = tpu.matmul %107, %4, %cst_32 {dimension_numbers = #tpu.dot_dimension_numbers<[1], [0], [0], [1], [0, 0, 1, 1], [], []>} : vector<2x64xbf16>, vector<64x128xbf16>, vector<2x128xf32> -> vector<2x128xf32>
    %109 = vector.broadcast %5 : vector<1x128xf32> to vector<2x128xf32>
    %110 = arith.addf %108, %109 : vector<2x128xf32>
    %111 = vector.extract_strided_slice %110 {offsets = [0, 0], sizes = [2, 32], strides = [1, 1]} : vector<2x128xf32> to vector<2x32xf32>
    %112 = arith.negf %111 : vector<2x32xf32>
    %113 = math.exp %112 : vector<2x32xf32>
    %cst_33 = arith.constant 1.000000e+00 : f32
    %114 = vector.broadcast %cst_33 : f32 to vector<2x32xf32>
    %115 = arith.addf %114, %113 : vector<2x32xf32>
    %116 = arith.divf %114, %115 : vector<2x32xf32>
    %117 = vector.extract_strided_slice %110 {offsets = [0, 32], sizes = [2, 32], strides = [1, 1]} : vector<2x128xf32> to vector<2x32xf32>
    %118 = arith.negf %117 : vector<2x32xf32>
    %119 = math.exp %118 : vector<2x32xf32>
    %cst_34 = arith.constant 1.000000e+00 : f32
    %120 = vector.broadcast %cst_34 : f32 to vector<2x32xf32>
    %121 = arith.addf %120, %119 : vector<2x32xf32>
    %122 = arith.divf %120, %121 : vector<2x32xf32>
    %123 = vector.extract_strided_slice %110 {offsets = [0, 64], sizes = [2, 32], strides = [1, 1]} : vector<2x128xf32> to vector<2x32xf32>
    %124 = math.tanh %123 : vector<2x32xf32>
    %125 = vector.extract_strided_slice %110 {offsets = [0, 96], sizes = [2, 32], strides = [1, 1]} : vector<2x128xf32> to vector<2x32xf32>
    %126 = arith.negf %125 : vector<2x32xf32>
    %127 = math.exp %126 : vector<2x32xf32>
    %cst_35 = arith.constant 1.000000e+00 : f32
    %128 = vector.broadcast %cst_35 : f32 to vector<2x32xf32>
    %129 = arith.addf %128, %127 : vector<2x32xf32>
    %130 = arith.divf %128, %129 : vector<2x32xf32>
    %131 = arith.mulf %122, %68 : vector<2x32xf32>
    %132 = arith.mulf %116, %124 : vector<2x32xf32>
    %133 = arith.addf %131, %132 : vector<2x32xf32>
    %134 = math.tanh %133 : vector<2x32xf32>
    %135 = arith.mulf %130, %134 : vector<2x32xf32>
    %136 = arith.index_cast %c1_i32 : i32 to index
    %c0_36 = arith.constant 0 : index
    %c0_37 = arith.constant 0 : index
    %137 = vector.load %arg5[%136, %c0_36, %c0_37] : memref<16x2x32xf32, #tpu.memory_space<vmem>>, vector<1x2x32xf32>
    %138 = vector.shape_cast %137 : vector<1x2x32xf32> to vector<2x32xf32>
    %139 = vector.shape_cast %135 : vector<2x32xf32> to vector<1x2x32xf32>
    tpu.vector_store %arg5[%136, %c0_36, %c0_37], %139 {strides = array<i32>} : memref<16x2x32xf32, #tpu.memory_space<vmem>>, vector<1x2x32xf32>,
    %c2_i32 = arith.constant 2 : i32
    %140 = arith.index_cast %c2_i32 : i32 to index
    %c0_38 = arith.constant 0 : index
    %c0_39 = arith.constant 0 : index
    %141 = vector.load %arg1[%140, %c0_38, %c0_39] : memref<16x2x128xf32, #tpu.memory_space<vmem>>, vector<1x2x128xf32>
    %142 = vector.shape_cast %141 : vector<1x2x128xf32> to vector<2x128xf32>
    %143 = arith.truncf %105 : vector<2x32xf32> to vector<2x32xbf16>
    %cst_40 = arith.constant dense<0.000000e+00> : vector<2x128xf32>
    %144 = tpu.matmul %143, %3, %cst_40 {dimension_numbers = #tpu.dot_dimension_numbers<[1], [0], [0], [1], [0, 0, 1, 1], [], []>} : vector<2x32xbf16>, vector<32x128xbf16>, vector<2x128xf32> -> vector<2x128xf32>
    %145 = arith.addf %142, %144 : vector<2x128xf32>
    %146 = vector.extract_strided_slice %145 {offsets = [0, 0], sizes = [2, 32], strides = [1, 1]} : vector<2x128xf32> to vector<2x32xf32>
    %147 = arith.negf %146 : vector<2x32xf32>
    %148 = math.exp %147 : vector<2x32xf32>
    %cst_41 = arith.constant 1.000000e+00 : f32
    %149 = vector.broadcast %cst_41 : f32 to vector<2x32xf32>
    %150 = arith.addf %149, %148 : vector<2x32xf32>
    %151 = arith.divf %149, %150 : vector<2x32xf32>
    %152 = vector.extract_strided_slice %145 {offsets = [0, 32], sizes = [2, 32], strides = [1, 1]} : vector<2x128xf32> to vector<2x32xf32>
    %153 = arith.negf %152 : vector<2x32xf32>
    %154 = math.exp %153 : vector<2x32xf32>
    %cst_42 = arith.constant 1.000000e+00 : f32
    %155 = vector.broadcast %cst_42 : f32 to vector<2x32xf32>
    %156 = arith.addf %155, %154 : vector<2x32xf32>
    %157 = arith.divf %155, %156 : vector<2x32xf32>
    %158 = vector.extract_strided_slice %145 {offsets = [0, 64], sizes = [2, 32], strides = [1, 1]} : vector<2x128xf32> to vector<2x32xf32>
    %159 = math.tanh %158 : vector<2x32xf32>
    %160 = vector.extract_strided_slice %145 {offsets = [0, 96], sizes = [2, 32], strides = [1, 1]} : vector<2x128xf32> to vector<2x32xf32>
    %161 = arith.negf %160 : vector<2x32xf32>
    %162 = math.exp %161 : vector<2x32xf32>
    %cst_43 = arith.constant 1.000000e+00 : f32
    %163 = vector.broadcast %cst_43 : f32 to vector<2x32xf32>
    %164 = arith.addf %163, %162 : vector<2x32xf32>
    %165 = arith.divf %163, %164 : vector<2x32xf32>
    %166 = arith.mulf %157, %103 : vector<2x32xf32>
    %167 = arith.mulf %151, %159 : vector<2x32xf32>
    %168 = arith.addf %166, %167 : vector<2x32xf32>
    %169 = math.tanh %168 : vector<2x32xf32>
    %170 = arith.mulf %165, %169 : vector<2x32xf32>
    %171 = tpu.concatenate %170, %135 in 1 : vector<2x32xf32>, vector<2x32xf32> -> vector<2x64xf32>
    %172 = arith.truncf %171 : vector<2x64xf32> to vector<2x64xbf16>
    %cst_44 = arith.constant dense<0.000000e+00> : vector<2x128xf32>
    %173 = tpu.matmul %172, %4, %cst_44 {dimension_numbers = #tpu.dot_dimension_numbers<[1], [0], [0], [1], [0, 0, 1, 1], [], []>} : vector<2x64xbf16>, vector<64x128xbf16>, vector<2x128xf32> -> vector<2x128xf32>
    %174 = vector.broadcast %5 : vector<1x128xf32> to vector<2x128xf32>
    %175 = arith.addf %173, %174 : vector<2x128xf32>
    %176 = vector.extract_strided_slice %175 {offsets = [0, 0], sizes = [2, 32], strides = [1, 1]} : vector<2x128xf32> to vector<2x32xf32>
    %177 = arith.negf %176 : vector<2x32xf32>
    %178 = math.exp %177 : vector<2x32xf32>
    %cst_45 = arith.constant 1.000000e+00 : f32
    %179 = vector.broadcast %cst_45 : f32 to vector<2x32xf32>
    %180 = arith.addf %179, %178 : vector<2x32xf32>
    %181 = arith.divf %179, %180 : vector<2x32xf32>
    %182 = vector.extract_strided_slice %175 {offsets = [0, 32], sizes = [2, 32], strides = [1, 1]} : vector<2x128xf32> to vector<2x32xf32>
    %183 = arith.negf %182 : vector<2x32xf32>
    %184 = math.exp %183 : vector<2x32xf32>
    %cst_46 = arith.constant 1.000000e+00 : f32
    %185 = vector.broadcast %cst_46 : f32 to vector<2x32xf32>
    %186 = arith.addf %185, %184 : vector<2x32xf32>
    %187 = arith.divf %185, %186 : vector<2x32xf32>
    %188 = vector.extract_strided_slice %175 {offsets = [0, 64], sizes = [2, 32], strides = [1, 1]} : vector<2x128xf32> to vector<2x32xf32>
    %189 = math.tanh %188 : vector<2x32xf32>
    %190 = vector.extract_strided_slice %175 {offsets = [0, 96], sizes = [2, 32], strides = [1, 1]} : vector<2x128xf32> to vector<2x32xf32>
    %191 = arith.negf %190 : vector<2x32xf32>
    %192 = math.exp %191 : vector<2x32xf32>
    %cst_47 = arith.constant 1.000000e+00 : f32
    %193 = vector.broadcast %cst_47 : f32 to vector<2x32xf32>
    %194 = arith.addf %193, %192 : vector<2x32xf32>
    %195 = arith.divf %193, %194 : vector<2x32xf32>
    %196 = arith.mulf %187, %133 : vector<2x32xf32>
    %197 = arith.mulf %181, %189 : vector<2x32xf32>
    %198 = arith.addf %196, %197 : vector<2x32xf32>
    %199 = math.tanh %198 : vector<2x32xf32>
    %200 = arith.mulf %195, %199 : vector<2x32xf32>
    %201 = arith.index_cast %c2_i32 : i32 to index
    %c0_48 = arith.constant 0 : index
    %c0_49 = arith.constant 0 : index
    %202 = vector.load %arg5[%201, %c0_48, %c0_49] : memref<16x2x32xf32, #tpu.memory_space<vmem>>, vector<1x2x32xf32>
    %203 = vector.shape_cast %202 : vector<1x2x32xf32> to vector<2x32xf32>
    %204 = vector.shape_cast %200 : vector<2x32xf32> to vector<1x2x32xf32>
    tpu.vector_store %arg5[%201, %c0_48, %c0_49], %204 {strides = array<i32>} : memref<16x2x32xf32, #tpu.memory_space<vmem>>, vector<1x2x32xf32>,
    %c3_i32 = arith.constant 3 : i32
    %205 = arith.index_cast %c3_i32 : i32 to index
    %c0_50 = arith.constant 0 : index
    %c0_51 = arith.constant 0 : index
    %206 = vector.load %arg1[%205, %c0_50, %c0_51] : memref<16x2x128xf32, #tpu.memory_space<vmem>>, vector<1x2x128xf32>
    %207 = vector.shape_cast %206 : vector<1x2x128xf32> to vector<2x128xf32>
    %208 = arith.truncf %170 : vector<2x32xf32> to vector<2x32xbf16>
    %cst_52 = arith.constant dense<0.000000e+00> : vector<2x128xf32>
    %209 = tpu.matmul %208, %3, %cst_52 {dimension_numbers = #tpu.dot_dimension_numbers<[1], [0], [0], [1], [0, 0, 1, 1], [], []>} : vector<2x32xbf16>, vector<32x128xbf16>, vector<2x128xf32> -> vector<2x128xf32>
    %210 = arith.addf %207, %209 : vector<2x128xf32>
    %211 = vector.extract_strided_slice %210 {offsets = [0, 0], sizes = [2, 32], strides = [1, 1]} : vector<2x128xf32> to vector<2x32xf32>
    %212 = arith.negf %211 : vector<2x32xf32>
    %213 = math.exp %212 : vector<2x32xf32>
    %cst_53 = arith.constant 1.000000e+00 : f32
    %214 = vector.broadcast %cst_53 : f32 to vector<2x32xf32>
    %215 = arith.addf %214, %213 : vector<2x32xf32>
    %216 = arith.divf %214, %215 : vector<2x32xf32>
    %217 = vector.extract_strided_slice %210 {offsets = [0, 32], sizes = [2, 32], strides = [1, 1]} : vector<2x128xf32> to vector<2x32xf32>
    %218 = arith.negf %217 : vector<2x32xf32>
    %219 = math.exp %218 : vector<2x32xf32>
    %cst_54 = arith.constant 1.000000e+00 : f32
    %220 = vector.broadcast %cst_54 : f32 to vector<2x32xf32>
    %221 = arith.addf %220, %219 : vector<2x32xf32>
    %222 = arith.divf %220, %221 : vector<2x32xf32>
    %223 = vector.extract_strided_slice %210 {offsets = [0, 64], sizes = [2, 32], strides = [1, 1]} : vector<2x128xf32> to vector<2x32xf32>
    %224 = math.tanh %223 : vector<2x32xf32>
    %225 = vector.extract_strided_slice %210 {offsets = [0, 96], sizes = [2, 32], strides = [1, 1]} : vector<2x128xf32> to vector<2x32xf32>
    %226 = arith.negf %225 : vector<2x32xf32>
    %227 = math.exp %226 : vector<2x32xf32>
    %cst_55 = arith.constant 1.000000e+00 : f32
    %228 = vector.broadcast %cst_55 : f32 to vector<2x32xf32>
    %229 = arith.addf %228, %227 : vector<2x32xf32>
    %230 = arith.divf %228, %229 : vector<2x32xf32>
    %231 = arith.mulf %222, %168 : vector<2x32xf32>
    %232 = arith.mulf %216, %224 : vector<2x32xf32>
    %233 = arith.addf %231, %232 : vector<2x32xf32>
    %234 = math.tanh %233 : vector<2x32xf32>
    %235 = arith.mulf %230, %234 : vector<2x32xf32>
    %236 = tpu.concatenate %235, %200 in 1 : vector<2x32xf32>, vector<2x32xf32> -> vector<2x64xf32>
    %237 = arith.truncf %236 : vector<2x64xf32> to vector<2x64xbf16>
    %cst_56 = arith.constant dense<0.000000e+00> : vector<2x128xf32>
    %238 = tpu.matmul %237, %4, %cst_56 {dimension_numbers = #tpu.dot_dimension_numbers<[1], [0], [0], [1], [0, 0, 1, 1], [], []>} : vector<2x64xbf16>, vector<64x128xbf16>, vector<2x128xf32> -> vector<2x128xf32>
    %239 = vector.broadcast %5 : vector<1x128xf32> to vector<2x128xf32>
    %240 = arith.addf %238, %239 : vector<2x128xf32>
    %241 = vector.extract_strided_slice %240 {offsets = [0, 0], sizes = [2, 32], strides = [1, 1]} : vector<2x128xf32> to vector<2x32xf32>
    %242 = arith.negf %241 : vector<2x32xf32>
    %243 = math.exp %242 : vector<2x32xf32>
    %cst_57 = arith.constant 1.000000e+00 : f32
    %244 = vector.broadcast %cst_57 : f32 to vector<2x32xf32>
    %245 = arith.addf %244, %243 : vector<2x32xf32>
    %246 = arith.divf %244, %245 : vector<2x32xf32>
    %247 = vector.extract_strided_slice %240 {offsets = [0, 32], sizes = [2, 32], strides = [1, 1]} : vector<2x128xf32> to vector<2x32xf32>
    %248 = arith.negf %247 : vector<2x32xf32>
    %249 = math.exp %248 : vector<2x32xf32>
    %cst_58 = arith.constant 1.000000e+00 : f32
    %250 = vector.broadcast %cst_58 : f32 to vector<2x32xf32>
    %251 = arith.addf %250, %249 : vector<2x32xf32>
    %252 = arith.divf %250, %251 : vector<2x32xf32>
    %253 = vector.extract_strided_slice %240 {offsets = [0, 64], sizes = [2, 32], strides = [1, 1]} : vector<2x128xf32> to vector<2x32xf32>
    %254 = math.tanh %253 : vector<2x32xf32>
    %255 = vector.extract_strided_slice %240 {offsets = [0, 96], sizes = [2, 32], strides = [1, 1]} : vector<2x128xf32> to vector<2x32xf32>
    %256 = arith.negf %255 : vector<2x32xf32>
    %257 = math.exp %256 : vector<2x32xf32>
    %cst_59 = arith.constant 1.000000e+00 : f32
    %258 = vector.broadcast %cst_59 : f32 to vector<2x32xf32>
    %259 = arith.addf %258, %257 : vector<2x32xf32>
    %260 = arith.divf %258, %259 : vector<2x32xf32>
    %261 = arith.mulf %252, %198 : vector<2x32xf32>
    %262 = arith.mulf %246, %254 : vector<2x32xf32>
    %263 = arith.addf %261, %262 : vector<2x32xf32>
    %264 = math.tanh %263 : vector<2x32xf32>
    %265 = arith.mulf %260, %264 : vector<2x32xf32>
    %266 = arith.index_cast %c3_i32 : i32 to index
    %c0_60 = arith.constant 0 : index
    %c0_61 = arith.constant 0 : index
    %267 = vector.load %arg5[%266, %c0_60, %c0_61] : memref<16x2x32xf32, #tpu.memory_space<vmem>>, vector<1x2x32xf32>
    %268 = vector.shape_cast %267 : vector<1x2x32xf32> to vector<2x32xf32>
    %269 = vector.shape_cast %265 : vector<2x32xf32> to vector<1x2x32xf32>
    tpu.vector_store %arg5[%266, %c0_60, %c0_61], %269 {strides = array<i32>} : memref<16x2x32xf32, #tpu.memory_space<vmem>>, vector<1x2x32xf32>,
    %c4_i32 = arith.constant 4 : i32
    %270 = arith.index_cast %c4_i32 : i32 to index
    %c0_62 = arith.constant 0 : index
    %c0_63 = arith.constant 0 : index
    %271 = vector.load %arg1[%270, %c0_62, %c0_63] : memref<16x2x128xf32, #tpu.memory_space<vmem>>, vector<1x2x128xf32>
    %272 = vector.shape_cast %271 : vector<1x2x128xf32> to vector<2x128xf32>
    %273 = arith.truncf %235 : vector<2x32xf32> to vector<2x32xbf16>
    %cst_64 = arith.constant dense<0.000000e+00> : vector<2x128xf32>
    %274 = tpu.matmul %273, %3, %cst_64 {dimension_numbers = #tpu.dot_dimension_numbers<[1], [0], [0], [1], [0, 0, 1, 1], [], []>} : vector<2x32xbf16>, vector<32x128xbf16>, vector<2x128xf32> -> vector<2x128xf32>
    %275 = arith.addf %272, %274 : vector<2x128xf32>
    %276 = vector.extract_strided_slice %275 {offsets = [0, 0], sizes = [2, 32], strides = [1, 1]} : vector<2x128xf32> to vector<2x32xf32>
    %277 = arith.negf %276 : vector<2x32xf32>
    %278 = math.exp %277 : vector<2x32xf32>
    %cst_65 = arith.constant 1.000000e+00 : f32
    %279 = vector.broadcast %cst_65 : f32 to vector<2x32xf32>
    %280 = arith.addf %279, %278 : vector<2x32xf32>
    %281 = arith.divf %279, %280 : vector<2x32xf32>
    %282 = vector.extract_strided_slice %275 {offsets = [0, 32], sizes = [2, 32], strides = [1, 1]} : vector<2x128xf32> to vector<2x32xf32>
    %283 = arith.negf %282 : vector<2x32xf32>
    %284 = math.exp %283 : vector<2x32xf32>
    %cst_66 = arith.constant 1.000000e+00 : f32
    %285 = vector.broadcast %cst_66 : f32 to vector<2x32xf32>
    %286 = arith.addf %285, %284 : vector<2x32xf32>
    %287 = arith.divf %285, %286 : vector<2x32xf32>
    %288 = vector.extract_strided_slice %275 {offsets = [0, 64], sizes = [2, 32], strides = [1, 1]} : vector<2x128xf32> to vector<2x32xf32>
    %289 = math.tanh %288 : vector<2x32xf32>
    %290 = vector.extract_strided_slice %275 {offsets = [0, 96], sizes = [2, 32], strides = [1, 1]} : vector<2x128xf32> to vector<2x32xf32>
    %291 = arith.negf %290 : vector<2x32xf32>
    %292 = math.exp %291 : vector<2x32xf32>
    %cst_67 = arith.constant 1.000000e+00 : f32
    %293 = vector.broadcast %cst_67 : f32 to vector<2x32xf32>
    %294 = arith.addf %293, %292 : vector<2x32xf32>
    %295 = arith.divf %293, %294 : vector<2x32xf32>
    %296 = arith.mulf %287, %233 : vector<2x32xf32>
    %297 = arith.mulf %281, %289 : vector<2x32xf32>
    %298 = arith.addf %296, %297 : vector<2x32xf32>
    %299 = math.tanh %298 : vector<2x32xf32>
    %300 = arith.mulf %295, %299 : vector<2x32xf32>
    %301 = tpu.concatenate %300, %265 in 1 : vector<2x32xf32>, vector<2x32xf32> -> vector<2x64xf32>
    %302 = arith.truncf %301 : vector<2x64xf32> to vector<2x64xbf16>
    %cst_68 = arith.constant dense<0.000000e+00> : vector<2x128xf32>
    %303 = tpu.matmul %302, %4, %cst_68 {dimension_numbers = #tpu.dot_dimension_numbers<[1], [0], [0], [1], [0, 0, 1, 1], [], []>} : vector<2x64xbf16>, vector<64x128xbf16>, vector<2x128xf32> -> vector<2x128xf32>
    %304 = vector.broadcast %5 : vector<1x128xf32> to vector<2x128xf32>
    %305 = arith.addf %303, %304 : vector<2x128xf32>
    %306 = vector.extract_strided_slice %305 {offsets = [0, 0], sizes = [2, 32], strides = [1, 1]} : vector<2x128xf32> to vector<2x32xf32>
    %307 = arith.negf %306 : vector<2x32xf32>
    %308 = math.exp %307 : vector<2x32xf32>
    %cst_69 = arith.constant 1.000000e+00 : f32
    %309 = vector.broadcast %cst_69 : f32 to vector<2x32xf32>
    %310 = arith.addf %309, %308 : vector<2x32xf32>
    %311 = arith.divf %309, %310 : vector<2x32xf32>
    %312 = vector.extract_strided_slice %305 {offsets = [0, 32], sizes = [2, 32], strides = [1, 1]} : vector<2x128xf32> to vector<2x32xf32>
    %313 = arith.negf %312 : vector<2x32xf32>
    %314 = math.exp %313 : vector<2x32xf32>
    %cst_70 = arith.constant 1.000000e+00 : f32
    %315 = vector.broadcast %cst_70 : f32 to vector<2x32xf32>
    %316 = arith.addf %315, %314 : vector<2x32xf32>
    %317 = arith.divf %315, %316 : vector<2x32xf32>
    %318 = vector.extract_strided_slice %305 {offsets = [0, 64], sizes = [2, 32], strides = [1, 1]} : vector<2x128xf32> to vector<2x32xf32>
    %319 = math.tanh %318 : vector<2x32xf32>
    %320 = vector.extract_strided_slice %305 {offsets = [0, 96], sizes = [2, 32], strides = [1, 1]} : vector<2x128xf32> to vector<2x32xf32>
    %321 = arith.negf %320 : vector<2x32xf32>
    %322 = math.exp %321 : vector<2x32xf32>
    %cst_71 = arith.constant 1.000000e+00 : f32
    %323 = vector.broadcast %cst_71 : f32 to vector<2x32xf32>
    %324 = arith.addf %323, %322 : vector<2x32xf32>
    %325 = arith.divf %323, %324 : vector<2x32xf32>
    %326 = arith.mulf %317, %263 : vector<2x32xf32>
    %327 = arith.mulf %311, %319 : vector<2x32xf32>
    %328 = arith.addf %326, %327 : vector<2x32xf32>
    %329 = math.tanh %328 : vector<2x32xf32>
    %330 = arith.mulf %325, %329 : vector<2x32xf32>
    %331 = arith.index_cast %c4_i32 : i32 to index
    %c0_72 = arith.constant 0 : index
    %c0_73 = arith.constant 0 : index
    %332 = vector.load %arg5[%331, %c0_72, %c0_73] : memref<16x2x32xf32, #tpu.memory_space<vmem>>, vector<1x2x32xf32>
    %333 = vector.shape_cast %332 : vector<1x2x32xf32> to vector<2x32xf32>
    %334 = vector.shape_cast %330 : vector<2x32xf32> to vector<1x2x32xf32>
    tpu.vector_store %arg5[%331, %c0_72, %c0_73], %334 {strides = array<i32>} : memref<16x2x32xf32, #tpu.memory_space<vmem>>, vector<1x2x32xf32>,
    %c5_i32 = arith.constant 5 : i32
    %335 = arith.index_cast %c5_i32 : i32 to index
    %c0_74 = arith.constant 0 : index
    %c0_75 = arith.constant 0 : index
    %336 = vector.load %arg1[%335, %c0_74, %c0_75] : memref<16x2x128xf32, #tpu.memory_space<vmem>>, vector<1x2x128xf32>
    %337 = vector.shape_cast %336 : vector<1x2x128xf32> to vector<2x128xf32>
    %338 = arith.truncf %300 : vector<2x32xf32> to vector<2x32xbf16>
    %cst_76 = arith.constant dense<0.000000e+00> : vector<2x128xf32>
    %339 = tpu.matmul %338, %3, %cst_76 {dimension_numbers = #tpu.dot_dimension_numbers<[1], [0], [0], [1], [0, 0, 1, 1], [], []>} : vector<2x32xbf16>, vector<32x128xbf16>, vector<2x128xf32> -> vector<2x128xf32>
    %340 = arith.addf %337, %339 : vector<2x128xf32>
    %341 = vector.extract_strided_slice %340 {offsets = [0, 0], sizes = [2, 32], strides = [1, 1]} : vector<2x128xf32> to vector<2x32xf32>
    %342 = arith.negf %341 : vector<2x32xf32>
    %343 = math.exp %342 : vector<2x32xf32>
    %cst_77 = arith.constant 1.000000e+00 : f32
    %344 = vector.broadcast %cst_77 : f32 to vector<2x32xf32>
    %345 = arith.addf %344, %343 : vector<2x32xf32>
    %346 = arith.divf %344, %345 : vector<2x32xf32>
    %347 = vector.extract_strided_slice %340 {offsets = [0, 32], sizes = [2, 32], strides = [1, 1]} : vector<2x128xf32> to vector<2x32xf32>
    %348 = arith.negf %347 : vector<2x32xf32>
    %349 = math.exp %348 : vector<2x32xf32>
    %cst_78 = arith.constant 1.000000e+00 : f32
    %350 = vector.broadcast %cst_78 : f32 to vector<2x32xf32>
    %351 = arith.addf %350, %349 : vector<2x32xf32>
    %352 = arith.divf %350, %351 : vector<2x32xf32>
    %353 = vector.extract_strided_slice %340 {offsets = [0, 64], sizes = [2, 32], strides = [1, 1]} : vector<2x128xf32> to vector<2x32xf32>
    %354 = math.tanh %353 : vector<2x32xf32>
    %355 = vector.extract_strided_slice %340 {offsets = [0, 96], sizes = [2, 32], strides = [1, 1]} : vector<2x128xf32> to vector<2x32xf32>
    %356 = arith.negf %355 : vector<2x32xf32>
    %357 = math.exp %356 : vector<2x32xf32>
    %cst_79 = arith.constant 1.000000e+00 : f32
    %358 = vector.broadcast %cst_79 : f32 to vector<2x32xf32>
    %359 = arith.addf %358, %357 : vector<2x32xf32>
    %360 = arith.divf %358, %359 : vector<2x32xf32>
    %361 = arith.mulf %352, %298 : vector<2x32xf32>
    %362 = arith.mulf %346, %354 : vector<2x32xf32>
    %363 = arith.addf %361, %362 : vector<2x32xf32>
    %364 = math.tanh %363 : vector<2x32xf32>
    %365 = arith.mulf %360, %364 : vector<2x32xf32>
    %366 = tpu.concatenate %365, %330 in 1 : vector<2x32xf32>, vector<2x32xf32> -> vector<2x64xf32>
    %367 = arith.truncf %366 : vector<2x64xf32> to vector<2x64xbf16>
    %cst_80 = arith.constant dense<0.000000e+00> : vector<2x128xf32>
    %368 = tpu.matmul %367, %4, %cst_80 {dimension_numbers = #tpu.dot_dimension_numbers<[1], [0], [0], [1], [0, 0, 1, 1], [], []>} : vector<2x64xbf16>, vector<64x128xbf16>, vector<2x128xf32> -> vector<2x128xf32>
    %369 = vector.broadcast %5 : vector<1x128xf32> to vector<2x128xf32>
    %370 = arith.addf %368, %369 : vector<2x128xf32>
    %371 = vector.extract_strided_slice %370 {offsets = [0, 0], sizes = [2, 32], strides = [1, 1]} : vector<2x128xf32> to vector<2x32xf32>
    %372 = arith.negf %371 : vector<2x32xf32>
    %373 = math.exp %372 : vector<2x32xf32>
    %cst_81 = arith.constant 1.000000e+00 : f32
    %374 = vector.broadcast %cst_81 : f32 to vector<2x32xf32>
    %375 = arith.addf %374, %373 : vector<2x32xf32>
    %376 = arith.divf %374, %375 : vector<2x32xf32>
    %377 = vector.extract_strided_slice %370 {offsets = [0, 32], sizes = [2, 32], strides = [1, 1]} : vector<2x128xf32> to vector<2x32xf32>
    %378 = arith.negf %377 : vector<2x32xf32>
    %379 = math.exp %378 : vector<2x32xf32>
    %cst_82 = arith.constant 1.000000e+00 : f32
    %380 = vector.broadcast %cst_82 : f32 to vector<2x32xf32>
    %381 = arith.addf %380, %379 : vector<2x32xf32>
    %382 = arith.divf %380, %381 : vector<2x32xf32>
    %383 = vector.extract_strided_slice %370 {offsets = [0, 64], sizes = [2, 32], strides = [1, 1]} : vector<2x128xf32> to vector<2x32xf32>
    %384 = math.tanh %383 : vector<2x32xf32>
    %385 = vector.extract_strided_slice %370 {offsets = [0, 96], sizes = [2, 32], strides = [1, 1]} : vector<2x128xf32> to vector<2x32xf32>
    %386 = arith.negf %385 : vector<2x32xf32>
    %387 = math.exp %386 : vector<2x32xf32>
    %cst_83 = arith.constant 1.000000e+00 : f32
    %388 = vector.broadcast %cst_83 : f32 to vector<2x32xf32>
    %389 = arith.addf %388, %387 : vector<2x32xf32>
    %390 = arith.divf %388, %389 : vector<2x32xf32>
    %391 = arith.mulf %382, %328 : vector<2x32xf32>
    %392 = arith.mulf %376, %384 : vector<2x32xf32>
    %393 = arith.addf %391, %392 : vector<2x32xf32>
    %394 = math.tanh %393 : vector<2x32xf32>
    %395 = arith.mulf %390, %394 : vector<2x32xf32>
    %396 = arith.index_cast %c5_i32 : i32 to index
    %c0_84 = arith.constant 0 : index
    %c0_85 = arith.constant 0 : index
    %397 = vector.load %arg5[%396, %c0_84, %c0_85] : memref<16x2x32xf32, #tpu.memory_space<vmem>>, vector<1x2x32xf32>
    %398 = vector.shape_cast %397 : vector<1x2x32xf32> to vector<2x32xf32>
    %399 = vector.shape_cast %395 : vector<2x32xf32> to vector<1x2x32xf32>
    tpu.vector_store %arg5[%396, %c0_84, %c0_85], %399 {strides = array<i32>} : memref<16x2x32xf32, #tpu.memory_space<vmem>>, vector<1x2x32xf32>,
    %c6_i32 = arith.constant 6 : i32
    %400 = arith.index_cast %c6_i32 : i32 to index
    %c0_86 = arith.constant 0 : index
    %c0_87 = arith.constant 0 : index
    %401 = vector.load %arg1[%400, %c0_86, %c0_87] : memref<16x2x128xf32, #tpu.memory_space<vmem>>, vector<1x2x128xf32>
    %402 = vector.shape_cast %401 : vector<1x2x128xf32> to vector<2x128xf32>
    %403 = arith.truncf %365 : vector<2x32xf32> to vector<2x32xbf16>
    %cst_88 = arith.constant dense<0.000000e+00> : vector<2x128xf32>
    %404 = tpu.matmul %403, %3, %cst_88 {dimension_numbers = #tpu.dot_dimension_numbers<[1], [0], [0], [1], [0, 0, 1, 1], [], []>} : vector<2x32xbf16>, vector<32x128xbf16>, vector<2x128xf32> -> vector<2x128xf32>
    %405 = arith.addf %402, %404 : vector<2x128xf32>
    %406 = vector.extract_strided_slice %405 {offsets = [0, 0], sizes = [2, 32], strides = [1, 1]} : vector<2x128xf32> to vector<2x32xf32>
    %407 = arith.negf %406 : vector<2x32xf32>
    %408 = math.exp %407 : vector<2x32xf32>
    %cst_89 = arith.constant 1.000000e+00 : f32
    %409 = vector.broadcast %cst_89 : f32 to vector<2x32xf32>
    %410 = arith.addf %409, %408 : vector<2x32xf32>
    %411 = arith.divf %409, %410 : vector<2x32xf32>
    %412 = vector.extract_strided_slice %405 {offsets = [0, 32], sizes = [2, 32], strides = [1, 1]} : vector<2x128xf32> to vector<2x32xf32>
    %413 = arith.negf %412 : vector<2x32xf32>
    %414 = math.exp %413 : vector<2x32xf32>
    %cst_90 = arith.constant 1.000000e+00 : f32
    %415 = vector.broadcast %cst_90 : f32 to vector<2x32xf32>
    %416 = arith.addf %415, %414 : vector<2x32xf32>
    %417 = arith.divf %415, %416 : vector<2x32xf32>
    %418 = vector.extract_strided_slice %405 {offsets = [0, 64], sizes = [2, 32], strides = [1, 1]} : vector<2x128xf32> to vector<2x32xf32>
    %419 = math.tanh %418 : vector<2x32xf32>
    %420 = vector.extract_strided_slice %405 {offsets = [0, 96], sizes = [2, 32], strides = [1, 1]} : vector<2x128xf32> to vector<2x32xf32>
    %421 = arith.negf %420 : vector<2x32xf32>
    %422 = math.exp %421 : vector<2x32xf32>
    %cst_91 = arith.constant 1.000000e+00 : f32
    %423 = vector.broadcast %cst_91 : f32 to vector<2x32xf32>
    %424 = arith.addf %423, %422 : vector<2x32xf32>
    %425 = arith.divf %423, %424 : vector<2x32xf32>
    %426 = arith.mulf %417, %363 : vector<2x32xf32>
    %427 = arith.mulf %411, %419 : vector<2x32xf32>
    %428 = arith.addf %426, %427 : vector<2x32xf32>
    %429 = math.tanh %428 : vector<2x32xf32>
    %430 = arith.mulf %425, %429 : vector<2x32xf32>
    %431 = tpu.concatenate %430, %395 in 1 : vector<2x32xf32>, vector<2x32xf32> -> vector<2x64xf32>
    %432 = arith.truncf %431 : vector<2x64xf32> to vector<2x64xbf16>
    %cst_92 = arith.constant dense<0.000000e+00> : vector<2x128xf32>
    %433 = tpu.matmul %432, %4, %cst_92 {dimension_numbers = #tpu.dot_dimension_numbers<[1], [0], [0], [1], [0, 0, 1, 1], [], []>} : vector<2x64xbf16>, vector<64x128xbf16>, vector<2x128xf32> -> vector<2x128xf32>
    %434 = vector.broadcast %5 : vector<1x128xf32> to vector<2x128xf32>
    %435 = arith.addf %433, %434 : vector<2x128xf32>
    %436 = vector.extract_strided_slice %435 {offsets = [0, 0], sizes = [2, 32], strides = [1, 1]} : vector<2x128xf32> to vector<2x32xf32>
    %437 = arith.negf %436 : vector<2x32xf32>
    %438 = math.exp %437 : vector<2x32xf32>
    %cst_93 = arith.constant 1.000000e+00 : f32
    %439 = vector.broadcast %cst_93 : f32 to vector<2x32xf32>
    %440 = arith.addf %439, %438 : vector<2x32xf32>
    %441 = arith.divf %439, %440 : vector<2x32xf32>
    %442 = vector.extract_strided_slice %435 {offsets = [0, 32], sizes = [2, 32], strides = [1, 1]} : vector<2x128xf32> to vector<2x32xf32>
    %443 = arith.negf %442 : vector<2x32xf32>
    %444 = math.exp %443 : vector<2x32xf32>
    %cst_94 = arith.constant 1.000000e+00 : f32
    %445 = vector.broadcast %cst_94 : f32 to vector<2x32xf32>
    %446 = arith.addf %445, %444 : vector<2x32xf32>
    %447 = arith.divf %445, %446 : vector<2x32xf32>
    %448 = vector.extract_strided_slice %435 {offsets = [0, 64], sizes = [2, 32], strides = [1, 1]} : vector<2x128xf32> to vector<2x32xf32>
    %449 = math.tanh %448 : vector<2x32xf32>
    %450 = vector.extract_strided_slice %435 {offsets = [0, 96], sizes = [2, 32], strides = [1, 1]} : vector<2x128xf32> to vector<2x32xf32>
    %451 = arith.negf %450 : vector<2x32xf32>
    %452 = math.exp %451 : vector<2x32xf32>
    %cst_95 = arith.constant 1.000000e+00 : f32
    %453 = vector.broadcast %cst_95 : f32 to vector<2x32xf32>
    %454 = arith.addf %453, %452 : vector<2x32xf32>
    %455 = arith.divf %453, %454 : vector<2x32xf32>
    %456 = arith.mulf %447, %393 : vector<2x32xf32>
    %457 = arith.mulf %441, %449 : vector<2x32xf32>
    %458 = arith.addf %456, %457 : vector<2x32xf32>
    %459 = math.tanh %458 : vector<2x32xf32>
    %460 = arith.mulf %455, %459 : vector<2x32xf32>
    %461 = arith.index_cast %c6_i32 : i32 to index
    %c0_96 = arith.constant 0 : index
    %c0_97 = arith.constant 0 : index
    %462 = vector.load %arg5[%461, %c0_96, %c0_97] : memref<16x2x32xf32, #tpu.memory_space<vmem>>, vector<1x2x32xf32>
    %463 = vector.shape_cast %462 : vector<1x2x32xf32> to vector<2x32xf32>
    %464 = vector.shape_cast %460 : vector<2x32xf32> to vector<1x2x32xf32>
    tpu.vector_store %arg5[%461, %c0_96, %c0_97], %464 {strides = array<i32>} : memref<16x2x32xf32, #tpu.memory_space<vmem>>, vector<1x2x32xf32>,
    %c7_i32 = arith.constant 7 : i32
    %465 = arith.index_cast %c7_i32 : i32 to index
    %c0_98 = arith.constant 0 : index
    %c0_99 = arith.constant 0 : index
    %466 = vector.load %arg1[%465, %c0_98, %c0_99] : memref<16x2x128xf32, #tpu.memory_space<vmem>>, vector<1x2x128xf32>
    %467 = vector.shape_cast %466 : vector<1x2x128xf32> to vector<2x128xf32>
    %468 = arith.truncf %430 : vector<2x32xf32> to vector<2x32xbf16>
    %cst_100 = arith.constant dense<0.000000e+00> : vector<2x128xf32>
    %469 = tpu.matmul %468, %3, %cst_100 {dimension_numbers = #tpu.dot_dimension_numbers<[1], [0], [0], [1], [0, 0, 1, 1], [], []>} : vector<2x32xbf16>, vector<32x128xbf16>, vector<2x128xf32> -> vector<2x128xf32>
    %470 = arith.addf %467, %469 : vector<2x128xf32>
    %471 = vector.extract_strided_slice %470 {offsets = [0, 0], sizes = [2, 32], strides = [1, 1]} : vector<2x128xf32> to vector<2x32xf32>
    %472 = arith.negf %471 : vector<2x32xf32>
    %473 = math.exp %472 : vector<2x32xf32>
    %cst_101 = arith.constant 1.000000e+00 : f32
    %474 = vector.broadcast %cst_101 : f32 to vector<2x32xf32>
    %475 = arith.addf %474, %473 : vector<2x32xf32>
    %476 = arith.divf %474, %475 : vector<2x32xf32>
    %477 = vector.extract_strided_slice %470 {offsets = [0, 32], sizes = [2, 32], strides = [1, 1]} : vector<2x128xf32> to vector<2x32xf32>
    %478 = arith.negf %477 : vector<2x32xf32>
    %479 = math.exp %478 : vector<2x32xf32>
    %cst_102 = arith.constant 1.000000e+00 : f32
    %480 = vector.broadcast %cst_102 : f32 to vector<2x32xf32>
    %481 = arith.addf %480, %479 : vector<2x32xf32>
    %482 = arith.divf %480, %481 : vector<2x32xf32>
    %483 = vector.extract_strided_slice %470 {offsets = [0, 64], sizes = [2, 32], strides = [1, 1]} : vector<2x128xf32> to vector<2x32xf32>
    %484 = math.tanh %483 : vector<2x32xf32>
    %485 = vector.extract_strided_slice %470 {offsets = [0, 96], sizes = [2, 32], strides = [1, 1]} : vector<2x128xf32> to vector<2x32xf32>
    %486 = arith.negf %485 : vector<2x32xf32>
    %487 = math.exp %486 : vector<2x32xf32>
    %cst_103 = arith.constant 1.000000e+00 : f32
    %488 = vector.broadcast %cst_103 : f32 to vector<2x32xf32>
    %489 = arith.addf %488, %487 : vector<2x32xf32>
    %490 = arith.divf %488, %489 : vector<2x32xf32>
    %491 = arith.mulf %482, %428 : vector<2x32xf32>
    %492 = arith.mulf %476, %484 : vector<2x32xf32>
    %493 = arith.addf %491, %492 : vector<2x32xf32>
    %494 = math.tanh %493 : vector<2x32xf32>
    %495 = arith.mulf %490, %494 : vector<2x32xf32>
    %496 = tpu.concatenate %495, %460 in 1 : vector<2x32xf32>, vector<2x32xf32> -> vector<2x64xf32>
    %497 = arith.truncf %496 : vector<2x64xf32> to vector<2x64xbf16>
    %cst_104 = arith.constant dense<0.000000e+00> : vector<2x128xf32>
    %498 = tpu.matmul %497, %4, %cst_104 {dimension_numbers = #tpu.dot_dimension_numbers<[1], [0], [0], [1], [0, 0, 1, 1], [], []>} : vector<2x64xbf16>, vector<64x128xbf16>, vector<2x128xf32> -> vector<2x128xf32>
    %499 = vector.broadcast %5 : vector<1x128xf32> to vector<2x128xf32>
    %500 = arith.addf %498, %499 : vector<2x128xf32>
    %501 = vector.extract_strided_slice %500 {offsets = [0, 0], sizes = [2, 32], strides = [1, 1]} : vector<2x128xf32> to vector<2x32xf32>
    %502 = arith.negf %501 : vector<2x32xf32>
    %503 = math.exp %502 : vector<2x32xf32>
    %cst_105 = arith.constant 1.000000e+00 : f32
    %504 = vector.broadcast %cst_105 : f32 to vector<2x32xf32>
    %505 = arith.addf %504, %503 : vector<2x32xf32>
    %506 = arith.divf %504, %505 : vector<2x32xf32>
    %507 = vector.extract_strided_slice %500 {offsets = [0, 32], sizes = [2, 32], strides = [1, 1]} : vector<2x128xf32> to vector<2x32xf32>
    %508 = arith.negf %507 : vector<2x32xf32>
    %509 = math.exp %508 : vector<2x32xf32>
    %cst_106 = arith.constant 1.000000e+00 : f32
    %510 = vector.broadcast %cst_106 : f32 to vector<2x32xf32>
    %511 = arith.addf %510, %509 : vector<2x32xf32>
    %512 = arith.divf %510, %511 : vector<2x32xf32>
    %513 = vector.extract_strided_slice %500 {offsets = [0, 64], sizes = [2, 32], strides = [1, 1]} : vector<2x128xf32> to vector<2x32xf32>
    %514 = math.tanh %513 : vector<2x32xf32>
    %515 = vector.extract_strided_slice %500 {offsets = [0, 96], sizes = [2, 32], strides = [1, 1]} : vector<2x128xf32> to vector<2x32xf32>
    %516 = arith.negf %515 : vector<2x32xf32>
    %517 = math.exp %516 : vector<2x32xf32>
    %cst_107 = arith.constant 1.000000e+00 : f32
    %518 = vector.broadcast %cst_107 : f32 to vector<2x32xf32>
    %519 = arith.addf %518, %517 : vector<2x32xf32>
    %520 = arith.divf %518, %519 : vector<2x32xf32>
    %521 = arith.mulf %512, %458 : vector<2x32xf32>
    %522 = arith.mulf %506, %514 : vector<2x32xf32>
    %523 = arith.addf %521, %522 : vector<2x32xf32>
    %524 = math.tanh %523 : vector<2x32xf32>
    %525 = arith.mulf %520, %524 : vector<2x32xf32>
    %526 = arith.index_cast %c7_i32 : i32 to index
    %c0_108 = arith.constant 0 : index
    %c0_109 = arith.constant 0 : index
    %527 = vector.load %arg5[%526, %c0_108, %c0_109] : memref<16x2x32xf32, #tpu.memory_space<vmem>>, vector<1x2x32xf32>
    %528 = vector.shape_cast %527 : vector<1x2x32xf32> to vector<2x32xf32>
    %529 = vector.shape_cast %525 : vector<2x32xf32> to vector<1x2x32xf32>
    tpu.vector_store %arg5[%526, %c0_108, %c0_109], %529 {strides = array<i32>} : memref<16x2x32xf32, #tpu.memory_space<vmem>>, vector<1x2x32xf32>,
    %c8_i32 = arith.constant 8 : i32
    %530 = arith.index_cast %c8_i32 : i32 to index
    %c0_110 = arith.constant 0 : index
    %c0_111 = arith.constant 0 : index
    %531 = vector.load %arg1[%530, %c0_110, %c0_111] : memref<16x2x128xf32, #tpu.memory_space<vmem>>, vector<1x2x128xf32>
    %532 = vector.shape_cast %531 : vector<1x2x128xf32> to vector<2x128xf32>
    %533 = arith.truncf %495 : vector<2x32xf32> to vector<2x32xbf16>
    %cst_112 = arith.constant dense<0.000000e+00> : vector<2x128xf32>
    %534 = tpu.matmul %533, %3, %cst_112 {dimension_numbers = #tpu.dot_dimension_numbers<[1], [0], [0], [1], [0, 0, 1, 1], [], []>} : vector<2x32xbf16>, vector<32x128xbf16>, vector<2x128xf32> -> vector<2x128xf32>
    %535 = arith.addf %532, %534 : vector<2x128xf32>
    %536 = vector.extract_strided_slice %535 {offsets = [0, 0], sizes = [2, 32], strides = [1, 1]} : vector<2x128xf32> to vector<2x32xf32>
    %537 = arith.negf %536 : vector<2x32xf32>
    %538 = math.exp %537 : vector<2x32xf32>
    %cst_113 = arith.constant 1.000000e+00 : f32
    %539 = vector.broadcast %cst_113 : f32 to vector<2x32xf32>
    %540 = arith.addf %539, %538 : vector<2x32xf32>
    %541 = arith.divf %539, %540 : vector<2x32xf32>
    %542 = vector.extract_strided_slice %535 {offsets = [0, 32], sizes = [2, 32], strides = [1, 1]} : vector<2x128xf32> to vector<2x32xf32>
    %543 = arith.negf %542 : vector<2x32xf32>
    %544 = math.exp %543 : vector<2x32xf32>
    %cst_114 = arith.constant 1.000000e+00 : f32
    %545 = vector.broadcast %cst_114 : f32 to vector<2x32xf32>
    %546 = arith.addf %545, %544 : vector<2x32xf32>
    %547 = arith.divf %545, %546 : vector<2x32xf32>
    %548 = vector.extract_strided_slice %535 {offsets = [0, 64], sizes = [2, 32], strides = [1, 1]} : vector<2x128xf32> to vector<2x32xf32>
    %549 = math.tanh %548 : vector<2x32xf32>
    %550 = vector.extract_strided_slice %535 {offsets = [0, 96], sizes = [2, 32], strides = [1, 1]} : vector<2x128xf32> to vector<2x32xf32>
    %551 = arith.negf %550 : vector<2x32xf32>
    %552 = math.exp %551 : vector<2x32xf32>
    %cst_115 = arith.constant 1.000000e+00 : f32
    %553 = vector.broadcast %cst_115 : f32 to vector<2x32xf32>
    %554 = arith.addf %553, %552 : vector<2x32xf32>
    %555 = arith.divf %553, %554 : vector<2x32xf32>
    %556 = arith.mulf %547, %493 : vector<2x32xf32>
    %557 = arith.mulf %541, %549 : vector<2x32xf32>
    %558 = arith.addf %556, %557 : vector<2x32xf32>
    %559 = math.tanh %558 : vector<2x32xf32>
    %560 = arith.mulf %555, %559 : vector<2x32xf32>
    %561 = tpu.concatenate %560, %525 in 1 : vector<2x32xf32>, vector<2x32xf32> -> vector<2x64xf32>
    %562 = arith.truncf %561 : vector<2x64xf32> to vector<2x64xbf16>
    %cst_116 = arith.constant dense<0.000000e+00> : vector<2x128xf32>
    %563 = tpu.matmul %562, %4, %cst_116 {dimension_numbers = #tpu.dot_dimension_numbers<[1], [0], [0], [1], [0, 0, 1, 1], [], []>} : vector<2x64xbf16>, vector<64x128xbf16>, vector<2x128xf32> -> vector<2x128xf32>
    %564 = vector.broadcast %5 : vector<1x128xf32> to vector<2x128xf32>
    %565 = arith.addf %563, %564 : vector<2x128xf32>
    %566 = vector.extract_strided_slice %565 {offsets = [0, 0], sizes = [2, 32], strides = [1, 1]} : vector<2x128xf32> to vector<2x32xf32>
    %567 = arith.negf %566 : vector<2x32xf32>
    %568 = math.exp %567 : vector<2x32xf32>
    %cst_117 = arith.constant 1.000000e+00 : f32
    %569 = vector.broadcast %cst_117 : f32 to vector<2x32xf32>
    %570 = arith.addf %569, %568 : vector<2x32xf32>
    %571 = arith.divf %569, %570 : vector<2x32xf32>
    %572 = vector.extract_strided_slice %565 {offsets = [0, 32], sizes = [2, 32], strides = [1, 1]} : vector<2x128xf32> to vector<2x32xf32>
    %573 = arith.negf %572 : vector<2x32xf32>
    %574 = math.exp %573 : vector<2x32xf32>
    %cst_118 = arith.constant 1.000000e+00 : f32
    %575 = vector.broadcast %cst_118 : f32 to vector<2x32xf32>
    %576 = arith.addf %575, %574 : vector<2x32xf32>
    %577 = arith.divf %575, %576 : vector<2x32xf32>
    %578 = vector.extract_strided_slice %565 {offsets = [0, 64], sizes = [2, 32], strides = [1, 1]} : vector<2x128xf32> to vector<2x32xf32>
    %579 = math.tanh %578 : vector<2x32xf32>
    %580 = vector.extract_strided_slice %565 {offsets = [0, 96], sizes = [2, 32], strides = [1, 1]} : vector<2x128xf32> to vector<2x32xf32>
    %581 = arith.negf %580 : vector<2x32xf32>
    %582 = math.exp %581 : vector<2x32xf32>
    %cst_119 = arith.constant 1.000000e+00 : f32
    %583 = vector.broadcast %cst_119 : f32 to vector<2x32xf32>
    %584 = arith.addf %583, %582 : vector<2x32xf32>
    %585 = arith.divf %583, %584 : vector<2x32xf32>
    %586 = arith.mulf %577, %523 : vector<2x32xf32>
    %587 = arith.mulf %571, %579 : vector<2x32xf32>
    %588 = arith.addf %586, %587 : vector<2x32xf32>
    %589 = math.tanh %588 : vector<2x32xf32>
    %590 = arith.mulf %585, %589 : vector<2x32xf32>
    %591 = arith.index_cast %c8_i32 : i32 to index
    %c0_120 = arith.constant 0 : index
    %c0_121 = arith.constant 0 : index
    %592 = vector.load %arg5[%591, %c0_120, %c0_121] : memref<16x2x32xf32, #tpu.memory_space<vmem>>, vector<1x2x32xf32>
    %593 = vector.shape_cast %592 : vector<1x2x32xf32> to vector<2x32xf32>
    %594 = vector.shape_cast %590 : vector<2x32xf32> to vector<1x2x32xf32>
    tpu.vector_store %arg5[%591, %c0_120, %c0_121], %594 {strides = array<i32>} : memref<16x2x32xf32, #tpu.memory_space<vmem>>, vector<1x2x32xf32>,
    %c9_i32 = arith.constant 9 : i32
    %595 = arith.index_cast %c9_i32 : i32 to index
    %c0_122 = arith.constant 0 : index
    %c0_123 = arith.constant 0 : index
    %596 = vector.load %arg1[%595, %c0_122, %c0_123] : memref<16x2x128xf32, #tpu.memory_space<vmem>>, vector<1x2x128xf32>
    %597 = vector.shape_cast %596 : vector<1x2x128xf32> to vector<2x128xf32>
    %598 = arith.truncf %560 : vector<2x32xf32> to vector<2x32xbf16>
    %cst_124 = arith.constant dense<0.000000e+00> : vector<2x128xf32>
    %599 = tpu.matmul %598, %3, %cst_124 {dimension_numbers = #tpu.dot_dimension_numbers<[1], [0], [0], [1], [0, 0, 1, 1], [], []>} : vector<2x32xbf16>, vector<32x128xbf16>, vector<2x128xf32> -> vector<2x128xf32>
    %600 = arith.addf %597, %599 : vector<2x128xf32>
    %601 = vector.extract_strided_slice %600 {offsets = [0, 0], sizes = [2, 32], strides = [1, 1]} : vector<2x128xf32> to vector<2x32xf32>
    %602 = arith.negf %601 : vector<2x32xf32>
    %603 = math.exp %602 : vector<2x32xf32>
    %cst_125 = arith.constant 1.000000e+00 : f32
    %604 = vector.broadcast %cst_125 : f32 to vector<2x32xf32>
    %605 = arith.addf %604, %603 : vector<2x32xf32>
    %606 = arith.divf %604, %605 : vector<2x32xf32>
    %607 = vector.extract_strided_slice %600 {offsets = [0, 32], sizes = [2, 32], strides = [1, 1]} : vector<2x128xf32> to vector<2x32xf32>
    %608 = arith.negf %607 : vector<2x32xf32>
    %609 = math.exp %608 : vector<2x32xf32>
    %cst_126 = arith.constant 1.000000e+00 : f32
    %610 = vector.broadcast %cst_126 : f32 to vector<2x32xf32>
    %611 = arith.addf %610, %609 : vector<2x32xf32>
    %612 = arith.divf %610, %611 : vector<2x32xf32>
    %613 = vector.extract_strided_slice %600 {offsets = [0, 64], sizes = [2, 32], strides = [1, 1]} : vector<2x128xf32> to vector<2x32xf32>
    %614 = math.tanh %613 : vector<2x32xf32>
    %615 = vector.extract_strided_slice %600 {offsets = [0, 96], sizes = [2, 32], strides = [1, 1]} : vector<2x128xf32> to vector<2x32xf32>
    %616 = arith.negf %615 : vector<2x32xf32>
    %617 = math.exp %616 : vector<2x32xf32>
    %cst_127 = arith.constant 1.000000e+00 : f32
    %618 = vector.broadcast %cst_127 : f32 to vector<2x32xf32>
    %619 = arith.addf %618, %617 : vector<2x32xf32>
    %620 = arith.divf %618, %619 : vector<2x32xf32>
    %621 = arith.mulf %612, %558 : vector<2x32xf32>
    %622 = arith.mulf %606, %614 : vector<2x32xf32>
    %623 = arith.addf %621, %622 : vector<2x32xf32>
    %624 = math.tanh %623 : vector<2x32xf32>
    %625 = arith.mulf %620, %624 : vector<2x32xf32>
    %626 = tpu.concatenate %625, %590 in 1 : vector<2x32xf32>, vector<2x32xf32> -> vector<2x64xf32>
    %627 = arith.truncf %626 : vector<2x64xf32> to vector<2x64xbf16>
    %cst_128 = arith.constant dense<0.000000e+00> : vector<2x128xf32>
    %628 = tpu.matmul %627, %4, %cst_128 {dimension_numbers = #tpu.dot_dimension_numbers<[1], [0], [0], [1], [0, 0, 1, 1], [], []>} : vector<2x64xbf16>, vector<64x128xbf16>, vector<2x128xf32> -> vector<2x128xf32>
    %629 = vector.broadcast %5 : vector<1x128xf32> to vector<2x128xf32>
    %630 = arith.addf %628, %629 : vector<2x128xf32>
    %631 = vector.extract_strided_slice %630 {offsets = [0, 0], sizes = [2, 32], strides = [1, 1]} : vector<2x128xf32> to vector<2x32xf32>
    %632 = arith.negf %631 : vector<2x32xf32>
    %633 = math.exp %632 : vector<2x32xf32>
    %cst_129 = arith.constant 1.000000e+00 : f32
    %634 = vector.broadcast %cst_129 : f32 to vector<2x32xf32>
    %635 = arith.addf %634, %633 : vector<2x32xf32>
    %636 = arith.divf %634, %635 : vector<2x32xf32>
    %637 = vector.extract_strided_slice %630 {offsets = [0, 32], sizes = [2, 32], strides = [1, 1]} : vector<2x128xf32> to vector<2x32xf32>
    %638 = arith.negf %637 : vector<2x32xf32>
    %639 = math.exp %638 : vector<2x32xf32>
    %cst_130 = arith.constant 1.000000e+00 : f32
    %640 = vector.broadcast %cst_130 : f32 to vector<2x32xf32>
    %641 = arith.addf %640, %639 : vector<2x32xf32>
    %642 = arith.divf %640, %641 : vector<2x32xf32>
    %643 = vector.extract_strided_slice %630 {offsets = [0, 64], sizes = [2, 32], strides = [1, 1]} : vector<2x128xf32> to vector<2x32xf32>
    %644 = math.tanh %643 : vector<2x32xf32>
    %645 = vector.extract_strided_slice %630 {offsets = [0, 96], sizes = [2, 32], strides = [1, 1]} : vector<2x128xf32> to vector<2x32xf32>
    %646 = arith.negf %645 : vector<2x32xf32>
    %647 = math.exp %646 : vector<2x32xf32>
    %cst_131 = arith.constant 1.000000e+00 : f32
    %648 = vector.broadcast %cst_131 : f32 to vector<2x32xf32>
    %649 = arith.addf %648, %647 : vector<2x32xf32>
    %650 = arith.divf %648, %649 : vector<2x32xf32>
    %651 = arith.mulf %642, %588 : vector<2x32xf32>
    %652 = arith.mulf %636, %644 : vector<2x32xf32>
    %653 = arith.addf %651, %652 : vector<2x32xf32>
    %654 = math.tanh %653 : vector<2x32xf32>
    %655 = arith.mulf %650, %654 : vector<2x32xf32>
    %656 = arith.index_cast %c9_i32 : i32 to index
    %c0_132 = arith.constant 0 : index
    %c0_133 = arith.constant 0 : index
    %657 = vector.load %arg5[%656, %c0_132, %c0_133] : memref<16x2x32xf32, #tpu.memory_space<vmem>>, vector<1x2x32xf32>
    %658 = vector.shape_cast %657 : vector<1x2x32xf32> to vector<2x32xf32>
    %659 = vector.shape_cast %655 : vector<2x32xf32> to vector<1x2x32xf32>
    tpu.vector_store %arg5[%656, %c0_132, %c0_133], %659 {strides = array<i32>} : memref<16x2x32xf32, #tpu.memory_space<vmem>>, vector<1x2x32xf32>,
    %c10_i32 = arith.constant 10 : i32
    %660 = arith.index_cast %c10_i32 : i32 to index
    %c0_134 = arith.constant 0 : index
    %c0_135 = arith.constant 0 : index
    %661 = vector.load %arg1[%660, %c0_134, %c0_135] : memref<16x2x128xf32, #tpu.memory_space<vmem>>, vector<1x2x128xf32>
    %662 = vector.shape_cast %661 : vector<1x2x128xf32> to vector<2x128xf32>
    %663 = arith.truncf %625 : vector<2x32xf32> to vector<2x32xbf16>
    %cst_136 = arith.constant dense<0.000000e+00> : vector<2x128xf32>
    %664 = tpu.matmul %663, %3, %cst_136 {dimension_numbers = #tpu.dot_dimension_numbers<[1], [0], [0], [1], [0, 0, 1, 1], [], []>} : vector<2x32xbf16>, vector<32x128xbf16>, vector<2x128xf32> -> vector<2x128xf32>
    %665 = arith.addf %662, %664 : vector<2x128xf32>
    %666 = vector.extract_strided_slice %665 {offsets = [0, 0], sizes = [2, 32], strides = [1, 1]} : vector<2x128xf32> to vector<2x32xf32>
    %667 = arith.negf %666 : vector<2x32xf32>
    %668 = math.exp %667 : vector<2x32xf32>
    %cst_137 = arith.constant 1.000000e+00 : f32
    %669 = vector.broadcast %cst_137 : f32 to vector<2x32xf32>
    %670 = arith.addf %669, %668 : vector<2x32xf32>
    %671 = arith.divf %669, %670 : vector<2x32xf32>
    %672 = vector.extract_strided_slice %665 {offsets = [0, 32], sizes = [2, 32], strides = [1, 1]} : vector<2x128xf32> to vector<2x32xf32>
    %673 = arith.negf %672 : vector<2x32xf32>
    %674 = math.exp %673 : vector<2x32xf32>
    %cst_138 = arith.constant 1.000000e+00 : f32
    %675 = vector.broadcast %cst_138 : f32 to vector<2x32xf32>
    %676 = arith.addf %675, %674 : vector<2x32xf32>
    %677 = arith.divf %675, %676 : vector<2x32xf32>
    %678 = vector.extract_strided_slice %665 {offsets = [0, 64], sizes = [2, 32], strides = [1, 1]} : vector<2x128xf32> to vector<2x32xf32>
    %679 = math.tanh %678 : vector<2x32xf32>
    %680 = vector.extract_strided_slice %665 {offsets = [0, 96], sizes = [2, 32], strides = [1, 1]} : vector<2x128xf32> to vector<2x32xf32>
    %681 = arith.negf %680 : vector<2x32xf32>
    %682 = math.exp %681 : vector<2x32xf32>
    %cst_139 = arith.constant 1.000000e+00 : f32
    %683 = vector.broadcast %cst_139 : f32 to vector<2x32xf32>
    %684 = arith.addf %683, %682 : vector<2x32xf32>
    %685 = arith.divf %683, %684 : vector<2x32xf32>
    %686 = arith.mulf %677, %623 : vector<2x32xf32>
    %687 = arith.mulf %671, %679 : vector<2x32xf32>
    %688 = arith.addf %686, %687 : vector<2x32xf32>
    %689 = math.tanh %688 : vector<2x32xf32>
    %690 = arith.mulf %685, %689 : vector<2x32xf32>
    %691 = tpu.concatenate %690, %655 in 1 : vector<2x32xf32>, vector<2x32xf32> -> vector<2x64xf32>
    %692 = arith.truncf %691 : vector<2x64xf32> to vector<2x64xbf16>
    %cst_140 = arith.constant dense<0.000000e+00> : vector<2x128xf32>
    %693 = tpu.matmul %692, %4, %cst_140 {dimension_numbers = #tpu.dot_dimension_numbers<[1], [0], [0], [1], [0, 0, 1, 1], [], []>} : vector<2x64xbf16>, vector<64x128xbf16>, vector<2x128xf32> -> vector<2x128xf32>
    %694 = vector.broadcast %5 : vector<1x128xf32> to vector<2x128xf32>
    %695 = arith.addf %693, %694 : vector<2x128xf32>
    %696 = vector.extract_strided_slice %695 {offsets = [0, 0], sizes = [2, 32], strides = [1, 1]} : vector<2x128xf32> to vector<2x32xf32>
    %697 = arith.negf %696 : vector<2x32xf32>
    %698 = math.exp %697 : vector<2x32xf32>
    %cst_141 = arith.constant 1.000000e+00 : f32
    %699 = vector.broadcast %cst_141 : f32 to vector<2x32xf32>
    %700 = arith.addf %699, %698 : vector<2x32xf32>
    %701 = arith.divf %699, %700 : vector<2x32xf32>
    %702 = vector.extract_strided_slice %695 {offsets = [0, 32], sizes = [2, 32], strides = [1, 1]} : vector<2x128xf32> to vector<2x32xf32>
    %703 = arith.negf %702 : vector<2x32xf32>
    %704 = math.exp %703 : vector<2x32xf32>
    %cst_142 = arith.constant 1.000000e+00 : f32
    %705 = vector.broadcast %cst_142 : f32 to vector<2x32xf32>
    %706 = arith.addf %705, %704 : vector<2x32xf32>
    %707 = arith.divf %705, %706 : vector<2x32xf32>
    %708 = vector.extract_strided_slice %695 {offsets = [0, 64], sizes = [2, 32], strides = [1, 1]} : vector<2x128xf32> to vector<2x32xf32>
    %709 = math.tanh %708 : vector<2x32xf32>
    %710 = vector.extract_strided_slice %695 {offsets = [0, 96], sizes = [2, 32], strides = [1, 1]} : vector<2x128xf32> to vector<2x32xf32>
    %711 = arith.negf %710 : vector<2x32xf32>
    %712 = math.exp %711 : vector<2x32xf32>
    %cst_143 = arith.constant 1.000000e+00 : f32
    %713 = vector.broadcast %cst_143 : f32 to vector<2x32xf32>
    %714 = arith.addf %713, %712 : vector<2x32xf32>
    %715 = arith.divf %713, %714 : vector<2x32xf32>
    %716 = arith.mulf %707, %653 : vector<2x32xf32>
    %717 = arith.mulf %701, %709 : vector<2x32xf32>
    %718 = arith.addf %716, %717 : vector<2x32xf32>
    %719 = math.tanh %718 : vector<2x32xf32>
    %720 = arith.mulf %715, %719 : vector<2x32xf32>
    %721 = arith.index_cast %c10_i32 : i32 to index
    %c0_144 = arith.constant 0 : index
    %c0_145 = arith.constant 0 : index
    %722 = vector.load %arg5[%721, %c0_144, %c0_145] : memref<16x2x32xf32, #tpu.memory_space<vmem>>, vector<1x2x32xf32>
    %723 = vector.shape_cast %722 : vector<1x2x32xf32> to vector<2x32xf32>
    %724 = vector.shape_cast %720 : vector<2x32xf32> to vector<1x2x32xf32>
    tpu.vector_store %arg5[%721, %c0_144, %c0_145], %724 {strides = array<i32>} : memref<16x2x32xf32, #tpu.memory_space<vmem>>, vector<1x2x32xf32>,
    %c11_i32 = arith.constant 11 : i32
    %725 = arith.index_cast %c11_i32 : i32 to index
    %c0_146 = arith.constant 0 : index
    %c0_147 = arith.constant 0 : index
    %726 = vector.load %arg1[%725, %c0_146, %c0_147] : memref<16x2x128xf32, #tpu.memory_space<vmem>>, vector<1x2x128xf32>
    %727 = vector.shape_cast %726 : vector<1x2x128xf32> to vector<2x128xf32>
    %728 = arith.truncf %690 : vector<2x32xf32> to vector<2x32xbf16>
    %cst_148 = arith.constant dense<0.000000e+00> : vector<2x128xf32>
    %729 = tpu.matmul %728, %3, %cst_148 {dimension_numbers = #tpu.dot_dimension_numbers<[1], [0], [0], [1], [0, 0, 1, 1], [], []>} : vector<2x32xbf16>, vector<32x128xbf16>, vector<2x128xf32> -> vector<2x128xf32>
    %730 = arith.addf %727, %729 : vector<2x128xf32>
    %731 = vector.extract_strided_slice %730 {offsets = [0, 0], sizes = [2, 32], strides = [1, 1]} : vector<2x128xf32> to vector<2x32xf32>
    %732 = arith.negf %731 : vector<2x32xf32>
    %733 = math.exp %732 : vector<2x32xf32>
    %cst_149 = arith.constant 1.000000e+00 : f32
    %734 = vector.broadcast %cst_149 : f32 to vector<2x32xf32>
    %735 = arith.addf %734, %733 : vector<2x32xf32>
    %736 = arith.divf %734, %735 : vector<2x32xf32>
    %737 = vector.extract_strided_slice %730 {offsets = [0, 32], sizes = [2, 32], strides = [1, 1]} : vector<2x128xf32> to vector<2x32xf32>
    %738 = arith.negf %737 : vector<2x32xf32>
    %739 = math.exp %738 : vector<2x32xf32>
    %cst_150 = arith.constant 1.000000e+00 : f32
    %740 = vector.broadcast %cst_150 : f32 to vector<2x32xf32>
    %741 = arith.addf %740, %739 : vector<2x32xf32>
    %742 = arith.divf %740, %741 : vector<2x32xf32>
    %743 = vector.extract_strided_slice %730 {offsets = [0, 64], sizes = [2, 32], strides = [1, 1]} : vector<2x128xf32> to vector<2x32xf32>
    %744 = math.tanh %743 : vector<2x32xf32>
    %745 = vector.extract_strided_slice %730 {offsets = [0, 96], sizes = [2, 32], strides = [1, 1]} : vector<2x128xf32> to vector<2x32xf32>
    %746 = arith.negf %745 : vector<2x32xf32>
    %747 = math.exp %746 : vector<2x32xf32>
    %cst_151 = arith.constant 1.000000e+00 : f32
    %748 = vector.broadcast %cst_151 : f32 to vector<2x32xf32>
    %749 = arith.addf %748, %747 : vector<2x32xf32>
    %750 = arith.divf %748, %749 : vector<2x32xf32>
    %751 = arith.mulf %742, %688 : vector<2x32xf32>
    %752 = arith.mulf %736, %744 : vector<2x32xf32>
    %753 = arith.addf %751, %752 : vector<2x32xf32>
    %754 = math.tanh %753 : vector<2x32xf32>
    %755 = arith.mulf %750, %754 : vector<2x32xf32>
    %756 = tpu.concatenate %755, %720 in 1 : vector<2x32xf32>, vector<2x32xf32> -> vector<2x64xf32>
    %757 = arith.truncf %756 : vector<2x64xf32> to vector<2x64xbf16>
    %cst_152 = arith.constant dense<0.000000e+00> : vector<2x128xf32>
    %758 = tpu.matmul %757, %4, %cst_152 {dimension_numbers = #tpu.dot_dimension_numbers<[1], [0], [0], [1], [0, 0, 1, 1], [], []>} : vector<2x64xbf16>, vector<64x128xbf16>, vector<2x128xf32> -> vector<2x128xf32>
    %759 = vector.broadcast %5 : vector<1x128xf32> to vector<2x128xf32>
    %760 = arith.addf %758, %759 : vector<2x128xf32>
    %761 = vector.extract_strided_slice %760 {offsets = [0, 0], sizes = [2, 32], strides = [1, 1]} : vector<2x128xf32> to vector<2x32xf32>
    %762 = arith.negf %761 : vector<2x32xf32>
    %763 = math.exp %762 : vector<2x32xf32>
    %cst_153 = arith.constant 1.000000e+00 : f32
    %764 = vector.broadcast %cst_153 : f32 to vector<2x32xf32>
    %765 = arith.addf %764, %763 : vector<2x32xf32>
    %766 = arith.divf %764, %765 : vector<2x32xf32>
    %767 = vector.extract_strided_slice %760 {offsets = [0, 32], sizes = [2, 32], strides = [1, 1]} : vector<2x128xf32> to vector<2x32xf32>
    %768 = arith.negf %767 : vector<2x32xf32>
    %769 = math.exp %768 : vector<2x32xf32>
    %cst_154 = arith.constant 1.000000e+00 : f32
    %770 = vector.broadcast %cst_154 : f32 to vector<2x32xf32>
    %771 = arith.addf %770, %769 : vector<2x32xf32>
    %772 = arith.divf %770, %771 : vector<2x32xf32>
    %773 = vector.extract_strided_slice %760 {offsets = [0, 64], sizes = [2, 32], strides = [1, 1]} : vector<2x128xf32> to vector<2x32xf32>
    %774 = math.tanh %773 : vector<2x32xf32>
    %775 = vector.extract_strided_slice %760 {offsets = [0, 96], sizes = [2, 32], strides = [1, 1]} : vector<2x128xf32> to vector<2x32xf32>
    %776 = arith.negf %775 : vector<2x32xf32>
    %777 = math.exp %776 : vector<2x32xf32>
    %cst_155 = arith.constant 1.000000e+00 : f32
    %778 = vector.broadcast %cst_155 : f32 to vector<2x32xf32>
    %779 = arith.addf %778, %777 : vector<2x32xf32>
    %780 = arith.divf %778, %779 : vector<2x32xf32>
    %781 = arith.mulf %772, %718 : vector<2x32xf32>
    %782 = arith.mulf %766, %774 : vector<2x32xf32>
    %783 = arith.addf %781, %782 : vector<2x32xf32>
    %784 = math.tanh %783 : vector<2x32xf32>
    %785 = arith.mulf %780, %784 : vector<2x32xf32>
    %786 = arith.index_cast %c11_i32 : i32 to index
    %c0_156 = arith.constant 0 : index
    %c0_157 = arith.constant 0 : index
    %787 = vector.load %arg5[%786, %c0_156, %c0_157] : memref<16x2x32xf32, #tpu.memory_space<vmem>>, vector<1x2x32xf32>
    %788 = vector.shape_cast %787 : vector<1x2x32xf32> to vector<2x32xf32>
    %789 = vector.shape_cast %785 : vector<2x32xf32> to vector<1x2x32xf32>
    tpu.vector_store %arg5[%786, %c0_156, %c0_157], %789 {strides = array<i32>} : memref<16x2x32xf32, #tpu.memory_space<vmem>>, vector<1x2x32xf32>,
    %c12_i32 = arith.constant 12 : i32
    %790 = arith.index_cast %c12_i32 : i32 to index
    %c0_158 = arith.constant 0 : index
    %c0_159 = arith.constant 0 : index
    %791 = vector.load %arg1[%790, %c0_158, %c0_159] : memref<16x2x128xf32, #tpu.memory_space<vmem>>, vector<1x2x128xf32>
    %792 = vector.shape_cast %791 : vector<1x2x128xf32> to vector<2x128xf32>
    %793 = arith.truncf %755 : vector<2x32xf32> to vector<2x32xbf16>
    %cst_160 = arith.constant dense<0.000000e+00> : vector<2x128xf32>
    %794 = tpu.matmul %793, %3, %cst_160 {dimension_numbers = #tpu.dot_dimension_numbers<[1], [0], [0], [1], [0, 0, 1, 1], [], []>} : vector<2x32xbf16>, vector<32x128xbf16>, vector<2x128xf32> -> vector<2x128xf32>
    %795 = arith.addf %792, %794 : vector<2x128xf32>
    %796 = vector.extract_strided_slice %795 {offsets = [0, 0], sizes = [2, 32], strides = [1, 1]} : vector<2x128xf32> to vector<2x32xf32>
    %797 = arith.negf %796 : vector<2x32xf32>
    %798 = math.exp %797 : vector<2x32xf32>
    %cst_161 = arith.constant 1.000000e+00 : f32
    %799 = vector.broadcast %cst_161 : f32 to vector<2x32xf32>
    %800 = arith.addf %799, %798 : vector<2x32xf32>
    %801 = arith.divf %799, %800 : vector<2x32xf32>
    %802 = vector.extract_strided_slice %795 {offsets = [0, 32], sizes = [2, 32], strides = [1, 1]} : vector<2x128xf32> to vector<2x32xf32>
    %803 = arith.negf %802 : vector<2x32xf32>
    %804 = math.exp %803 : vector<2x32xf32>
    %cst_162 = arith.constant 1.000000e+00 : f32
    %805 = vector.broadcast %cst_162 : f32 to vector<2x32xf32>
    %806 = arith.addf %805, %804 : vector<2x32xf32>
    %807 = arith.divf %805, %806 : vector<2x32xf32>
    %808 = vector.extract_strided_slice %795 {offsets = [0, 64], sizes = [2, 32], strides = [1, 1]} : vector<2x128xf32> to vector<2x32xf32>
    %809 = math.tanh %808 : vector<2x32xf32>
    %810 = vector.extract_strided_slice %795 {offsets = [0, 96], sizes = [2, 32], strides = [1, 1]} : vector<2x128xf32> to vector<2x32xf32>
    %811 = arith.negf %810 : vector<2x32xf32>
    %812 = math.exp %811 : vector<2x32xf32>
    %cst_163 = arith.constant 1.000000e+00 : f32
    %813 = vector.broadcast %cst_163 : f32 to vector<2x32xf32>
    %814 = arith.addf %813, %812 : vector<2x32xf32>
    %815 = arith.divf %813, %814 : vector<2x32xf32>
    %816 = arith.mulf %807, %753 : vector<2x32xf32>
    %817 = arith.mulf %801, %809 : vector<2x32xf32>
    %818 = arith.addf %816, %817 : vector<2x32xf32>
    %819 = math.tanh %818 : vector<2x32xf32>
    %820 = arith.mulf %815, %819 : vector<2x32xf32>
    %821 = tpu.concatenate %820, %785 in 1 : vector<2x32xf32>, vector<2x32xf32> -> vector<2x64xf32>
    %822 = arith.truncf %821 : vector<2x64xf32> to vector<2x64xbf16>
    %cst_164 = arith.constant dense<0.000000e+00> : vector<2x128xf32>
    %823 = tpu.matmul %822, %4, %cst_164 {dimension_numbers = #tpu.dot_dimension_numbers<[1], [0], [0], [1], [0, 0, 1, 1], [], []>} : vector<2x64xbf16>, vector<64x128xbf16>, vector<2x128xf32> -> vector<2x128xf32>
    %824 = vector.broadcast %5 : vector<1x128xf32> to vector<2x128xf32>
    %825 = arith.addf %823, %824 : vector<2x128xf32>
    %826 = vector.extract_strided_slice %825 {offsets = [0, 0], sizes = [2, 32], strides = [1, 1]} : vector<2x128xf32> to vector<2x32xf32>
    %827 = arith.negf %826 : vector<2x32xf32>
    %828 = math.exp %827 : vector<2x32xf32>
    %cst_165 = arith.constant 1.000000e+00 : f32
    %829 = vector.broadcast %cst_165 : f32 to vector<2x32xf32>
    %830 = arith.addf %829, %828 : vector<2x32xf32>
    %831 = arith.divf %829, %830 : vector<2x32xf32>
    %832 = vector.extract_strided_slice %825 {offsets = [0, 32], sizes = [2, 32], strides = [1, 1]} : vector<2x128xf32> to vector<2x32xf32>
    %833 = arith.negf %832 : vector<2x32xf32>
    %834 = math.exp %833 : vector<2x32xf32>
    %cst_166 = arith.constant 1.000000e+00 : f32
    %835 = vector.broadcast %cst_166 : f32 to vector<2x32xf32>
    %836 = arith.addf %835, %834 : vector<2x32xf32>
    %837 = arith.divf %835, %836 : vector<2x32xf32>
    %838 = vector.extract_strided_slice %825 {offsets = [0, 64], sizes = [2, 32], strides = [1, 1]} : vector<2x128xf32> to vector<2x32xf32>
    %839 = math.tanh %838 : vector<2x32xf32>
    %840 = vector.extract_strided_slice %825 {offsets = [0, 96], sizes = [2, 32], strides = [1, 1]} : vector<2x128xf32> to vector<2x32xf32>
    %841 = arith.negf %840 : vector<2x32xf32>
    %842 = math.exp %841 : vector<2x32xf32>
    %cst_167 = arith.constant 1.000000e+00 : f32
    %843 = vector.broadcast %cst_167 : f32 to vector<2x32xf32>
    %844 = arith.addf %843, %842 : vector<2x32xf32>
    %845 = arith.divf %843, %844 : vector<2x32xf32>
    %846 = arith.mulf %837, %783 : vector<2x32xf32>
    %847 = arith.mulf %831, %839 : vector<2x32xf32>
    %848 = arith.addf %846, %847 : vector<2x32xf32>
    %849 = math.tanh %848 : vector<2x32xf32>
    %850 = arith.mulf %845, %849 : vector<2x32xf32>
    %851 = arith.index_cast %c12_i32 : i32 to index
    %c0_168 = arith.constant 0 : index
    %c0_169 = arith.constant 0 : index
    %852 = vector.load %arg5[%851, %c0_168, %c0_169] : memref<16x2x32xf32, #tpu.memory_space<vmem>>, vector<1x2x32xf32>
    %853 = vector.shape_cast %852 : vector<1x2x32xf32> to vector<2x32xf32>
    %854 = vector.shape_cast %850 : vector<2x32xf32> to vector<1x2x32xf32>
    tpu.vector_store %arg5[%851, %c0_168, %c0_169], %854 {strides = array<i32>} : memref<16x2x32xf32, #tpu.memory_space<vmem>>, vector<1x2x32xf32>,
    %c13_i32 = arith.constant 13 : i32
    %855 = arith.index_cast %c13_i32 : i32 to index
    %c0_170 = arith.constant 0 : index
    %c0_171 = arith.constant 0 : index
    %856 = vector.load %arg1[%855, %c0_170, %c0_171] : memref<16x2x128xf32, #tpu.memory_space<vmem>>, vector<1x2x128xf32>
    %857 = vector.shape_cast %856 : vector<1x2x128xf32> to vector<2x128xf32>
    %858 = arith.truncf %820 : vector<2x32xf32> to vector<2x32xbf16>
    %cst_172 = arith.constant dense<0.000000e+00> : vector<2x128xf32>
    %859 = tpu.matmul %858, %3, %cst_172 {dimension_numbers = #tpu.dot_dimension_numbers<[1], [0], [0], [1], [0, 0, 1, 1], [], []>} : vector<2x32xbf16>, vector<32x128xbf16>, vector<2x128xf32> -> vector<2x128xf32>
    %860 = arith.addf %857, %859 : vector<2x128xf32>
    %861 = vector.extract_strided_slice %860 {offsets = [0, 0], sizes = [2, 32], strides = [1, 1]} : vector<2x128xf32> to vector<2x32xf32>
    %862 = arith.negf %861 : vector<2x32xf32>
    %863 = math.exp %862 : vector<2x32xf32>
    %cst_173 = arith.constant 1.000000e+00 : f32
    %864 = vector.broadcast %cst_173 : f32 to vector<2x32xf32>
    %865 = arith.addf %864, %863 : vector<2x32xf32>
    %866 = arith.divf %864, %865 : vector<2x32xf32>
    %867 = vector.extract_strided_slice %860 {offsets = [0, 32], sizes = [2, 32], strides = [1, 1]} : vector<2x128xf32> to vector<2x32xf32>
    %868 = arith.negf %867 : vector<2x32xf32>
    %869 = math.exp %868 : vector<2x32xf32>
    %cst_174 = arith.constant 1.000000e+00 : f32
    %870 = vector.broadcast %cst_174 : f32 to vector<2x32xf32>
    %871 = arith.addf %870, %869 : vector<2x32xf32>
    %872 = arith.divf %870, %871 : vector<2x32xf32>
    %873 = vector.extract_strided_slice %860 {offsets = [0, 64], sizes = [2, 32], strides = [1, 1]} : vector<2x128xf32> to vector<2x32xf32>
    %874 = math.tanh %873 : vector<2x32xf32>
    %875 = vector.extract_strided_slice %860 {offsets = [0, 96], sizes = [2, 32], strides = [1, 1]} : vector<2x128xf32> to vector<2x32xf32>
    %876 = arith.negf %875 : vector<2x32xf32>
    %877 = math.exp %876 : vector<2x32xf32>
    %cst_175 = arith.constant 1.000000e+00 : f32
    %878 = vector.broadcast %cst_175 : f32 to vector<2x32xf32>
    %879 = arith.addf %878, %877 : vector<2x32xf32>
    %880 = arith.divf %878, %879 : vector<2x32xf32>
    %881 = arith.mulf %872, %818 : vector<2x32xf32>
    %882 = arith.mulf %866, %874 : vector<2x32xf32>
    %883 = arith.addf %881, %882 : vector<2x32xf32>
    %884 = math.tanh %883 : vector<2x32xf32>
    %885 = arith.mulf %880, %884 : vector<2x32xf32>
    %886 = tpu.concatenate %885, %850 in 1 : vector<2x32xf32>, vector<2x32xf32> -> vector<2x64xf32>
    %887 = arith.truncf %886 : vector<2x64xf32> to vector<2x64xbf16>
    %cst_176 = arith.constant dense<0.000000e+00> : vector<2x128xf32>
    %888 = tpu.matmul %887, %4, %cst_176 {dimension_numbers = #tpu.dot_dimension_numbers<[1], [0], [0], [1], [0, 0, 1, 1], [], []>} : vector<2x64xbf16>, vector<64x128xbf16>, vector<2x128xf32> -> vector<2x128xf32>
    %889 = vector.broadcast %5 : vector<1x128xf32> to vector<2x128xf32>
    %890 = arith.addf %888, %889 : vector<2x128xf32>
    %891 = vector.extract_strided_slice %890 {offsets = [0, 0], sizes = [2, 32], strides = [1, 1]} : vector<2x128xf32> to vector<2x32xf32>
    %892 = arith.negf %891 : vector<2x32xf32>
    %893 = math.exp %892 : vector<2x32xf32>
    %cst_177 = arith.constant 1.000000e+00 : f32
    %894 = vector.broadcast %cst_177 : f32 to vector<2x32xf32>
    %895 = arith.addf %894, %893 : vector<2x32xf32>
    %896 = arith.divf %894, %895 : vector<2x32xf32>
    %897 = vector.extract_strided_slice %890 {offsets = [0, 32], sizes = [2, 32], strides = [1, 1]} : vector<2x128xf32> to vector<2x32xf32>
    %898 = arith.negf %897 : vector<2x32xf32>
    %899 = math.exp %898 : vector<2x32xf32>
    %cst_178 = arith.constant 1.000000e+00 : f32
    %900 = vector.broadcast %cst_178 : f32 to vector<2x32xf32>
    %901 = arith.addf %900, %899 : vector<2x32xf32>
    %902 = arith.divf %900, %901 : vector<2x32xf32>
    %903 = vector.extract_strided_slice %890 {offsets = [0, 64], sizes = [2, 32], strides = [1, 1]} : vector<2x128xf32> to vector<2x32xf32>
    %904 = math.tanh %903 : vector<2x32xf32>
    %905 = vector.extract_strided_slice %890 {offsets = [0, 96], sizes = [2, 32], strides = [1, 1]} : vector<2x128xf32> to vector<2x32xf32>
    %906 = arith.negf %905 : vector<2x32xf32>
    %907 = math.exp %906 : vector<2x32xf32>
    %cst_179 = arith.constant 1.000000e+00 : f32
    %908 = vector.broadcast %cst_179 : f32 to vector<2x32xf32>
    %909 = arith.addf %908, %907 : vector<2x32xf32>
    %910 = arith.divf %908, %909 : vector<2x32xf32>
    %911 = arith.mulf %902, %848 : vector<2x32xf32>
    %912 = arith.mulf %896, %904 : vector<2x32xf32>
    %913 = arith.addf %911, %912 : vector<2x32xf32>
    %914 = math.tanh %913 : vector<2x32xf32>
    %915 = arith.mulf %910, %914 : vector<2x32xf32>
    %916 = arith.index_cast %c13_i32 : i32 to index
    %c0_180 = arith.constant 0 : index
    %c0_181 = arith.constant 0 : index
    %917 = vector.load %arg5[%916, %c0_180, %c0_181] : memref<16x2x32xf32, #tpu.memory_space<vmem>>, vector<1x2x32xf32>
    %918 = vector.shape_cast %917 : vector<1x2x32xf32> to vector<2x32xf32>
    %919 = vector.shape_cast %915 : vector<2x32xf32> to vector<1x2x32xf32>
    tpu.vector_store %arg5[%916, %c0_180, %c0_181], %919 {strides = array<i32>} : memref<16x2x32xf32, #tpu.memory_space<vmem>>, vector<1x2x32xf32>,
    %c14_i32 = arith.constant 14 : i32
    %920 = arith.index_cast %c14_i32 : i32 to index
    %c0_182 = arith.constant 0 : index
    %c0_183 = arith.constant 0 : index
    %921 = vector.load %arg1[%920, %c0_182, %c0_183] : memref<16x2x128xf32, #tpu.memory_space<vmem>>, vector<1x2x128xf32>
    %922 = vector.shape_cast %921 : vector<1x2x128xf32> to vector<2x128xf32>
    %923 = arith.truncf %885 : vector<2x32xf32> to vector<2x32xbf16>
    %cst_184 = arith.constant dense<0.000000e+00> : vector<2x128xf32>
    %924 = tpu.matmul %923, %3, %cst_184 {dimension_numbers = #tpu.dot_dimension_numbers<[1], [0], [0], [1], [0, 0, 1, 1], [], []>} : vector<2x32xbf16>, vector<32x128xbf16>, vector<2x128xf32> -> vector<2x128xf32>
    %925 = arith.addf %922, %924 : vector<2x128xf32>
    %926 = vector.extract_strided_slice %925 {offsets = [0, 0], sizes = [2, 32], strides = [1, 1]} : vector<2x128xf32> to vector<2x32xf32>
    %927 = arith.negf %926 : vector<2x32xf32>
    %928 = math.exp %927 : vector<2x32xf32>
    %cst_185 = arith.constant 1.000000e+00 : f32
    %929 = vector.broadcast %cst_185 : f32 to vector<2x32xf32>
    %930 = arith.addf %929, %928 : vector<2x32xf32>
    %931 = arith.divf %929, %930 : vector<2x32xf32>
    %932 = vector.extract_strided_slice %925 {offsets = [0, 32], sizes = [2, 32], strides = [1, 1]} : vector<2x128xf32> to vector<2x32xf32>
    %933 = arith.negf %932 : vector<2x32xf32>
    %934 = math.exp %933 : vector<2x32xf32>
    %cst_186 = arith.constant 1.000000e+00 : f32
    %935 = vector.broadcast %cst_186 : f32 to vector<2x32xf32>
    %936 = arith.addf %935, %934 : vector<2x32xf32>
    %937 = arith.divf %935, %936 : vector<2x32xf32>
    %938 = vector.extract_strided_slice %925 {offsets = [0, 64], sizes = [2, 32], strides = [1, 1]} : vector<2x128xf32> to vector<2x32xf32>
    %939 = math.tanh %938 : vector<2x32xf32>
    %940 = vector.extract_strided_slice %925 {offsets = [0, 96], sizes = [2, 32], strides = [1, 1]} : vector<2x128xf32> to vector<2x32xf32>
    %941 = arith.negf %940 : vector<2x32xf32>
    %942 = math.exp %941 : vector<2x32xf32>
    %cst_187 = arith.constant 1.000000e+00 : f32
    %943 = vector.broadcast %cst_187 : f32 to vector<2x32xf32>
    %944 = arith.addf %943, %942 : vector<2x32xf32>
    %945 = arith.divf %943, %944 : vector<2x32xf32>
    %946 = arith.mulf %937, %883 : vector<2x32xf32>
    %947 = arith.mulf %931, %939 : vector<2x32xf32>
    %948 = arith.addf %946, %947 : vector<2x32xf32>
    %949 = math.tanh %948 : vector<2x32xf32>
    %950 = arith.mulf %945, %949 : vector<2x32xf32>
    %951 = tpu.concatenate %950, %915 in 1 : vector<2x32xf32>, vector<2x32xf32> -> vector<2x64xf32>
    %952 = arith.truncf %951 : vector<2x64xf32> to vector<2x64xbf16>
    %cst_188 = arith.constant dense<0.000000e+00> : vector<2x128xf32>
    %953 = tpu.matmul %952, %4, %cst_188 {dimension_numbers = #tpu.dot_dimension_numbers<[1], [0], [0], [1], [0, 0, 1, 1], [], []>} : vector<2x64xbf16>, vector<64x128xbf16>, vector<2x128xf32> -> vector<2x128xf32>
    %954 = vector.broadcast %5 : vector<1x128xf32> to vector<2x128xf32>
    %955 = arith.addf %953, %954 : vector<2x128xf32>
    %956 = vector.extract_strided_slice %955 {offsets = [0, 0], sizes = [2, 32], strides = [1, 1]} : vector<2x128xf32> to vector<2x32xf32>
    %957 = arith.negf %956 : vector<2x32xf32>
    %958 = math.exp %957 : vector<2x32xf32>
    %cst_189 = arith.constant 1.000000e+00 : f32
    %959 = vector.broadcast %cst_189 : f32 to vector<2x32xf32>
    %960 = arith.addf %959, %958 : vector<2x32xf32>
    %961 = arith.divf %959, %960 : vector<2x32xf32>
    %962 = vector.extract_strided_slice %955 {offsets = [0, 32], sizes = [2, 32], strides = [1, 1]} : vector<2x128xf32> to vector<2x32xf32>
    %963 = arith.negf %962 : vector<2x32xf32>
    %964 = math.exp %963 : vector<2x32xf32>
    %cst_190 = arith.constant 1.000000e+00 : f32
    %965 = vector.broadcast %cst_190 : f32 to vector<2x32xf32>
    %966 = arith.addf %965, %964 : vector<2x32xf32>
    %967 = arith.divf %965, %966 : vector<2x32xf32>
    %968 = vector.extract_strided_slice %955 {offsets = [0, 64], sizes = [2, 32], strides = [1, 1]} : vector<2x128xf32> to vector<2x32xf32>
    %969 = math.tanh %968 : vector<2x32xf32>
    %970 = vector.extract_strided_slice %955 {offsets = [0, 96], sizes = [2, 32], strides = [1, 1]} : vector<2x128xf32> to vector<2x32xf32>
    %971 = arith.negf %970 : vector<2x32xf32>
    %972 = math.exp %971 : vector<2x32xf32>
    %cst_191 = arith.constant 1.000000e+00 : f32
    %973 = vector.broadcast %cst_191 : f32 to vector<2x32xf32>
    %974 = arith.addf %973, %972 : vector<2x32xf32>
    %975 = arith.divf %973, %974 : vector<2x32xf32>
    %976 = arith.mulf %967, %913 : vector<2x32xf32>
    %977 = arith.mulf %961, %969 : vector<2x32xf32>
    %978 = arith.addf %976, %977 : vector<2x32xf32>
    %979 = math.tanh %978 : vector<2x32xf32>
    %980 = arith.mulf %975, %979 : vector<2x32xf32>
    %981 = arith.index_cast %c14_i32 : i32 to index
    %c0_192 = arith.constant 0 : index
    %c0_193 = arith.constant 0 : index
    %982 = vector.load %arg5[%981, %c0_192, %c0_193] : memref<16x2x32xf32, #tpu.memory_space<vmem>>, vector<1x2x32xf32>
    %983 = vector.shape_cast %982 : vector<1x2x32xf32> to vector<2x32xf32>
    %984 = vector.shape_cast %980 : vector<2x32xf32> to vector<1x2x32xf32>
    tpu.vector_store %arg5[%981, %c0_192, %c0_193], %984 {strides = array<i32>} : memref<16x2x32xf32, #tpu.memory_space<vmem>>, vector<1x2x32xf32>,
    %c15_i32 = arith.constant 15 : i32
    %985 = arith.index_cast %c15_i32 : i32 to index
    %c0_194 = arith.constant 0 : index
    %c0_195 = arith.constant 0 : index
    %986 = vector.load %arg1[%985, %c0_194, %c0_195] : memref<16x2x128xf32, #tpu.memory_space<vmem>>, vector<1x2x128xf32>
    %987 = vector.shape_cast %986 : vector<1x2x128xf32> to vector<2x128xf32>
    %988 = arith.truncf %950 : vector<2x32xf32> to vector<2x32xbf16>
    %cst_196 = arith.constant dense<0.000000e+00> : vector<2x128xf32>
    %989 = tpu.matmul %988, %3, %cst_196 {dimension_numbers = #tpu.dot_dimension_numbers<[1], [0], [0], [1], [0, 0, 1, 1], [], []>} : vector<2x32xbf16>, vector<32x128xbf16>, vector<2x128xf32> -> vector<2x128xf32>
    %990 = arith.addf %987, %989 : vector<2x128xf32>
    %991 = vector.extract_strided_slice %990 {offsets = [0, 0], sizes = [2, 32], strides = [1, 1]} : vector<2x128xf32> to vector<2x32xf32>
    %992 = arith.negf %991 : vector<2x32xf32>
    %993 = math.exp %992 : vector<2x32xf32>
    %cst_197 = arith.constant 1.000000e+00 : f32
    %994 = vector.broadcast %cst_197 : f32 to vector<2x32xf32>
    %995 = arith.addf %994, %993 : vector<2x32xf32>
    %996 = arith.divf %994, %995 : vector<2x32xf32>
    %997 = vector.extract_strided_slice %990 {offsets = [0, 32], sizes = [2, 32], strides = [1, 1]} : vector<2x128xf32> to vector<2x32xf32>
    %998 = arith.negf %997 : vector<2x32xf32>
    %999 = math.exp %998 : vector<2x32xf32>
    %cst_198 = arith.constant 1.000000e+00 : f32
    %1000 = vector.broadcast %cst_198 : f32 to vector<2x32xf32>
    %1001 = arith.addf %1000, %999 : vector<2x32xf32>
    %1002 = arith.divf %1000, %1001 : vector<2x32xf32>
    %1003 = vector.extract_strided_slice %990 {offsets = [0, 64], sizes = [2, 32], strides = [1, 1]} : vector<2x128xf32> to vector<2x32xf32>
    %1004 = math.tanh %1003 : vector<2x32xf32>
    %1005 = vector.extract_strided_slice %990 {offsets = [0, 96], sizes = [2, 32], strides = [1, 1]} : vector<2x128xf32> to vector<2x32xf32>
    %1006 = arith.negf %1005 : vector<2x32xf32>
    %1007 = math.exp %1006 : vector<2x32xf32>
    %cst_199 = arith.constant 1.000000e+00 : f32
    %1008 = vector.broadcast %cst_199 : f32 to vector<2x32xf32>
    %1009 = arith.addf %1008, %1007 : vector<2x32xf32>
    %1010 = arith.divf %1008, %1009 : vector<2x32xf32>
    %1011 = arith.mulf %1002, %948 : vector<2x32xf32>
    %1012 = arith.mulf %996, %1004 : vector<2x32xf32>
    %1013 = arith.addf %1011, %1012 : vector<2x32xf32>
    %1014 = math.tanh %1013 : vector<2x32xf32>
    %1015 = arith.mulf %1010, %1014 : vector<2x32xf32>
    %1016 = tpu.concatenate %1015, %980 in 1 : vector<2x32xf32>, vector<2x32xf32> -> vector<2x64xf32>
    %1017 = arith.truncf %1016 : vector<2x64xf32> to vector<2x64xbf16>
    %cst_200 = arith.constant dense<0.000000e+00> : vector<2x128xf32>
    %1018 = tpu.matmul %1017, %4, %cst_200 {dimension_numbers = #tpu.dot_dimension_numbers<[1], [0], [0], [1], [0, 0, 1, 1], [], []>} : vector<2x64xbf16>, vector<64x128xbf16>, vector<2x128xf32> -> vector<2x128xf32>
    %1019 = vector.broadcast %5 : vector<1x128xf32> to vector<2x128xf32>
    %1020 = arith.addf %1018, %1019 : vector<2x128xf32>
    %1021 = vector.extract_strided_slice %1020 {offsets = [0, 0], sizes = [2, 32], strides = [1, 1]} : vector<2x128xf32> to vector<2x32xf32>
    %1022 = arith.negf %1021 : vector<2x32xf32>
    %1023 = math.exp %1022 : vector<2x32xf32>
    %cst_201 = arith.constant 1.000000e+00 : f32
    %1024 = vector.broadcast %cst_201 : f32 to vector<2x32xf32>
    %1025 = arith.addf %1024, %1023 : vector<2x32xf32>
    %1026 = arith.divf %1024, %1025 : vector<2x32xf32>
    %1027 = vector.extract_strided_slice %1020 {offsets = [0, 32], sizes = [2, 32], strides = [1, 1]} : vector<2x128xf32> to vector<2x32xf32>
    %1028 = arith.negf %1027 : vector<2x32xf32>
    %1029 = math.exp %1028 : vector<2x32xf32>
    %cst_202 = arith.constant 1.000000e+00 : f32
    %1030 = vector.broadcast %cst_202 : f32 to vector<2x32xf32>
    %1031 = arith.addf %1030, %1029 : vector<2x32xf32>
    %1032 = arith.divf %1030, %1031 : vector<2x32xf32>
    %1033 = vector.extract_strided_slice %1020 {offsets = [0, 64], sizes = [2, 32], strides = [1, 1]} : vector<2x128xf32> to vector<2x32xf32>
    %1034 = math.tanh %1033 : vector<2x32xf32>
    %1035 = vector.extract_strided_slice %1020 {offsets = [0, 96], sizes = [2, 32], strides = [1, 1]} : vector<2x128xf32> to vector<2x32xf32>
    %1036 = arith.negf %1035 : vector<2x32xf32>
    %1037 = math.exp %1036 : vector<2x32xf32>
    %cst_203 = arith.constant 1.000000e+00 : f32
    %1038 = vector.broadcast %cst_203 : f32 to vector<2x32xf32>
    %1039 = arith.addf %1038, %1037 : vector<2x32xf32>
    %1040 = arith.divf %1038, %1039 : vector<2x32xf32>
    %1041 = arith.mulf %1032, %978 : vector<2x32xf32>
    %1042 = arith.mulf %1026, %1034 : vector<2x32xf32>
    %1043 = arith.addf %1041, %1042 : vector<2x32xf32>
    %1044 = math.tanh %1043 : vector<2x32xf32>
    %1045 = arith.mulf %1040, %1044 : vector<2x32xf32>
    %1046 = arith.index_cast %c15_i32 : i32 to index
    %c0_204 = arith.constant 0 : index
    %c0_205 = arith.constant 0 : index
    %1047 = vector.load %arg5[%1046, %c0_204, %c0_205] : memref<16x2x32xf32, #tpu.memory_space<vmem>>, vector<1x2x32xf32>
    %1048 = vector.shape_cast %1047 : vector<1x2x32xf32> to vector<2x32xf32>
    %1049 = vector.shape_cast %1045 : vector<2x32xf32> to vector<1x2x32xf32>
    tpu.vector_store %arg5[%1046, %c0_204, %c0_205], %1049 {strides = array<i32>} : memref<16x2x32xf32, #tpu.memory_space<vmem>>, vector<1x2x32xf32>,
    %c16_i32 = arith.constant 16 : i32
    %c0_206 = arith.constant 0 : index
    %c0_207 = arith.constant 0 : index
    %1050 = vector.load %arg6[%c0_206, %c0_207] : memref<2x32xf32, #tpu.memory_space<vmem>>, vector<2x32xf32>
    tpu.vector_store %arg6[%c0_206, %c0_207], %1015 {strides = array<i32>} : memref<2x32xf32, #tpu.memory_space<vmem>>, vector<2x32xf32>,
    %c0_208 = arith.constant 0 : index
    %c0_209 = arith.constant 0 : index
    %1051 = vector.load %arg7[%c0_208, %c0_209] : memref<2x32xf32, #tpu.memory_space<vmem>>, vector<2x32xf32>
    tpu.vector_store %arg7[%c0_208, %c0_209], %1013 {strides = array<i32>} : memref<2x32xf32, #tpu.memory_space<vmem>>, vector<2x32xf32>,
    %c0_210 = arith.constant 0 : index
    %c0_211 = arith.constant 0 : index
    %1052 = vector.load %arg8[%c0_210, %c0_211] : memref<2x32xf32, #tpu.memory_space<vmem>>, vector<2x32xf32>
    tpu.vector_store %arg8[%c0_210, %c0_211], %1045 {strides = array<i32>} : memref<2x32xf32, #tpu.memory_space<vmem>>, vector<2x32xf32>,
    %c0_212 = arith.constant 0 : index
    %c0_213 = arith.constant 0 : index
    %1053 = vector.load %arg9[%c0_212, %c0_213] : memref<2x32xf32, #tpu.memory_space<vmem>>, vector<2x32xf32>
    tpu.vector_store %arg9[%c0_212, %c0_213], %1043 {strides = array<i32>} : memref<2x32xf32, #tpu.memory_space<vmem>>, vector<2x32xf32>,
    return
  }
  func.func @transform_0(%arg0: i32) -> (i32, i32, i32) {
    %c0_i32 = arith.constant 0 : i32
    %c0_i32_0 = arith.constant 0 : i32
    %c0_i32_1 = arith.constant 0 : i32
    return %arg0, %c0_i32, %c0_i32_0 : i32, i32, i32
  }
  func.func @transform_1(%arg0: i32) -> (i32, i32) {
    %c0_i32 = arith.constant 0 : i32
    %c0_i32_0 = arith.constant 0 : i32
    %c0_i32_1 = arith.constant 0 : i32
    return %c0_i32, %c0_i32_0 : i32, i32
  }
  func.func @transform_2(%arg0: i32) -> (i32, i32) {
    %c0_i32 = arith.constant 0 : i32
    %c0_i32_0 = arith.constant 0 : i32
    %c0_i32_1 = arith.constant 0 : i32
    return %c0_i32, %c0_i32_0 : i32, i32
  }
  func.func @transform_3(%arg0: i32) -> (i32, i32) {
    %c0_i32 = arith.constant 0 : i32
    %c0_i32_0 = arith.constant 0 : i32
    %c0_i32_1 = arith.constant 0 : i32
    return %c0_i32, %c0_i32_0 : i32, i32
  }
  func.func @transform_4(%arg0: i32) -> (i32, i32, i32) {
    %c0_i32 = arith.constant 0 : i32
    %c0_i32_0 = arith.constant 0 : i32
    %c0_i32_1 = arith.constant 0 : i32
    return %arg0, %c0_i32, %c0_i32_0 : i32, i32, i32
  }
}

</mosaic_0001>

<bundles_post_ra>
// kernel: separation_block.1
= control target key start
LH: loop header
LB: loop body
LE: loop exit
PB: predicated region body
PF: predicated region fallthrough
CT: control target
= control target key end

     0   :  { %s3736_s15 = smov 0   ;;  %s4546_s0 = inlined_call_operand.vmem [shape: f32[48,2,128], index: 0, kind: input, shape index: {}]   ;;  %s4547_s1 = inlined_call_operand.vmem [shape: bf16[32,128], index: 1, kind: input, shape index: {}]   ;;  %s4548_s2 = inlined_call_operand.vmem [shape: bf16[64,128], index: 2, kind: input, shape index: {}]   ;;  %s4549_s3 = inlined_call_operand.vmem [shape: f32[1,128], index: 3, kind: input, shape index: {}]   ;;  %s4550_s4 = inlined_call_operand.vmem [shape: f32[48,2,32], index: 4, kind: output, shape index: {}]  }
   0x1 LB: > { %s2841_s16 = sadd.s32 4294967295, %s3703_s15   ;;  %p2845_p0 = scmp.ge.s32.totalorder %s3703_s15, 1  ;;  %s3703_s15 = sphi %s3736_s15, %s14_s15  }
   0x2   : > { %p163_p1 = scmp.lt.s32.totalorder %s3703_s15, 4 }
   0x4   : > { %p164_p2 = pnand %p2845_p0, %p163_p1 }
   0x5   : > { %s2846_s17 = sshll.u32 (!%p164_p2), %s2841_s16, 4  ;;  %p2850_p4 = scmp.ne.s32.totalorder (!%p164_p2), %s2841_s16, 0 }
   0x6   : > { %167 = sbr.rel (%p164_p2) target bundleno = 11808 (0x2e20), region = 36  ;;  %p190_p3 = scmp.lt.s32.totalorder (!%p164_p2), %s2846_s17, 47 }
   0xb   : > { %s4552_s17 = smov (!%p190_p3, %s2846_s17), 47  ;;  %205 = sbr.rel (%p2850_p4) target bundleno = 19 (0x13), region = 40 }
   0xc   : > { %s2847_s18 = sshll.u32 %s4552_s17, 1 }
   0xd   : > { %s3747_s21 = scalar_lea.vmem %s4546_s0, %s2847_s18  ;;  %s3752_s24 = scalar_lea.vmem %s4550_s4, %s2847_s18 }
  0x10   : > { %vm206_vm0 = vcmask 254976   ;;  %v3705_v0 = vmov 0.0  }
  0x11   : > { %207 = vst.msk [vmem:[#allocation2] sm:$0x3] %vm206_vm0, %v3705_v0  ;;  %208 = vst.msk [vmem:[#allocation3] sm:$0x3] %vm206_vm0, %v3705_v0 }
  0x12   : > { %209 = vst.msk [vmem:[#allocation4] sm:$0x3] %vm206_vm0, %v3705_v0  ;;  %210 = vst.msk [vmem:[#allocation5] sm:$0x3] %vm206_vm0, %v3705_v0 }
  0x13 PF: > { %v3757_v1 = vld [vmem:[%s4547_s1 + $0x8] sm:$0xff]   ;;  %v3706_v2 = vmov 0.0   ;;  %v3765_v3 = vld [vmem:[%s4547_s1] sm:$0xff]   ;;  %vm3707_vm1 = vmmov 0   ;;  %vm242_vm2 = vcmask 261120   ;;  %s3708_s29 = smov 64  }
  0x14   : > { %3082 = vmatprep.subr.bf16.mxu1 %v3706_v2  ;;  %3102 = vmatprep.subr.bf16.mxu0 %v3706_v2  ;;  %v228_v6 = vld [vmem:[%s3747_s21] sm:$0x3]  ;;  %s3709_s30 = smov 32   ;;  %v3791_v24 = vld [vmem:[%s4548_s2 + $0x18] sm:$0xff]   ;;  %v3797_v25 = vld [vmem:[%s4548_s2 + $0x10] sm:$0xff]   ;;  %vm355_vm3 = vcmask 523264  }
  0x15   : > { %3083 = vmatpush3.bf16.msra.mxu1 %v3757_v1  ;;  %3086 = vmatprep.mubr.msk.bf16.mxu1 %vm3707_vm1, %v3706_v2  ;;  %v3804_v26 = vld [vmem:[%s4548_s2 + $0x8] sm:$0xff]   ;;  %v3813_v28 = vld [vmem:[%s4548_s2] sm:$0xff]   ;;  %vm431_vm4 = vcmask 254976  }
  0x16   : > { %3084 = vmatprep.subr.bf16.mxu1 %v3706_v2  ;;  %3103 = vmatpush3.bf16.msra.mxu0 %v3757_v1  ;;  %v2862_v40 = vld [vmem:[%s3747_s21 + $0x2] sm:$0x3]  ;;  %v3842_v44 = vld [vmem:[%s4549_s3] ss:$0 sm:$0xff] }
  0x17   : > { %3104 = vmatprep.subr.bf16.mxu0 %v3706_v2  ;;  %3106 = vmatprep.mubr.msk.bf16.mxu0 %vm3707_vm1, %v3706_v2 }
  0x18   : > { %v224_v4 = vld [vmem:[#allocation2] sm:$0x3]  ;;  %v225_v13 = vld [vmem:[#allocation3] sm:$0x3] }
  0x19   : > { %v229_v5 = vpack.c.bf16 %v224_v4, %v224_v4  ;;  %3085 = vmatpush3.bf16.msra.mxu1 %v3765_v3  ;;  %v226_v29 = vld [vmem:[#allocation4] sm:$0x3]  ;;  %v227_v54 = vld [vmem:[#allocation5] sm:$0x3] }
  0x1a   : > { %3090 = vmatprep.subr.bf16.mxu1 %v3706_v2  ;;  %3105 = vmatpush3.bf16.msra.mxu0 %v3765_v3 }
  0x1b   : > { %3110 = vmatprep.subr.bf16.mxu0 %v3706_v2 }
  0x1c   : > { %3087 = vmatmul.mubr.msk.bf16.vlgmr.msra.gmra.mxu1 %vm242_vm2, %v229_v5 }
  0x1d   : > { %3098 = vmatprep.mubr.msk.bf16.mxu1 %vm3707_vm1, %v3706_v2  ;;  %3091 = vmatpush3.bf16.msra.mxu1 %v3791_v24 }
  0x1e   : > { %3092 = vmatprep.subr.bf16.mxu1 %v3706_v2 }
  0x21   : > { %3093 = vmatpush3.bf16.msra.mxu1 %v3797_v25 }
  0x22   : > { %3094 = vmatprep.subr.bf16.mxu1 %v3706_v2 }
  0x25   : > { %3095 = vmatpush3.bf16.msra.mxu1 %v3804_v26 }
  0x26   : > { %3096 = vmatprep.subr.bf16.mxu1 %v3706_v2 }
  0x29   : > { %3097 = vmatpush3.bf16.msra.mxu1 %v3813_v28 }
  0x2a   : > { %3122 = vmatprep.subr.bf16.mxu1 %v3706_v2 }
  0xdc   : > { %v280_v7 = vpop.f32.mrf.mxu1 }
  0xdd   : > { %v286_v8 = vadd.f32 %v280_v7, %v228_v6 }
  0xde   : > { %v3088_v9 = vpop.f32.mrf.mxu1 }
  0xdf   : > { %3427 = vtanh.f32 %v286_v8  ;;  %v2854_v14 = vmul.f32 -1.442695, %v286_v8 }
  0xe0   : > { %v283_v10 = vpop.f32.mrf.mxu1 }
  0xe1   : > { %3429 = vpow2.f32 %v2854_v14 }
  0xe2   : > { %v3089_v11 = vpop.f32.mrf.mxu1 }
  0xec   : > { %v3428_v12 = vpop.eup %3427 }
  0xed   : > { %300 = vrot.lane.b32.xlu0 %v3428_v12, %s3708_s29 }
  0xee   : > { %v3430_v15 = vpop.eup %3429 }
  0xef   : > { %v290_v16 = vadd.f32 1.0, %v3430_v15 }
  0xf1   : > { %295 = vrot.lane.b32.xlu0 %v225_v13, %s3709_s30  ;;  %3431 = vrcp.f32 %v290_v16 }
  0xfe   : > { %v3432_v17 = vpop.eup %3431 }
 0x15f   : > { %v301_v18 = vpop.permute.xlu0 %300 }
 0x160   : > { %v303_v19 = vmul.f32 %v3432_v17, %v301_v18 }
 0x162   : > { %305 = vrot.lane.b32.xlu1 %v303_v19, %s3709_s30 }
 0x163   : > { %v296_v20 = vpop.permute.xlu0 %295 }
 0x164   : > { %v298_v21 = vmul.f32 %v3432_v17, %v296_v20 }
 0x1d4   : > { %v306_v22 = vpop.permute.xlu1 %305 }
 0x1d5   : > { %v3785_v23 = vadd.f32 %v306_v22, %v298_v21 }
 0x1d7   : > { %3433 = vtanh.f32 %v3785_v23 }
 0x1e4   : > { %v3434_v27 = vpop.eup %3433 }
 0x1e5   : > { %311 = vrot.lane.b32.xlu1 %v3434_v27, %s3708_s29 }
 0x257   : > { %v312_v30 = vpop.permute.xlu1 %311 }
 0x258   : > { %v314_v31 = vmul.f32 %v3432_v17, %v312_v30 }
 0x25a   : > { %v3416_v32 = vpack.i.bf16 %v226_v29, %v314_v31  ;;  %v435_v33 = vpack.c.bf16 %v314_v31, %v314_v31  ;;  %v2868_v29 = vld [vmem:[%s3747_s21 + $0x4] sm:$0x3] }
 0x25c   : > { %3417 = vrot.lane.b32.xlu0 %v3416_v32, %s3709_s30  ;;  %437 = vrot.lane.b32.xlu1 %v435_v33, %s3709_s30 }
 0x2ce   : > { %v3418_v34 = vpop.permute.xlu0 %3417  ;;  %v438_v35 = vpop.permute.xlu1 %437 }
 0x2cf   : > { %v3420_v36 = vunpack.i.h.bf16 %v3418_v34  ;;  %v3419_v37 = vunpack.i.l.bf16 %v3418_v34  ;;  %3107 = vmatmul.mubr.msk.bf16.vlgmr.msra.gmra.mxu0 %vm242_vm2, %v438_v35 }
 0x2d0   : > { %3111 = vmatpush3.bf16.msra.mxu0 %v3791_v24  ;;  %3118 = vmatprep.mubr.msk.bf16.mxu0 %vm3707_vm1, %v3706_v2 }
 0x2d1   : > { %v323_v38 = vsel %vm242_vm2, %v3419_v37, %v3420_v36  ;;  %3112 = vmatprep.subr.bf16.mxu0 %v3706_v2 }
 0x2d2   : > { %v324_v39 = vpack.c.bf16 %v323_v38, %v323_v38 }
 0x2d4   : > { %3099 = vmatmul.mubr.msk.bf16.vlgmr.msra.gmra.mxu1 %vm355_vm3, %v324_v39  ;;  %3113 = vmatpush3.bf16.msra.mxu0 %v3797_v25 }
 0x2d5   : > { %3123 = vmatpush3.bf16.msra.mxu1 %v3757_v1  ;;  %3114 = vmatprep.subr.bf16.mxu0 %v3706_v2 }
 0x2d6   : > { %3124 = vmatprep.subr.bf16.mxu1 %v3706_v2  ;;  %3126 = vmatprep.mubr.msk.bf16.mxu1 %vm3707_vm1, %v3706_v2 }
 0x2d8   : > { %3115 = vmatpush3.bf16.msra.mxu0 %v3804_v26 }
 0x2d9   : > { %3125 = vmatpush3.bf16.msra.mxu1 %v3765_v3  ;;  %3116 = vmatprep.subr.bf16.mxu0 %v3706_v2 }
 0x2da   : > { %3130 = vmatprep.subr.bf16.mxu1 %v3706_v2 }
 0x2dc   : > { %3117 = vmatpush3.bf16.msra.mxu0 %v3813_v28 }
 0x2dd   : > { %3142 = vmatprep.subr.bf16.mxu0 %v3706_v2 }
 0x38f   : > { %v476_v41 = vpop.f32.mrf.mxu0 }
 0x390   : > { %v482_v42 = vadd.f32 %v2862_v40, %v476_v41 }
 0x391   : > { %v3108_v43 = vpop.f32.mrf.mxu0 }
 0x392   : > { %3435 = vtanh.f32 %v482_v42  ;;  %v2864_v55 = vmul.f32 -1.442695, %v482_v42 }
 0x393   : > { %v479_v45 = vpop.f32.mrf.mxu0 }
 0x394   : > { %v393_v46 = vpop.f32.mrf.mxu1 }
 0x395   : > { %v394_v47 = vadd.f32 %v3842_v44, %v393_v46  ;;  %v3109_v48 = vpop.f32.mrf.mxu0 }
 0x396   : > { %v3100_v49 = vpop.f32.mrf.mxu1 }
 0x397   : > { %3437 = vtanh.f32 %v394_v47  ;;  %v2861_v56 = vmul.f32 -1.442695, %v394_v47 }
 0x398   : > { %v396_v50 = vpop.f32.mrf.mxu1  ;;  %3439 = vpow2.f32 %v2864_v55 }
 0x399   : > { %3441 = vpow2.f32 %v2861_v56 }
 0x39a   : > { %v3101_v51 = vpop.f32.mrf.mxu1 }
 0x39f   : > { %v3436_v52 = vpop.eup %3435 }
 0x3a0   : > { %492 = vrot.lane.b32.xlu1 %v3436_v52, %s3708_s29 }
 0x3a4   : > { %v3438_v53 = vpop.eup %3437 }
 0x3a5   : > { %412 = vrot.lane.b32.xlu0 %v3438_v53, %s3708_s29  ;;  %v3440_v57 = vpop.eup %3439 }
 0x3a6   : > { %v486_v58 = vadd.f32 1.0, %v3440_v57  ;;  %v3442_v59 = vpop.eup %3441 }
 0x3a7   : > { %v402_v60 = vadd.f32 1.0, %v3442_v59 }
 0x3a8   : > { %3443 = vrcp.f32 %v486_v58 }
 0x3a9   : > { %407 = vrot.lane.b32.xlu0 %v227_v54, %s3709_s30  ;;  %3445 = vrcp.f32 %v402_v60 }
 0x3b5   : > { %v3444_v61 = vpop.eup %3443 }
 0x3b6   : > { %v3446_v0 = vpop.eup %3445  ;;  %v490_v7 = vmul.f32 %v3444_v61, %v3785_v23 }
 0x412   : > { %v493_v62 = vpop.permute.xlu1 %492 }
 0x413   : > { %v495_v63 = vmul.f32 %v3444_v61, %v493_v62 }
 0x415   : > { %497 = vrot.lane.b32.xlu0 %v495_v63, %s3709_s30 }
 0x417   : > { %v413_v4 = vpop.permute.xlu0 %412 }
 0x418   : > { %v415_v5 = vmul.f32 %v3446_v0, %v413_v4 }
 0x41a   : > { %417 = vrot.lane.b32.xlu1 %v415_v5, %s3709_s30 }
 0x41b   : > { %v408_v6 = vpop.permute.xlu0 %407 }
 0x41c   : > { %v410_v10 = vmul.f32 %v3446_v0, %v408_v6 }
 0x487   : > { %v498_v8 = vpop.permute.xlu0 %497 }
 0x488   : > { %v3851_v9 = vadd.f32 %v498_v8, %v490_v7 }
 0x48a   : > { %3447 = vtanh.f32 %v3851_v9 }
 0x48c   : > { %v418_v11 = vpop.permute.xlu1 %417 }
 0x48d   : > { %v3854_v12 = vadd.f32 %v418_v11, %v410_v10 }
 0x48f   : > { %3449 = vtanh.f32 %v3854_v12 }
 0x497   : > { %v3448_v13 = vpop.eup %3447 }
 0x498   : > { %503 = vrot.lane.b32.xlu0 %v3448_v13, %s3708_s29 }
 0x49c   : > { %v3450_v14 = vpop.eup %3449 }
 0x49d   : > { %423 = vrot.lane.b32.xlu1 %v3450_v14, %s3708_s29 }
 0x50a   : > { %v504_v15 = vpop.permute.xlu0 %503 }
 0x50b   : > { %v506_v16 = vmul.f32 %v3444_v61, %v504_v15 }
 0x50d   : > { %508 = vrot.lane.b32.xlu1 %v506_v16, %s3709_s30  ;;  %v591_v17 = vpack.c.bf16 %v506_v16, %v506_v16 }
 0x50f   : > { %v424_v18 = vpop.permute.xlu1 %423 }
 0x510   : > { %v3860_v19 = vmul.f32 %v3446_v0, %v424_v18 }
 0x511   : > { %593 = vrot.lane.b32.xlu1 %v591_v17, %s3709_s30 }
 0x512   : > { %511 = vrot.lane.b32.xlu0 %v3860_v19, %s3708_s29 }
 0x57f   : > { %v509_v20 = vpop.permute.xlu1 %508 }
 0x583   : > { %v594_v21 = vpop.permute.xlu1 %593 }
 0x584   : > { %v512_v22 = vpop.permute.xlu0 %511  ;;  %3127 = vmatmul.mubr.msk.bf16.vlgmr.msra.gmra.mxu1 %vm242_vm2, %v594_v21 }
 0x585   : > { %v514_v23 = vsel %vm242_vm2, %v509_v20, %v512_v22  ;;  %3131 = vmatpush3.bf16.msra.mxu1 %v3791_v24  ;;  %3138 = vmatprep.mubr.msk.bf16.mxu1 %vm3707_vm1, %v3706_v2 }
 0x586   : > { %v515_v27 = vpack.c.bf16 %v514_v23, %v514_v23  ;;  %3132 = vmatprep.subr.bf16.mxu1 %v3706_v2 }
 0x588   : > { %3119 = vmatmul.mubr.msk.bf16.vlgmr.msra.gmra.mxu0 %vm355_vm3, %v515_v27 }
 0x589   : > { %3133 = vmatpush3.bf16.msra.mxu1 %v3797_v25  ;;  %3143 = vmatpush3.bf16.msra.mxu0 %v3757_v1 }
 0x58a   : > { %3134 = vmatprep.subr.bf16.mxu1 %v3706_v2  ;;  %3144 = vmatprep.subr.bf16.mxu0 %v3706_v2 }
 0x58b   : > { %3146 = vmatprep.mubr.msk.bf16.mxu0 %vm3707_vm1, %v3706_v2 }
 0x58d   : > { %3135 = vmatpush3.bf16.msra.mxu1 %v3804_v26  ;;  %3145 = vmatpush3.bf16.msra.mxu0 %v3765_v3 }
 0x58e   : > { %3136 = vmatprep.subr.bf16.mxu1 %v3706_v2  ;;  %3150 = vmatprep.subr.bf16.mxu0 %v3706_v2 }
 0x591   : > { %3137 = vmatpush3.bf16.msra.mxu1 %v3813_v28 }
 0x592   : > { %3162 = vmatprep.subr.bf16.mxu1 %v3706_v2 }
 0x644   : > { %v632_v30 = vpop.f32.mrf.mxu1 }
 0x645   : > { %v638_v31 = vadd.f32 %v2868_v29, %v632_v30 }
 0x646   : > { %v3128_v32 = vpop.f32.mrf.mxu1 }
 0x647   : > { %3451 = vtanh.f32 %v638_v31  ;;  %v2870_v42 = vmul.f32 -1.442695, %v638_v31 }
 0x648   : > { %v553_v33 = vpop.f32.mrf.mxu0  ;;  %v635_v34 = vpop.f32.mrf.mxu1 }
 0x649   : > { %v554_v35 = vadd.f32 %v3842_v44, %v553_v33 }
 0x64a   : > { %v3120_v36 = vpop.f32.mrf.mxu0  ;;  %v3129_v37 = vpop.f32.mrf.mxu1 }
 0x64b   : > { %3453 = vtanh.f32 %v554_v35  ;;  %v2866_v43 = vmul.f32 -1.442695, %v554_v35 }
 0x64c   : > { %v556_v38 = vpop.f32.mrf.mxu0  ;;  %3455 = vpow2.f32 %v2870_v42 }
 0x64d   : > { %3457 = vpow2.f32 %v2866_v43 }
 0x64e   : > { %v3121_v39 = vpop.f32.mrf.mxu0 }
 0x654   : > { %v3452_v40 = vpop.eup %3451 }
 0x655   : > { %648 = vrot.lane.b32.xlu1 %v3452_v40, %s3708_s29 }
 0x658   : > { %v3454_v41 = vpop.eup %3453 }
 0x659   : > { %568 = vrot.lane.b32.xlu0 %v3454_v41, %s3708_s29  ;;  %v3456_v45 = vpop.eup %3455 }
 0x65a   : > { %v642_v46 = vadd.f32 1.0, %v3456_v45  ;;  %v3458_v47 = vpop.eup %3457 }
 0x65b   : > { %v562_v48 = vadd.f32 1.0, %v3458_v47 }
 0x65c   : > { %3459 = vrcp.f32 %v642_v46 }
 0x65d   : > { %3461 = vrcp.f32 %v562_v48 }
 0x669   : > { %v3460_v49 = vpop.eup %3459 }
 0x66a   : > { %v3462_v52 = vpop.eup %3461  ;;  %v646_v55 = vmul.f32 %v3460_v49, %v3851_v9 }
 0x66b   : > { %v566_v58 = vmul.f32 %v3462_v52, %v3854_v12  ;;  %v2874_v12 = vld [vmem:[%s3747_s21 + $0x6] sm:$0x3] }
 0x6c7   : > { %v649_v50 = vpop.permute.xlu1 %648 }
 0x6c8   : > { %v651_v51 = vmul.f32 %v3460_v49, %v649_v50 }
 0x6ca   : > { %653 = vrot.lane.b32.xlu1 %v651_v51, %s3709_s30 }
 0x6cb   : > { %v569_v53 = vpop.permute.xlu0 %568 }
 0x6cc   : > { %v571_v54 = vmul.f32 %v3462_v52, %v569_v53 }
 0x6ce   : > { %573 = vrot.lane.b32.xlu0 %v571_v54, %s3709_s30 }
 0x73c   : > { %v654_v56 = vpop.permute.xlu1 %653 }
 0x73d   : > { %v3891_v57 = vadd.f32 %v654_v56, %v646_v55 }
 0x73f   : > { %3463 = vtanh.f32 %v3891_v57 }
 0x740   : > { %v574_v59 = vpop.permute.xlu0 %573 }
 0x741   : > { %v3895_v60 = vadd.f32 %v574_v59, %v566_v58 }
 0x743   : > { %3465 = vtanh.f32 %v3895_v60 }
 0x74c   : > { %v3464_v61 = vpop.eup %3463 }
 0x74d   : > { %659 = vrot.lane.b32.xlu1 %v3464_v61, %s3708_s29  ;;  %v2880_v61 = vld [vmem:[%s3747_s21 + $0x8] sm:$0x3] }
 0x750   : > { %v3466_v62 = vpop.eup %3465 }
 0x751   : > { %579 = vrot.lane.b32.xlu0 %v3466_v62, %s3708_s29 }
 0x7bf   : > { %v660_v63 = vpop.permute.xlu1 %659 }
 0x7c0   : > { %v662_v0 = vmul.f32 %v3460_v49, %v660_v63 }
 0x7c2   : > { %664 = vrot.lane.b32.xlu0 %v662_v0, %s3709_s30  ;;  %v747_v5 = vpack.c.bf16 %v662_v0, %v662_v0 }
 0x7c3   : > { %v580_v4 = vpop.permute.xlu0 %579 }
 0x7c4   : > { %v3901_v6 = vmul.f32 %v3462_v52, %v580_v4 }
 0x7c6   : > { %667 = vrot.lane.b32.xlu1 %v3901_v6, %s3708_s29  ;;  %749 = vrot.lane.b32.xlu0 %v747_v5, %s3709_s30 }
 0x834   : > { %v665_v7 = vpop.permute.xlu0 %664 }
 0x838   : > { %v750_v8 = vpop.permute.xlu0 %749  ;;  %v668_v9 = vpop.permute.xlu1 %667 }
 0x839   : > { %v670_v10 = vsel %vm242_vm2, %v665_v7, %v668_v9  ;;  %3147 = vmatmul.mubr.msk.bf16.vlgmr.msra.gmra.mxu0 %vm242_vm2, %v750_v8 }
 0x83a   : > { %v671_v11 = vpack.c.bf16 %v670_v10, %v670_v10  ;;  %3151 = vmatpush3.bf16.msra.mxu0 %v3791_v24  ;;  %3158 = vmatprep.mubr.msk.bf16.mxu0 %vm3707_vm1, %v3706_v2 }
 0x83b   : > { %3152 = vmatprep.subr.bf16.mxu0 %v3706_v2 }
 0x83c   : > { %3139 = vmatmul.mubr.msk.bf16.vlgmr.msra.gmra.mxu1 %vm355_vm3, %v671_v11 }
 0x83d   : > { %3163 = vmatpush3.bf16.msra.mxu1 %v3757_v1  ;;  %3166 = vmatprep.mubr.msk.bf16.mxu1 %vm3707_vm1, %v3706_v2 }
 0x83e   : > { %3153 = vmatpush3.bf16.msra.mxu0 %v3797_v25  ;;  %3164 = vmatprep.subr.bf16.mxu1 %v3706_v2 }
 0x83f   : > { %3154 = vmatprep.subr.bf16.mxu0 %v3706_v2 }
 0x841   : > { %3165 = vmatpush3.bf16.msra.mxu1 %v3765_v3 }
 0x842   : > { %3155 = vmatpush3.bf16.msra.mxu0 %v3804_v26  ;;  %3170 = vmatprep.subr.bf16.mxu1 %v3706_v2 }
 0x843   : > { %3156 = vmatprep.subr.bf16.mxu0 %v3706_v2 }
 0x846   : > { %3157 = vmatpush3.bf16.msra.mxu0 %v3813_v28 }
 0x847   : > { %3182 = vmatprep.subr.bf16.mxu0 %v3706_v2 }
 0x8f9   : > { %v788_v13 = vpop.f32.mrf.mxu0 }
 0x8fa   : > { %v794_v14 = vadd.f32 %v2874_v12, %v788_v13 }
 0x8fb   : > { %v3148_v15 = vpop.f32.mrf.mxu0 }
 0x8fc   : > { %3467 = vtanh.f32 %v794_v14  ;;  %v709_v16 = vpop.f32.mrf.mxu1  ;;  %v2876_v30 = vmul.f32 -1.442695, %v794_v14 }
 0x8fd   : > { %v710_v17 = vadd.f32 %v3842_v44, %v709_v16  ;;  %v791_v18 = vpop.f32.mrf.mxu0 }
 0x8fe   : > { %v3140_v20 = vpop.f32.mrf.mxu1 }
 0x8ff   : > { %3469 = vtanh.f32 %v710_v17  ;;  %v3149_v21 = vpop.f32.mrf.mxu0  ;;  %v2872_v31 = vmul.f32 -1.442695, %v710_v17 }
 0x900   : > { %v712_v22 = vpop.f32.mrf.mxu1  ;;  %3471 = vpow2.f32 %v2876_v30 }
 0x901   : > { %3473 = vpow2.f32 %v2872_v31 }
 0x902   : > { %v3141_v23 = vpop.f32.mrf.mxu1 }
 0x909   : > { %v3468_v27 = vpop.eup %3467 }
 0x90a   : > { %804 = vrot.lane.b32.xlu0 %v3468_v27, %s3708_s29 }
 0x90c   : > { %v3470_v29 = vpop.eup %3469 }
 0x90d   : > { %724 = vrot.lane.b32.xlu1 %v3470_v29, %s3708_s29  ;;  %v3472_v32 = vpop.eup %3471 }
 0x90e   : > { %v3474_v33 = vpop.eup %3473  ;;  %v798_v34 = vadd.f32 1.0, %v3472_v32 }
 0x90f   : > { %v718_v35 = vadd.f32 1.0, %v3474_v33 }
 0x910   : > { %3475 = vrcp.f32 %v798_v34 }
 0x911   : > { %3477 = vrcp.f32 %v718_v35 }
 0x91d   : > { %v3476_v36 = vpop.eup %3475 }
 0x91e   : > { %v3478_v39 = vpop.eup %3477  ;;  %v802_v42 = vmul.f32 %v3476_v36, %v3891_v57 }
 0x91f   : > { %v722_v46 = vmul.f32 %v3478_v39, %v3895_v60 }
 0x97c   : > { %v805_v37 = vpop.permute.xlu0 %804 }
 0x97d   : > { %v807_v38 = vmul.f32 %v3476_v36, %v805_v37 }
 0x97f   : > { %809 = vrot.lane.b32.xlu0 %v807_v38, %s3709_s30  ;;  %v725_v40 = vpop.permute.xlu1 %724 }
 0x980   : > { %v727_v41 = vmul.f32 %v3478_v39, %v725_v40 }
 0x982   : > { %729 = vrot.lane.b32.xlu1 %v727_v41, %s3709_s30 }
 0x9f1   : > { %v810_v43 = vpop.permute.xlu0 %809 }
 0x9f2   : > { %v3932_v45 = vadd.f32 %v810_v43, %v802_v42 }
 0x9f4   : > { %3479 = vtanh.f32 %v3932_v45  ;;  %v730_v47 = vpop.permute.xlu1 %729 }
 0x9f5   : > { %v3936_v48 = vadd.f32 %v730_v47, %v722_v46 }
 0x9f7   : > { %3481 = vtanh.f32 %v3936_v48 }
 0xa01   : > { %v3480_v49 = vpop.eup %3479 }
 0xa02   : > { %815 = vrot.lane.b32.xlu0 %v3480_v49, %s3708_s29 }
 0xa04   : > { %v3482_v50 = vpop.eup %3481 }
 0xa05   : > { %735 = vrot.lane.b32.xlu1 %v3482_v50, %s3708_s29  ;;  %v2886_v50 = vld [vmem:[%s3747_s21 + $0xa] sm:$0x3] }
 0xa74   : > { %v816_v51 = vpop.permute.xlu0 %815 }
 0xa75   : > { %v818_v52 = vmul.f32 %v3476_v36, %v816_v51 }
 0xa77   : > { %820 = vrot.lane.b32.xlu1 %v818_v52, %s3709_s30  ;;  %v736_v53 = vpop.permute.xlu1 %735  ;;  %v903_v55 = vpack.c.bf16 %v818_v52, %v818_v52 }
 0xa78   : > { %v3942_v54 = vmul.f32 %v3478_v39, %v736_v53 }
 0xa7a   : > { %823 = vrot.lane.b32.xlu0 %v3942_v54, %s3708_s29 }
 0xa7b   : > { %905 = vrot.lane.b32.xlu1 %v903_v55, %s3709_s30 }
 0xae9   : > { %v821_v56 = vpop.permute.xlu1 %820 }
 0xaec   : > { %v824_v57 = vpop.permute.xlu0 %823 }
 0xaed   : > { %v826_v58 = vsel %vm242_vm2, %v821_v56, %v824_v57  ;;  %v906_v59 = vpop.permute.xlu1 %905 }
 0xaee   : > { %v827_v60 = vpack.c.bf16 %v826_v58, %v826_v58  ;;  %3167 = vmatmul.mubr.msk.bf16.vlgmr.msra.gmra.mxu1 %vm242_vm2, %v906_v59 }
 0xaef   : > { %3171 = vmatpush3.bf16.msra.mxu1 %v3791_v24  ;;  %3178 = vmatprep.mubr.msk.bf16.mxu1 %vm3707_vm1, %v3706_v2 }
 0xaf0   : > { %3159 = vmatmul.mubr.msk.bf16.vlgmr.msra.gmra.mxu0 %vm355_vm3, %v827_v60  ;;  %3172 = vmatprep.subr.bf16.mxu1 %v3706_v2 }
 0xaf1   : > { %3183 = vmatpush3.bf16.msra.mxu0 %v3757_v1  ;;  %3186 = vmatprep.mubr.msk.bf16.mxu0 %vm3707_vm1, %v3706_v2 }
 0xaf2   : > { %3184 = vmatprep.subr.bf16.mxu0 %v3706_v2 }
 0xaf3   : > { %3173 = vmatpush3.bf16.msra.mxu1 %v3797_v25 }
 0xaf4   : > { %3174 = vmatprep.subr.bf16.mxu1 %v3706_v2 }
 0xaf5   : > { %3185 = vmatpush3.bf16.msra.mxu0 %v3765_v3 }
 0xaf6   : > { %3190 = vmatprep.subr.bf16.mxu0 %v3706_v2 }
 0xaf7   : > { %3175 = vmatpush3.bf16.msra.mxu1 %v3804_v26 }
 0xaf8   : > { %3176 = vmatprep.subr.bf16.mxu1 %v3706_v2 }
 0xafb   : > { %3177 = vmatpush3.bf16.msra.mxu1 %v3813_v28 }
 0xafc   : > { %3202 = vmatprep.subr.bf16.mxu1 %v3706_v2 }
 0xbae   : > { %v944_v62 = vpop.f32.mrf.mxu1 }
 0xbaf   : > { %v950_v63 = vadd.f32 %v2880_v61, %v944_v62 }
 0xbb0   : > { %v865_v0 = vpop.f32.mrf.mxu0  ;;  %v3168_v4 = vpop.f32.mrf.mxu1 }
 0xbb1   : > { %3483 = vtanh.f32 %v950_v63  ;;  %v866_v5 = vadd.f32 %v3842_v44, %v865_v0  ;;  %v2882_v14 = vmul.f32 -1.442695, %v950_v63 }
 0xbb2   : > { %v3160_v7 = vpop.f32.mrf.mxu0  ;;  %v947_v8 = vpop.f32.mrf.mxu1 }
 0xbb3   : > { %3485 = vtanh.f32 %v866_v5  ;;  %v2878_v15 = vmul.f32 -1.442695, %v866_v5 }
 0xbb4   : > { %v868_v9 = vpop.f32.mrf.mxu0  ;;  %v3169_v10 = vpop.f32.mrf.mxu1  ;;  %3487 = vpow2.f32 %v2882_v14 }
 0xbb5   : > { %3489 = vpow2.f32 %v2878_v15 }
 0xbb6   : > { %v3161_v11 = vpop.f32.mrf.mxu0 }
 0xbbe   : > { %v3484_v12 = vpop.eup %3483 }
 0xbbf   : > { %960 = vrot.lane.b32.xlu1 %v3484_v12, %s3708_s29 }
 0xbc0   : > { %v3486_v13 = vpop.eup %3485 }
 0xbc1   : > { %880 = vrot.lane.b32.xlu0 %v3486_v13, %s3708_s29  ;;  %v3488_v16 = vpop.eup %3487 }
 0xbc2   : > { %v3490_v17 = vpop.eup %3489  ;;  %v954_v18 = vadd.f32 1.0, %v3488_v16 }
 0xbc3   : > { %v874_v20 = vadd.f32 1.0, %v3490_v17 }
 0xbc4   : > { %3491 = vrcp.f32 %v954_v18 }
 0xbc5   : > { %3493 = vrcp.f32 %v874_v20 }
 0xbd1   : > { %v3492_v21 = vpop.eup %3491 }
 0xbd2   : > { %v3494_v27 = vpop.eup %3493  ;;  %v958_v31 = vmul.f32 %v3492_v21, %v3932_v45 }
 0xbd3   : > { %v878_v34 = vmul.f32 %v3494_v27, %v3936_v48 }
 0xc31   : > { %v961_v22 = vpop.permute.xlu1 %960 }
 0xc32   : > { %v963_v23 = vmul.f32 %v3492_v21, %v961_v22 }
 0xc33   : > { %v881_v29 = vpop.permute.xlu0 %880 }
 0xc34   : > { %965 = vrot.lane.b32.xlu1 %v963_v23, %s3709_s30  ;;  %v883_v30 = vmul.f32 %v3494_v27, %v881_v29 }
 0xc36   : > { %885 = vrot.lane.b32.xlu0 %v883_v30, %s3709_s30 }
 0xca6   : > { %v966_v32 = vpop.permute.xlu1 %965 }
 0xca7   : > { %v3973_v33 = vadd.f32 %v966_v32, %v958_v31 }
 0xca8   : > { %v886_v35 = vpop.permute.xlu0 %885 }
 0xca9   : > { %3495 = vtanh.f32 %v3973_v33  ;;  %v3977_v36 = vadd.f32 %v886_v35, %v878_v34 }
 0xcab   : > { %3497 = vtanh.f32 %v3977_v36 }
 0xcb6   : > { %v3496_v37 = vpop.eup %3495 }
 0xcb7   : > { %971 = vrot.lane.b32.xlu1 %v3496_v37, %s3708_s29 }
 0xcb8   : > { %v3498_v38 = vpop.eup %3497 }
 0xcb9   : > { %891 = vrot.lane.b32.xlu0 %v3498_v38, %s3708_s29 }
 0xd29   : > { %v972_v39 = vpop.permute.xlu1 %971 }
 0xd2a   : > { %v974_v40 = vmul.f32 %v3492_v21, %v972_v39 }
 0xd2b   : > { %v892_v41 = vpop.permute.xlu0 %891 }
 0xd2c   : > { %976 = vrot.lane.b32.xlu0 %v974_v40, %s3709_s30  ;;  %v3983_v42 = vmul.f32 %v3494_v27, %v892_v41  ;;  %v1059_v43 = vpack.c.bf16 %v974_v40, %v974_v40 }
 0xd2e   : > { %979 = vrot.lane.b32.xlu1 %v3983_v42, %s3708_s29 }
 0xd30   : > { %1061 = vrot.lane.b32.xlu0 %v1059_v43, %s3709_s30 }
 0xd9e   : > { %v977_v45 = vpop.permute.xlu0 %976 }
 0xda0   : > { %v980_v46 = vpop.permute.xlu1 %979 }
 0xda1   : > { %v982_v47 = vsel %vm242_vm2, %v977_v45, %v980_v46 }
 0xda2   : > { %v1062_v48 = vpop.permute.xlu0 %1061  ;;  %v983_v49 = vpack.c.bf16 %v982_v47, %v982_v47 }
 0xda3   : > { %3187 = vmatmul.mubr.msk.bf16.vlgmr.msra.gmra.mxu0 %vm242_vm2, %v1062_v48 }
 0xda4   : > { %3191 = vmatpush3.bf16.msra.mxu0 %v3791_v24  ;;  %3198 = vmatprep.mubr.msk.bf16.mxu0 %vm3707_vm1, %v3706_v2 }
 0xda5   : > { %3179 = vmatmul.mubr.msk.bf16.vlgmr.msra.gmra.mxu1 %vm355_vm3, %v983_v49  ;;  %3192 = vmatprep.subr.bf16.mxu0 %v3706_v2 }
 0xda6   : > { %3203 = vmatpush3.bf16.msra.mxu1 %v3757_v1  ;;  %3206 = vmatprep.mubr.msk.bf16.mxu1 %vm3707_vm1, %v3706_v2 }
 0xda7   : > { %3204 = vmatprep.subr.bf16.mxu1 %v3706_v2 }
 0xda8   : > { %3193 = vmatpush3.bf16.msra.mxu0 %v3797_v25 }
 0xda9   : > { %3194 = vmatprep.subr.bf16.mxu0 %v3706_v2 }
 0xdaa   : > { %3205 = vmatpush3.bf16.msra.mxu1 %v3765_v3 }
 0xdab   : > { %3210 = vmatprep.subr.bf16.mxu1 %v3706_v2 }
 0xdac   : > { %3195 = vmatpush3.bf16.msra.mxu0 %v3804_v26 }
 0xdad   : > { %3196 = vmatprep.subr.bf16.mxu0 %v3706_v2 }
 0xdb0   : > { %3197 = vmatpush3.bf16.msra.mxu0 %v3813_v28 }
 0xdb1   : > { %3222 = vmatprep.subr.bf16.mxu0 %v3706_v2 }
 0xe63   : > { %v1100_v51 = vpop.f32.mrf.mxu0 }
 0xe64   : > { %v1106_v52 = vadd.f32 %v2886_v50, %v1100_v51 }
 0xe65   : > { %v1021_v53 = vpop.f32.mrf.mxu1  ;;  %v3188_v55 = vpop.f32.mrf.mxu0 }
 0xe66   : > { %3499 = vtanh.f32 %v1106_v52  ;;  %v1022_v56 = vadd.f32 %v3842_v44, %v1021_v53  ;;  %v2888_v0 = vmul.f32 -1.442695, %v1106_v52 }
 0xe67   : > { %v3180_v57 = vpop.f32.mrf.mxu1  ;;  %v1103_v58 = vpop.f32.mrf.mxu0 }
 0xe68   : > { %3501 = vtanh.f32 %v1022_v56  ;;  %v2884_v4 = vmul.f32 -1.442695, %v1022_v56 }
 0xe69   : > { %v1024_v59 = vpop.f32.mrf.mxu1  ;;  %v3189_v60 = vpop.f32.mrf.mxu0  ;;  %3503 = vpow2.f32 %v2888_v0 }
 0xe6a   : > { %3505 = vpow2.f32 %v2884_v4 }
 0xe6b   : > { %v3181_v61 = vpop.f32.mrf.mxu1 }
 0xe73   : > { %v3500_v62 = vpop.eup %3499 }
 0xe74   : > { %1116 = vrot.lane.b32.xlu0 %v3500_v62, %s3708_s29 }
 0xe75   : > { %v3502_v63 = vpop.eup %3501 }
 0xe76   : > { %1036 = vrot.lane.b32.xlu1 %v3502_v63, %s3708_s29  ;;  %v3504_v5 = vpop.eup %3503 }
 0xe77   : > { %v3506_v7 = vpop.eup %3505  ;;  %v1110_v8 = vadd.f32 1.0, %v3504_v5 }
 0xe78   : > { %v1030_v9 = vadd.f32 1.0, %v3506_v7 }
 0xe79   : > { %3507 = vrcp.f32 %v1110_v8 }
 0xe7a   : > { %3509 = vrcp.f32 %v1030_v9 }
 0xe86   : > { %v3508_v10 = vpop.eup %3507 }
 0xe87   : > { %v3510_v13 = vpop.eup %3509  ;;  %v1114_v16 = vmul.f32 %v3508_v10, %v3973_v33 }
 0xe88   : > { %v1034_v20 = vmul.f32 %v3510_v13, %v3977_v36 }
 0xee6   : > { %v1117_v11 = vpop.permute.xlu0 %1116 }
 0xee7   : > { %v1119_v12 = vmul.f32 %v3508_v10, %v1117_v11 }
 0xee8   : > { %v1037_v14 = vpop.permute.xlu1 %1036 }
 0xee9   : > { %1121 = vrot.lane.b32.xlu0 %v1119_v12, %s3709_s30  ;;  %v1039_v15 = vmul.f32 %v3510_v13, %v1037_v14 }
 0xeeb   : > { %1041 = vrot.lane.b32.xlu1 %v1039_v15, %s3709_s30 }
 0xf5b   : > { %v1122_v17 = vpop.permute.xlu0 %1121 }
 0xf5c   : > { %v4014_v18 = vadd.f32 %v1122_v17, %v1114_v16 }
 0xf5d   : > { %v1042_v21 = vpop.permute.xlu1 %1041 }
 0xf5e   : > { %3511 = vtanh.f32 %v4014_v18  ;;  %v4018_v22 = vadd.f32 %v1042_v21, %v1034_v20 }
 0xf60   : > { %3513 = vtanh.f32 %v4018_v22 }
 0xf6b   : > { %v3512_v23 = vpop.eup %3511 }
 0xf6c   : > { %1127 = vrot.lane.b32.xlu0 %v3512_v23, %s3708_s29 }
 0xf6d   : > { %v3514_v27 = vpop.eup %3513 }
 0xf6e   : > { %1047 = vrot.lane.b32.xlu1 %v3514_v27, %s3708_s29  ;;  %v4078_v27 = vld [vmem:[%s4547_s1 + $0x8] sm:$0xff]  }
 0xfde   : > { %v1128_v29 = vpop.permute.xlu0 %1127 }
 0xfdf   : > { %v1130_v30 = vmul.f32 %v3508_v10, %v1128_v29 }
 0xfe0   : > { %v1048_v31 = vpop.permute.xlu1 %1047 }
 0xfe1   : > { %1132 = vrot.lane.b32.xlu1 %v1130_v30, %s3709_s30  ;;  %v4024_v32 = vmul.f32 %v3510_v13, %v1048_v31  ;;  %v1215_v33 = vpack.c.bf16 %v1130_v30, %v1130_v30 }
 0xfe3   : > { %1135 = vrot.lane.b32.xlu0 %v4024_v32, %s3708_s29 }
 0xfe5   : > { %1217 = vrot.lane.b32.xlu1 %v1215_v33, %s3709_s30 }
0x1053   : > { %v1133_v34 = vpop.permute.xlu1 %1132 }
0x1055   : > { %v1136_v35 = vpop.permute.xlu0 %1135 }
0x1056   : > { %v1138_v36 = vsel %vm242_vm2, %v1133_v34, %v1136_v35 }
0x1057   : > { %v1218_v37 = vpop.permute.xlu1 %1217  ;;  %v1139_v38 = vpack.c.bf16 %v1138_v36, %v1138_v36 }
0x1058   : > { %3207 = vmatmul.mubr.msk.bf16.vlgmr.msra.gmra.mxu1 %vm242_vm2, %v1218_v37 }
0x1059   : > { %3211 = vmatpush3.bf16.msra.mxu1 %v3791_v24  ;;  %3218 = vmatprep.mubr.msk.bf16.mxu1 %vm3707_vm1, %v3706_v2 }
0x105a   : > { %3199 = vmatmul.mubr.msk.bf16.vlgmr.msra.gmra.mxu0 %vm355_vm3, %v1139_v38  ;;  %3212 = vmatprep.subr.bf16.mxu1 %v3706_v2 }
0x105b   : > { %3223 = vmatpush3.bf16.msra.mxu0 %v3757_v1  ;;  %3226 = vmatprep.mubr.msk.bf16.mxu0 %vm3707_vm1, %v3706_v2  ;;  %v2892_v1 = vld [vmem:[%s3747_s21 + $0xc] sm:$0x3] }
0x105c   : > { %3224 = vmatprep.subr.bf16.mxu0 %v3706_v2 }
0x105d   : > { %3213 = vmatpush3.bf16.msra.mxu1 %v3797_v25 }
0x105e   : > { %3214 = vmatprep.subr.bf16.mxu1 %v3706_v2 }
0x105f   : > { %3225 = vmatpush3.bf16.msra.mxu0 %v3765_v3 }
0x1060   : > { %3230 = vmatprep.subr.bf16.mxu0 %v3706_v2 }
0x1061   : > { %3215 = vmatpush3.bf16.msra.mxu1 %v3804_v26 }
0x1062   : > { %3216 = vmatprep.subr.bf16.mxu1 %v3706_v2 }
0x1065   : > { %3217 = vmatpush3.bf16.msra.mxu1 %v3813_v28 }
0x1066   : > { %3242 = vmatprep.subr.bf16.mxu1 %v3706_v2 }
0x1118   : > { %v1256_v39 = vpop.f32.mrf.mxu1 }
0x1119   : > { %v1262_v40 = vadd.f32 %v2892_v1, %v1256_v39 }
0x111a   : > { %v1177_v41 = vpop.f32.mrf.mxu0  ;;  %v3208_v43 = vpop.f32.mrf.mxu1 }
0x111b   : > { %v1178_v45 = vadd.f32 %v3842_v44, %v1177_v41  ;;  %3515 = vtanh.f32 %v1262_v40  ;;  %v2894_v52 = vmul.f32 -1.442695, %v1262_v40 }
0x111c   : > { %v3200_v46 = vpop.f32.mrf.mxu0  ;;  %v1259_v3 = vpop.f32.mrf.mxu1 }
0x111d   : > { %3517 = vtanh.f32 %v1178_v45  ;;  %v2890_v53 = vmul.f32 -1.442695, %v1178_v45 }
0x111e   : > { %v1180_v47 = vpop.f32.mrf.mxu0  ;;  %v3209_v48 = vpop.f32.mrf.mxu1  ;;  %3519 = vpow2.f32 %v2894_v52 }
0x111f   : > { %3521 = vpow2.f32 %v2890_v53 }
0x1120   : > { %v3201_v49 = vpop.f32.mrf.mxu0 }
0x1128   : > { %v3516_v50 = vpop.eup %3515 }
0x1129   : > { %1272 = vrot.lane.b32.xlu1 %v3516_v50, %s3708_s29 }
0x112a   : > { %v3518_v51 = vpop.eup %3517 }
0x112b   : > { %1192 = vrot.lane.b32.xlu0 %v3518_v51, %s3708_s29  ;;  %v3520_v55 = vpop.eup %3519 }
0x112c   : > { %v3522_v56 = vpop.eup %3521  ;;  %v1266_v57 = vadd.f32 1.0, %v3520_v55 }
0x112d   : > { %v1186_v58 = vadd.f32 1.0, %v3522_v56 }
0x112e   : > { %3523 = vrcp.f32 %v1266_v57 }
0x112f   : > { %3525 = vrcp.f32 %v1186_v58 }
0x113b   : > { %v3524_v59 = vpop.eup %3523 }
0x113c   : > { %v3526_v62 = vpop.eup %3525  ;;  %v1270_v4 = vmul.f32 %v3524_v59, %v4014_v18 }
0x113d   : > { %v1190_v7 = vmul.f32 %v3526_v62, %v4018_v22 }
0x119b   : > { %v1273_v60 = vpop.permute.xlu1 %1272 }
0x119c   : > { %v1275_v61 = vmul.f32 %v3524_v59, %v1273_v60 }
0x119d   : > { %v1193_v63 = vpop.permute.xlu0 %1192 }
0x119e   : > { %v1195_v0 = vmul.f32 %v3526_v62, %v1193_v63  ;;  %1277 = vrot.lane.b32.xlu1 %v1275_v61, %s3709_s30 }
0x11a0   : > { %1197 = vrot.lane.b32.xlu0 %v1195_v0, %s3709_s30 }
0x1210   : > { %v1278_v5 = vpop.permute.xlu1 %1277 }
0x1211   : > { %v4056_v8 = vadd.f32 %v1278_v5, %v1270_v4 }
0x1212   : > { %v1198_v9 = vpop.permute.xlu0 %1197 }
0x1213   : > { %v4058_v10 = vadd.f32 %v1198_v9, %v1190_v7  ;;  %3527 = vtanh.f32 %v4056_v8 }
0x1215   : > { %3529 = vtanh.f32 %v4058_v10 }
0x1220   : > { %v3528_v11 = vpop.eup %3527 }
0x1221   : > { %1283 = vrot.lane.b32.xlu1 %v3528_v11, %s3708_s29  ;;  %v4140_v11 = vld [vmem:[%s4548_s2 + $0x10] sm:$0xff]  }
0x1222   : > { %v3530_v12 = vpop.eup %3529 }
0x1223   : > { %1203 = vrot.lane.b32.xlu0 %v3530_v12, %s3708_s29  ;;  %v4149_v12 = vld [vmem:[%s4548_s2 + $0x8] sm:$0xff]  }
0x1293   : > { %v1284_v13 = vpop.permute.xlu1 %1283 }
0x1294   : > { %v1286_v14 = vmul.f32 %v3524_v59, %v1284_v13  ;;  %v4156_v13 = vld [vmem:[%s4548_s2] sm:$0xff]  }
0x1295   : > { %v1204_v15 = vpop.permute.xlu0 %1203 }
0x1296   : > { %v4064_v16 = vmul.f32 %v3526_v62, %v1204_v15  ;;  %1288 = vrot.lane.b32.xlu0 %v1286_v14, %s3709_s30  ;;  %v1371_v17 = vpack.c.bf16 %v1286_v14, %v1286_v14  ;;  %v2904_v14 = vld [vmem:[%s3747_s21 + $0x10] sm:$0x3] }
0x1298   : > { %1291 = vrot.lane.b32.xlu1 %v4064_v16, %s3708_s29 }
0x129a   : > { %1373 = vrot.lane.b32.xlu0 %v1371_v17, %s3709_s30 }
0x1308   : > { %v1289_v18 = vpop.permute.xlu0 %1288 }
0x130a   : > { %v1292_v20 = vpop.permute.xlu1 %1291 }
0x130b   : > { %v1294_v21 = vsel %vm242_vm2, %v1289_v18, %v1292_v20  ;;  %v4164_v18 = vld [vmem:[%s4549_s3] ss:$0 sm:$0xff] }
0x130c   : > { %v1295_v22 = vpack.c.bf16 %v1294_v21, %v1294_v21  ;;  %v1374_v23 = vpop.permute.xlu0 %1373 }
0x130d   : > { %3227 = vmatmul.mubr.msk.bf16.vlgmr.msra.gmra.mxu0 %vm242_vm2, %v1374_v23 }
0x130e   : > { %3219 = vmatmul.mubr.msk.bf16.vlgmr.msra.gmra.mxu1 %vm355_vm3, %v1295_v22  ;;  %3231 = vmatpush3.bf16.msra.mxu0 %v3791_v24  ;;  %v4091_v24 = vld [vmem:[%s4547_s1] sm:$0xff]  }
0x130f   : > { %3232 = vmatprep.subr.bf16.mxu0 %v3706_v2  ;;  %3243 = vmatpush3.bf16.msra.mxu1 %v4078_v27 }
0x1310   : > { %3244 = vmatprep.subr.bf16.mxu1 %v3706_v2  ;;  %3238 = vmatprep.mubr.msk.bf16.mxu0 %vm3707_vm1, %v3706_v2 }
0x1311   : > { %3246 = vmatprep.mubr.msk.bf16.mxu1 %vm3707_vm1, %v3706_v2 }
0x1312   : > { %3233 = vmatpush3.bf16.msra.mxu0 %v3797_v25  ;;  %v2898_v25 = vld [vmem:[%s3747_s21 + $0xe] sm:$0x3] }
0x1313   : > { %3234 = vmatprep.subr.bf16.mxu0 %v3706_v2  ;;  %3245 = vmatpush3.bf16.msra.mxu1 %v4091_v24 }
0x1314   : > { %3250 = vmatprep.subr.bf16.mxu1 %v3706_v2 }
0x1316   : > { %3235 = vmatpush3.bf16.msra.mxu0 %v3804_v26 }
0x1317   : > { %3236 = vmatprep.subr.bf16.mxu0 %v3706_v2 }
0x131a   : > { %3237 = vmatpush3.bf16.msra.mxu0 %v3813_v28 }
0x131b   : > { %3262 = vmatprep.subr.bf16.mxu0 %v3706_v2 }
0x13cd   : > { %v1412_v29 = vpop.f32.mrf.mxu0 }
0x13ce   : > { %v1333_v30 = vpop.f32.mrf.mxu1  ;;  %v1418_v31 = vadd.f32 %v2898_v25, %v1412_v29 }
0x13cf   : > { %v1334_v33 = vadd.f32 %v3842_v44, %v1333_v30  ;;  %v3228_v34 = vpop.f32.mrf.mxu0 }
0x13d0   : > { %3531 = vtanh.f32 %v1418_v31  ;;  %v3220_v35 = vpop.f32.mrf.mxu1  ;;  %v2900_v28 = vmul.f32 -1.442695, %v1418_v31 }
0x13d1   : > { %3533 = vtanh.f32 %v1334_v33  ;;  %v1415_v36 = vpop.f32.mrf.mxu0  ;;  %v2896_v40 = vmul.f32 -1.442695, %v1334_v33 }
0x13d2   : > { %v1336_v37 = vpop.f32.mrf.mxu1  ;;  %3535 = vpow2.f32 %v2900_v28 }
0x13d3   : > { %v3229_v38 = vpop.f32.mrf.mxu0  ;;  %3537 = vpow2.f32 %v2896_v40 }
0x13d4   : > { %v3221_v26 = vpop.f32.mrf.mxu1 }
0x13dd   : > { %v3532_v1 = vpop.eup %3531 }
0x13de   : > { %v3534_v39 = vpop.eup %3533  ;;  %1428 = vrot.lane.b32.xlu0 %v3532_v1, %s3708_s29 }
0x13df   : > { %1348 = vrot.lane.b32.xlu1 %v3534_v39, %s3708_s29  ;;  %v3536_v41 = vpop.eup %3535 }
0x13e0   : > { %v3538_v44 = vpop.eup %3537  ;;  %v1422_v43 = vadd.f32 1.0, %v3536_v41 }
0x13e1   : > { %v1342_v45 = vadd.f32 1.0, %v3538_v44 }
0x13e2   : > { %3539 = vrcp.f32 %v1422_v43 }
0x13e3   : > { %3541 = vrcp.f32 %v1342_v45 }
0x13ef   : > { %v3540_v46 = vpop.eup %3539 }
0x13f0   : > { %v3542_v47 = vpop.eup %3541  ;;  %v1426_v51 = vmul.f32 %v3540_v46, %v4056_v8 }
0x13f1   : > { %v1346_v52 = vmul.f32 %v3542_v47, %v4058_v10  ;;  %v4127_v10 = vld [vmem:[%s4548_s2 + $0x18] sm:$0xff]  }
0x1450   : > { %v1429_v3 = vpop.permute.xlu0 %1428 }
0x1451   : > { %v1349_v48 = vpop.permute.xlu1 %1348  ;;  %v1431_v49 = vmul.f32 %v3540_v46, %v1429_v3 }
0x1452   : > { %v1351_v50 = vmul.f32 %v3542_v47, %v1349_v48 }
0x1453   : > { %1433 = vrot.lane.b32.xlu0 %v1431_v49, %s3709_s30 }
0x1454   : > { %1353 = vrot.lane.b32.xlu1 %v1351_v50, %s3709_s30 }
0x14c5   : > { %v1434_v53 = vpop.permute.xlu0 %1433 }
0x14c6   : > { %v1354_v55 = vpop.permute.xlu1 %1353  ;;  %v4107_v56 = vadd.f32 %v1434_v53, %v1426_v51 }
0x14c7   : > { %v4109_v57 = vadd.f32 %v1354_v55, %v1346_v52 }
0x14c8   : > { %3543 = vtanh.f32 %v4107_v56 }
0x14c9   : > { %3545 = vtanh.f32 %v4109_v57 }
0x14d5   : > { %v3544_v58 = vpop.eup %3543 }
0x14d6   : > { %v3546_v59 = vpop.eup %3545  ;;  %1439 = vrot.lane.b32.xlu0 %v3544_v58, %s3708_s29 }
0x14d7   : > { %1359 = vrot.lane.b32.xlu1 %v3546_v59, %s3708_s29 }
0x1548   : > { %v1440_v60 = vpop.permute.xlu0 %1439 }
0x1549   : > { %v1360_v61 = vpop.permute.xlu1 %1359  ;;  %v1442_v62 = vmul.f32 %v3540_v46, %v1440_v60 }
0x154a   : > { %v4115_v63 = vmul.f32 %v3542_v47, %v1360_v61 }
0x154b   : > { %1444 = vrot.lane.b32.xlu1 %v1442_v62, %s3709_s30  ;;  %v1527_v0 = vpack.c.bf16 %v1442_v62, %v1442_v62 }
0x154c   : > { %1447 = vrot.lane.b32.xlu0 %v4115_v63, %s3708_s29 }
0x154f   : > { %1529 = vrot.lane.b32.xlu1 %v1527_v0, %s3709_s30  ;;  %v2910_v0 = vld [vmem:[%s3747_s21 + $0x12] sm:$0x3] }
0x15bd   : > { %v1445_v4 = vpop.permute.xlu1 %1444 }
0x15be   : > { %v1448_v5 = vpop.permute.xlu0 %1447 }
0x15bf   : > { %v1450_v7 = vsel %vm242_vm2, %v1445_v4, %v1448_v5 }
0x15c0   : > { %v1451_v8 = vpack.c.bf16 %v1450_v7, %v1450_v7 }
0x15c1   : > { %v1530_v9 = vpop.permute.xlu1 %1529 }
0x15c2   : > { %3239 = vmatmul.mubr.msk.bf16.vlgmr.msra.gmra.mxu0 %vm355_vm3, %v1451_v8  ;;  %3247 = vmatmul.mubr.msk.bf16.vlgmr.msra.gmra.mxu1 %vm242_vm2, %v1530_v9 }
0x15c3   : > { %3251 = vmatpush3.bf16.msra.mxu1 %v4127_v10  ;;  %3263 = vmatpush3.bf16.msra.mxu0 %v4078_v27 }
0x15c4   : > { %3252 = vmatprep.subr.bf16.mxu1 %v3706_v2  ;;  %3264 = vmatprep.subr.bf16.mxu0 %v3706_v2 }
0x15c5   : > { %3258 = vmatprep.mubr.msk.bf16.mxu1 %vm3707_vm1, %v3706_v2  ;;  %3266 = vmatprep.mubr.msk.bf16.mxu0 %vm3707_vm1, %v3706_v2 }
0x15c7   : > { %3253 = vmatpush3.bf16.msra.mxu1 %v4140_v11  ;;  %3265 = vmatpush3.bf16.msra.mxu0 %v4091_v24 }
0x15c8   : > { %3254 = vmatprep.subr.bf16.mxu1 %v3706_v2  ;;  %3270 = vmatprep.subr.bf16.mxu0 %v3706_v2 }
0x15cb   : > { %3255 = vmatpush3.bf16.msra.mxu1 %v4149_v12 }
0x15cc   : > { %3256 = vmatprep.subr.bf16.mxu1 %v3706_v2 }
0x15cf   : > { %3257 = vmatpush3.bf16.msra.mxu1 %v4156_v13 }
0x15d0   : > { %3282 = vmatprep.subr.bf16.mxu1 %v3706_v2 }
0x1682   : > { %v1489_v15 = vpop.f32.mrf.mxu0  ;;  %v1568_v17 = vpop.f32.mrf.mxu1 }
0x1683   : > { %v1490_v20 = vadd.f32 %v4164_v18, %v1489_v15  ;;  %v1574_v21 = vadd.f32 %v2904_v14, %v1568_v17 }
0x1684   : > { %v3240_v22 = vpop.f32.mrf.mxu0  ;;  %v3248_v23 = vpop.f32.mrf.mxu1 }
0x1685   : > { %3547 = vtanh.f32 %v1490_v20  ;;  %v2902_v35 = vmul.f32 -1.442695, %v1490_v20  ;;  %v2906_v36 = vmul.f32 -1.442695, %v1574_v21 }
0x1686   : > { %3549 = vtanh.f32 %v1574_v21  ;;  %v1492_v25 = vpop.f32.mrf.mxu0  ;;  %v1571_v29 = vpop.f32.mrf.mxu1 }
0x1687   : > { %3551 = vpow2.f32 %v2902_v35 }
0x1688   : > { %v3241_v30 = vpop.f32.mrf.mxu0  ;;  %v3249_v31 = vpop.f32.mrf.mxu1  ;;  %3553 = vpow2.f32 %v2906_v36 }
0x1692   : > { %v3548_v33 = vpop.eup %3547 }
0x1693   : > { %v3550_v34 = vpop.eup %3549  ;;  %1504 = vrot.lane.b32.xlu0 %v3548_v33, %s3708_s29 }
0x1694   : > { %1584 = vrot.lane.b32.xlu1 %v3550_v34, %s3708_s29  ;;  %v3552_v37 = vpop.eup %3551 }
0x1695   : > { %v3554_v38 = vpop.eup %3553  ;;  %v1498_v26 = vadd.f32 1.0, %v3552_v37 }
0x1696   : > { %v1578_v1 = vadd.f32 1.0, %v3554_v38 }
0x1697   : > { %3555 = vrcp.f32 %v1498_v26 }
0x1698   : > { %3557 = vrcp.f32 %v1578_v1 }
0x16a4   : > { %v3556_v39 = vpop.eup %3555 }
0x16a5   : > { %v3558_v40 = vpop.eup %3557  ;;  %v1502_v45 = vmul.f32 %v3556_v39, %v4109_v57 }
0x16a6   : > { %v1582_v3 = vmul.f32 %v3558_v40, %v4107_v56 }
0x1705   : > { %v1505_v28 = vpop.permute.xlu0 %1504 }
0x1706   : > { %v1507_v41 = vmul.f32 %v3556_v39, %v1505_v28  ;;  %v1585_v44 = vpop.permute.xlu1 %1584 }
0x1707   : > { %v1587_v43 = vmul.f32 %v3558_v40, %v1585_v44 }
0x1708   : > { %1509 = vrot.lane.b32.xlu0 %v1507_v41, %s3709_s30 }
0x1709   : > { %1589 = vrot.lane.b32.xlu1 %v1587_v43, %s3709_s30 }
0x177a   : > { %v1510_v46 = vpop.permute.xlu0 %1509 }
0x177b   : > { %v4173_v47 = vadd.f32 %v1510_v46, %v1502_v45  ;;  %v1590_v48 = vpop.permute.xlu1 %1589 }
0x177c   : > { %v4175_v49 = vadd.f32 %v1590_v48, %v1582_v3 }
0x177d   : > { %3559 = vtanh.f32 %v4173_v47 }
0x177e   : > { %3561 = vtanh.f32 %v4175_v49 }
0x178a   : > { %v3560_v50 = vpop.eup %3559 }
0x178b   : > { %v3562_v51 = vpop.eup %3561  ;;  %1515 = vrot.lane.b32.xlu0 %v3560_v50, %s3708_s29 }
0x178c   : > { %1595 = vrot.lane.b32.xlu1 %v3562_v51, %s3708_s29 }
0x17fd   : > { %v1516_v52 = vpop.permute.xlu0 %1515 }
0x17fe   : > { %v4181_v53 = vmul.f32 %v3556_v39, %v1516_v52  ;;  %v1596_v55 = vpop.permute.xlu1 %1595 }
0x17ff   : > { %v1598_v56 = vmul.f32 %v3558_v40, %v1596_v55 }
0x1800   : > { %1603 = vrot.lane.b32.xlu1 %v4181_v53, %s3708_s29 }
0x1801   : > { %1600 = vrot.lane.b32.xlu0 %v1598_v56, %s3709_s30  ;;  %v1683_v57 = vpack.c.bf16 %v1598_v56, %v1598_v56 }
0x1805   : > { %1685 = vrot.lane.b32.xlu0 %v1683_v57, %s3709_s30 }
0x1872   : > { %v1604_v58 = vpop.permute.xlu1 %1603 }
0x1873   : > { %v1601_v59 = vpop.permute.xlu0 %1600 }
0x1874   : > { %v1606_v60 = vsel %vm242_vm2, %v1601_v59, %v1604_v58  ;;  %v2916_v58 = vld [vmem:[%s3747_s21 + $0x14] sm:$0x3] }
0x1875   : > { %v1607_v61 = vpack.c.bf16 %v1606_v60, %v1606_v60 }
0x1877   : > { %v1686_v62 = vpop.permute.xlu0 %1685  ;;  %3259 = vmatmul.mubr.msk.bf16.vlgmr.msra.gmra.mxu1 %vm355_vm3, %v1607_v61 }
0x1878   : > { %3267 = vmatmul.mubr.msk.bf16.vlgmr.msra.gmra.mxu0 %vm242_vm2, %v1686_v62  ;;  %3283 = vmatpush3.bf16.msra.mxu1 %v4078_v27 }
0x1879   : > { %3271 = vmatpush3.bf16.msra.mxu0 %v4127_v10  ;;  %3284 = vmatprep.subr.bf16.mxu1 %v3706_v2 }
0x187a   : > { %3272 = vmatprep.subr.bf16.mxu0 %v3706_v2  ;;  %3278 = vmatprep.mubr.msk.bf16.mxu0 %vm3707_vm1, %v3706_v2 }
0x187b   : > { %3286 = vmatprep.mubr.msk.bf16.mxu1 %vm3707_vm1, %v3706_v2 }
0x187c   : > { %3285 = vmatpush3.bf16.msra.mxu1 %v4091_v24 }
0x187d   : > { %3273 = vmatpush3.bf16.msra.mxu0 %v4140_v11  ;;  %3290 = vmatprep.subr.bf16.mxu1 %v3706_v2 }
0x187e   : > { %3274 = vmatprep.subr.bf16.mxu0 %v3706_v2 }
0x1881   : > { %3275 = vmatpush3.bf16.msra.mxu0 %v4149_v12 }
0x1882   : > { %3276 = vmatprep.subr.bf16.mxu0 %v3706_v2 }
0x1885   : > { %3277 = vmatpush3.bf16.msra.mxu0 %v4156_v13 }
0x1886   : > { %3302 = vmatprep.subr.bf16.mxu0 %v3706_v2 }
0x1937   : > { %v1645_v4 = vpop.f32.mrf.mxu1 }
0x1938   : > { %v1646_v5 = vadd.f32 %v4164_v18, %v1645_v4  ;;  %v1724_v7 = vpop.f32.mrf.mxu0 }
0x1939   : > { %v1730_v8 = vadd.f32 %v2910_v0, %v1724_v7  ;;  %v3260_v9 = vpop.f32.mrf.mxu1 }
0x193a   : > { %3563 = vtanh.f32 %v1646_v5  ;;  %v3268_v14 = vpop.f32.mrf.mxu0  ;;  %v2908_v25 = vmul.f32 -1.442695, %v1646_v5 }
0x193b   : > { %3565 = vtanh.f32 %v1730_v8  ;;  %v1648_v15 = vpop.f32.mrf.mxu1  ;;  %v2912_v29 = vmul.f32 -1.442695, %v1730_v8 }
0x193c   : > { %v1727_v17 = vpop.f32.mrf.mxu0  ;;  %3567 = vpow2.f32 %v2908_v25 }
0x193d   : > { %v3261_v20 = vpop.f32.mrf.mxu1  ;;  %3569 = vpow2.f32 %v2912_v29 }
0x193e   : > { %v3269_v21 = vpop.f32.mrf.mxu0 }
0x1947   : > { %v3564_v22 = vpop.eup %3563 }
0x1948   : > { %v3566_v23 = vpop.eup %3565  ;;  %1660 = vrot.lane.b32.xlu1 %v3564_v22, %s3708_s29 }
0x1949   : > { %1740 = vrot.lane.b32.xlu0 %v3566_v23, %s3708_s29  ;;  %v3568_v30 = vpop.eup %3567 }
0x194a   : > { %v3570_v31 = vpop.eup %3569  ;;  %v1654_v33 = vadd.f32 1.0, %v3568_v30 }
0x194b   : > { %v1734_v34 = vadd.f32 1.0, %v3570_v31 }
0x194c   : > { %3571 = vrcp.f32 %v1654_v33 }
0x194d   : > { %3573 = vrcp.f32 %v1734_v34 }
0x1959   : > { %v3572_v35 = vpop.eup %3571 }
0x195a   : > { %v3574_v37 = vpop.eup %3573  ;;  %v1658_v39 = vmul.f32 %v3572_v35, %v4173_v47 }
0x195b   : > { %v1738_v40 = vmul.f32 %v3574_v37, %v4175_v49 }
0x19ba   : > { %v1661_v36 = vpop.permute.xlu1 %1660 }
0x19bb   : > { %v1663_v38 = vmul.f32 %v3572_v35, %v1661_v36  ;;  %v1741_v26 = vpop.permute.xlu0 %1740 }
0x19bc   : > { %v1743_v1 = vmul.f32 %v3574_v37, %v1741_v26 }
0x19bd   : > { %1665 = vrot.lane.b32.xlu1 %v1663_v38, %s3709_s30 }
0x19be   : > { %1745 = vrot.lane.b32.xlu0 %v1743_v1, %s3709_s30 }
0x1a2f   : > { %v1666_v28 = vpop.permute.xlu1 %1665 }
0x1a30   : > { %v4214_v41 = vadd.f32 %v1666_v28, %v1658_v39  ;;  %v1746_v44 = vpop.permute.xlu0 %1745 }
0x1a31   : > { %v4216_v43 = vadd.f32 %v1746_v44, %v1738_v40 }
0x1a32   : > { %3575 = vtanh.f32 %v4214_v41 }
0x1a33   : > { %3577 = vtanh.f32 %v4216_v43 }
0x1a3f   : > { %v3576_v45 = vpop.eup %3575 }
0x1a40   : > { %v3578_v46 = vpop.eup %3577  ;;  %1671 = vrot.lane.b32.xlu1 %v3576_v45, %s3708_s29 }
0x1a41   : > { %1751 = vrot.lane.b32.xlu0 %v3578_v46, %s3708_s29 }
0x1ab2   : > { %v1672_v3 = vpop.permute.xlu1 %1671 }
0x1ab3   : > { %v4222_v47 = vmul.f32 %v3572_v35, %v1672_v3  ;;  %v1752_v48 = vpop.permute.xlu0 %1751 }
0x1ab4   : > { %v1754_v49 = vmul.f32 %v3574_v37, %v1752_v48 }
0x1ab5   : > { %1759 = vrot.lane.b32.xlu0 %v4222_v47, %s3708_s29 }
0x1ab6   : > { %1756 = vrot.lane.b32.xlu1 %v1754_v49, %s3709_s30  ;;  %v1839_v50 = vpack.c.bf16 %v1754_v49, %v1754_v49 }
0x1aba   : > { %1841 = vrot.lane.b32.xlu1 %v1839_v50, %s3709_s30 }
0x1b27   : > { %v1760_v51 = vpop.permute.xlu0 %1759 }
0x1b28   : > { %v1757_v52 = vpop.permute.xlu1 %1756 }
0x1b29   : > { %v1762_v55 = vsel %vm242_vm2, %v1757_v52, %v1760_v51  ;;  %v2922_v52 = vld [vmem:[%s3747_s21 + $0x16] sm:$0x3] }
0x1b2a   : > { %v1763_v56 = vpack.c.bf16 %v1762_v55, %v1762_v55 }
0x1b2c   : > { %3279 = vmatmul.mubr.msk.bf16.vlgmr.msra.gmra.mxu0 %vm355_vm3, %v1763_v56  ;;  %v1842_v57 = vpop.permute.xlu1 %1841 }
0x1b2d   : > { %3287 = vmatmul.mubr.msk.bf16.vlgmr.msra.gmra.mxu1 %vm242_vm2, %v1842_v57  ;;  %3303 = vmatpush3.bf16.msra.mxu0 %v4078_v27 }
0x1b2e   : > { %3291 = vmatpush3.bf16.msra.mxu1 %v4127_v10  ;;  %3304 = vmatprep.subr.bf16.mxu0 %v3706_v2 }
0x1b2f   : > { %3292 = vmatprep.subr.bf16.mxu1 %v3706_v2  ;;  %3298 = vmatprep.mubr.msk.bf16.mxu1 %vm3707_vm1, %v3706_v2 }
0x1b30   : > { %3306 = vmatprep.mubr.msk.bf16.mxu0 %vm3707_vm1, %v3706_v2 }
0x1b31   : > { %3305 = vmatpush3.bf16.msra.mxu0 %v4091_v24 }
0x1b32   : > { %3293 = vmatpush3.bf16.msra.mxu1 %v4140_v11  ;;  %3310 = vmatprep.subr.bf16.mxu0 %v3706_v2 }
0x1b33   : > { %3294 = vmatprep.subr.bf16.mxu1 %v3706_v2 }
0x1b36   : > { %3295 = vmatpush3.bf16.msra.mxu1 %v4149_v12 }
0x1b37   : > { %3296 = vmatprep.subr.bf16.mxu1 %v3706_v2 }
0x1b3a   : > { %3297 = vmatpush3.bf16.msra.mxu1 %v4156_v13 }
0x1b3b   : > { %3322 = vmatprep.subr.bf16.mxu1 %v3706_v2 }
0x1bec   : > { %v1801_v59 = vpop.f32.mrf.mxu0 }
0x1bed   : > { %v1802_v60 = vadd.f32 %v4164_v18, %v1801_v59  ;;  %v1880_v61 = vpop.f32.mrf.mxu1 }
0x1bee   : > { %v1886_v62 = vadd.f32 %v2916_v58, %v1880_v61  ;;  %v3280_v0 = vpop.f32.mrf.mxu0 }
0x1bef   : > { %3579 = vtanh.f32 %v1802_v60  ;;  %v3288_v4 = vpop.f32.mrf.mxu1  ;;  %v2914_v17 = vmul.f32 -1.442695, %v1802_v60 }
0x1bf0   : > { %3581 = vtanh.f32 %v1886_v62  ;;  %v1804_v5 = vpop.f32.mrf.mxu0  ;;  %v2918_v20 = vmul.f32 -1.442695, %v1886_v62 }
0x1bf1   : > { %v1883_v7 = vpop.f32.mrf.mxu1  ;;  %3583 = vpow2.f32 %v2914_v17 }
0x1bf2   : > { %v3281_v8 = vpop.f32.mrf.mxu0  ;;  %3585 = vpow2.f32 %v2918_v20 }
0x1bf3   : > { %v3289_v9 = vpop.f32.mrf.mxu1 }
0x1bfc   : > { %v3580_v14 = vpop.eup %3579 }
0x1bfd   : > { %v3582_v15 = vpop.eup %3581  ;;  %1816 = vrot.lane.b32.xlu0 %v3580_v14, %s3708_s29 }
0x1bfe   : > { %1896 = vrot.lane.b32.xlu1 %v3582_v15, %s3708_s29  ;;  %v3584_v21 = vpop.eup %3583 }
0x1bff   : > { %v3586_v22 = vpop.eup %3585  ;;  %v1810_v23 = vadd.f32 1.0, %v3584_v21 }
0x1c00   : > { %v1890_v25 = vadd.f32 1.0, %v3586_v22 }
0x1c01   : > { %3587 = vrcp.f32 %v1810_v23 }
0x1c02   : > { %3589 = vrcp.f32 %v1890_v25 }
0x1c0e   : > { %v3588_v29 = vpop.eup %3587 }
0x1c0f   : > { %v3590_v31 = vpop.eup %3589  ;;  %v1814_v36 = vmul.f32 %v3588_v29, %v4214_v41 }
0x1c10   : > { %v1894_v38 = vmul.f32 %v3590_v31, %v4216_v43 }
0x1c6f   : > { %v1817_v30 = vpop.permute.xlu0 %1816 }
0x1c70   : > { %v1819_v33 = vmul.f32 %v3588_v29, %v1817_v30  ;;  %v1897_v34 = vpop.permute.xlu1 %1896 }
0x1c71   : > { %v1899_v35 = vmul.f32 %v3590_v31, %v1897_v34 }
0x1c72   : > { %1821 = vrot.lane.b32.xlu0 %v1819_v33, %s3709_s30 }
0x1c73   : > { %1901 = vrot.lane.b32.xlu1 %v1899_v35, %s3709_s30 }
0x1ce4   : > { %v1822_v37 = vpop.permute.xlu0 %1821 }
0x1ce5   : > { %v4255_v26 = vadd.f32 %v1822_v37, %v1814_v36  ;;  %v1902_v1 = vpop.permute.xlu1 %1901 }
0x1ce6   : > { %v4257_v39 = vadd.f32 %v1902_v1, %v1894_v38 }
0x1ce7   : > { %3591 = vtanh.f32 %v4255_v26 }
0x1ce8   : > { %3593 = vtanh.f32 %v4257_v39 }
0x1cf4   : > { %v3592_v28 = vpop.eup %3591 }
0x1cf5   : > { %v3594_v40 = vpop.eup %3593  ;;  %1827 = vrot.lane.b32.xlu0 %v3592_v28, %s3708_s29 }
0x1cf6   : > { %1907 = vrot.lane.b32.xlu1 %v3594_v40, %s3708_s29 }
0x1d67   : > { %v1828_v44 = vpop.permute.xlu0 %1827 }
0x1d68   : > { %v4263_v41 = vmul.f32 %v3588_v29, %v1828_v44  ;;  %v1908_v45 = vpop.permute.xlu1 %1907 }
0x1d69   : > { %v1910_v43 = vmul.f32 %v3590_v31, %v1908_v45 }
0x1d6a   : > { %1915 = vrot.lane.b32.xlu1 %v4263_v41, %s3708_s29 }
0x1d6b   : > { %1912 = vrot.lane.b32.xlu0 %v1910_v43, %s3709_s30  ;;  %v1995_v46 = vpack.c.bf16 %v1910_v43, %v1910_v43 }
0x1d6f   : > { %1997 = vrot.lane.b32.xlu0 %v1995_v46, %s3709_s30 }
0x1ddc   : > { %v1916_v3 = vpop.permute.xlu1 %1915 }
0x1ddd   : > { %v1913_v48 = vpop.permute.xlu0 %1912 }
0x1dde   : > { %v1918_v49 = vsel %vm242_vm2, %v1913_v48, %v1916_v3 }
0x1ddf   : > { %v1919_v50 = vpack.c.bf16 %v1918_v49, %v1918_v49  ;;  %v2928_v49 = vld [vmem:[%s3747_s21 + $0x18] sm:$0x3] }
0x1de1   : > { %v1998_v51 = vpop.permute.xlu0 %1997  ;;  %3299 = vmatmul.mubr.msk.bf16.vlgmr.msra.gmra.mxu1 %vm355_vm3, %v1919_v50 }
0x1de2   : > { %3307 = vmatmul.mubr.msk.bf16.vlgmr.msra.gmra.mxu0 %vm242_vm2, %v1998_v51  ;;  %3323 = vmatpush3.bf16.msra.mxu1 %v4078_v27 }
0x1de3   : > { %3311 = vmatpush3.bf16.msra.mxu0 %v4127_v10  ;;  %3324 = vmatprep.subr.bf16.mxu1 %v3706_v2 }
0x1de4   : > { %3312 = vmatprep.subr.bf16.mxu0 %v3706_v2  ;;  %3318 = vmatprep.mubr.msk.bf16.mxu0 %vm3707_vm1, %v3706_v2 }
0x1de5   : > { %3326 = vmatprep.mubr.msk.bf16.mxu1 %vm3707_vm1, %v3706_v2 }
0x1de6   : > { %3325 = vmatpush3.bf16.msra.mxu1 %v4091_v24 }
0x1de7   : > { %3313 = vmatpush3.bf16.msra.mxu0 %v4140_v11  ;;  %3330 = vmatprep.subr.bf16.mxu1 %v3706_v2 }
0x1de8   : > { %3314 = vmatprep.subr.bf16.mxu0 %v3706_v2 }
0x1deb   : > { %3315 = vmatpush3.bf16.msra.mxu0 %v4149_v12 }
0x1dec   : > { %3316 = vmatprep.subr.bf16.mxu0 %v3706_v2 }
0x1def   : > { %3317 = vmatpush3.bf16.msra.mxu0 %v4156_v13 }
0x1df0   : > { %3342 = vmatprep.subr.bf16.mxu0 %v3706_v2 }
0x1ea1   : > { %v1957_v55 = vpop.f32.mrf.mxu1 }
0x1ea2   : > { %v1958_v56 = vadd.f32 %v4164_v18, %v1957_v55  ;;  %v2036_v57 = vpop.f32.mrf.mxu0 }
0x1ea3   : > { %v2042_v58 = vadd.f32 %v2922_v52, %v2036_v57  ;;  %v3300_v59 = vpop.f32.mrf.mxu1 }
0x1ea4   : > { %3595 = vtanh.f32 %v1958_v56  ;;  %v3308_v60 = vpop.f32.mrf.mxu0  ;;  %v2920_v8 = vmul.f32 -1.442695, %v1958_v56 }
0x1ea5   : > { %3597 = vtanh.f32 %v2042_v58  ;;  %v1960_v61 = vpop.f32.mrf.mxu1  ;;  %v2924_v9 = vmul.f32 -1.442695, %v2042_v58 }
0x1ea6   : > { %v2039_v62 = vpop.f32.mrf.mxu0  ;;  %3599 = vpow2.f32 %v2920_v8 }
0x1ea7   : > { %v3301_v0 = vpop.f32.mrf.mxu1  ;;  %3601 = vpow2.f32 %v2924_v9 }
0x1ea8   : > { %v3309_v4 = vpop.f32.mrf.mxu0 }
0x1eb1   : > { %v3596_v5 = vpop.eup %3595 }
0x1eb2   : > { %v3598_v7 = vpop.eup %3597  ;;  %1972 = vrot.lane.b32.xlu1 %v3596_v5, %s3708_s29 }
0x1eb3   : > { %2052 = vrot.lane.b32.xlu0 %v3598_v7, %s3708_s29  ;;  %v3600_v14 = vpop.eup %3599 }
0x1eb4   : > { %v3602_v15 = vpop.eup %3601  ;;  %v1966_v17 = vadd.f32 1.0, %v3600_v14 }
0x1eb5   : > { %v2046_v20 = vadd.f32 1.0, %v3602_v15 }
0x1eb6   : > { %3603 = vrcp.f32 %v1966_v17 }
0x1eb7   : > { %3605 = vrcp.f32 %v2046_v20 }
0x1ec3   : > { %v3604_v21 = vpop.eup %3603 }
0x1ec4   : > { %v3606_v23 = vpop.eup %3605  ;;  %v1970_v31 = vmul.f32 %v3604_v21, %v4255_v26 }
0x1ec5   : > { %v2050_v34 = vmul.f32 %v3606_v23, %v4257_v39 }
0x1f24   : > { %v1973_v22 = vpop.permute.xlu1 %1972 }
0x1f25   : > { %v1975_v25 = vmul.f32 %v3604_v21, %v1973_v22  ;;  %v2053_v29 = vpop.permute.xlu0 %2052 }
0x1f26   : > { %v2055_v30 = vmul.f32 %v3606_v23, %v2053_v29 }
0x1f27   : > { %1977 = vrot.lane.b32.xlu1 %v1975_v25, %s3709_s30 }
0x1f28   : > { %2057 = vrot.lane.b32.xlu0 %v2055_v30, %s3709_s30 }
0x1f99   : > { %v1978_v33 = vpop.permute.xlu1 %1977 }
0x1f9a   : > { %v4296_v35 = vadd.f32 %v1978_v33, %v1970_v31  ;;  %v2058_v36 = vpop.permute.xlu0 %2057 }
0x1f9b   : > { %v4298_v37 = vadd.f32 %v2058_v36, %v2050_v34 }
0x1f9c   : > { %3607 = vtanh.f32 %v4296_v35 }
0x1f9d   : > { %3609 = vtanh.f32 %v4298_v37 }
0x1fa9   : > { %v3608_v38 = vpop.eup %3607 }
0x1faa   : > { %v3610_v1 = vpop.eup %3609  ;;  %1983 = vrot.lane.b32.xlu1 %v3608_v38, %s3708_s29 }
0x1fab   : > { %2063 = vrot.lane.b32.xlu0 %v3610_v1, %s3708_s29 }
0x201c   : > { %v1984_v28 = vpop.permute.xlu1 %1983 }
0x201d   : > { %v4304_v26 = vmul.f32 %v3604_v21, %v1984_v28  ;;  %v2064_v40 = vpop.permute.xlu0 %2063 }
0x201e   : > { %v2066_v39 = vmul.f32 %v3606_v23, %v2064_v40 }
0x201f   : > { %2071 = vrot.lane.b32.xlu0 %v4304_v26, %s3708_s29 }
0x2020   : > { %2068 = vrot.lane.b32.xlu1 %v2066_v39, %s3709_s30  ;;  %v2151_v44 = vpack.c.bf16 %v2066_v39, %v2066_v39 }
0x2024   : > { %2153 = vrot.lane.b32.xlu1 %v2151_v44, %s3709_s30 }
0x2091   : > { %v2072_v45 = vpop.permute.xlu0 %2071 }
0x2092   : > { %v2069_v43 = vpop.permute.xlu1 %2068 }
0x2093   : > { %v2074_v46 = vsel %vm242_vm2, %v2069_v43, %v2072_v45 }
0x2094   : > { %v2075_v3 = vpack.c.bf16 %v2074_v46, %v2074_v46 }
0x2096   : > { %3319 = vmatmul.mubr.msk.bf16.vlgmr.msra.gmra.mxu0 %vm355_vm3, %v2075_v3  ;;  %v2154_v48 = vpop.permute.xlu1 %2153 }
0x2097   : > { %3327 = vmatmul.mubr.msk.bf16.vlgmr.msra.gmra.mxu1 %vm242_vm2, %v2154_v48  ;;  %3343 = vmatpush3.bf16.msra.mxu0 %v4078_v27 }
0x2098   : > { %3331 = vmatpush3.bf16.msra.mxu1 %v4127_v10  ;;  %3344 = vmatprep.subr.bf16.mxu0 %v3706_v2 }
0x2099   : > { %3332 = vmatprep.subr.bf16.mxu1 %v3706_v2  ;;  %3338 = vmatprep.mubr.msk.bf16.mxu1 %vm3707_vm1, %v3706_v2 }
0x209a   : > { %3346 = vmatprep.mubr.msk.bf16.mxu0 %vm3707_vm1, %v3706_v2 }
0x209b   : > { %3345 = vmatpush3.bf16.msra.mxu0 %v4091_v24 }
0x209c   : > { %3333 = vmatpush3.bf16.msra.mxu1 %v4140_v11  ;;  %3350 = vmatprep.subr.bf16.mxu0 %v3706_v2 }
0x209d   : > { %3334 = vmatprep.subr.bf16.mxu1 %v3706_v2 }
0x20a0   : > { %3335 = vmatpush3.bf16.msra.mxu1 %v4149_v12 }
0x20a1   : > { %3336 = vmatprep.subr.bf16.mxu1 %v3706_v2 }
0x20a4   : > { %3337 = vmatpush3.bf16.msra.mxu1 %v4156_v13 }
0x20a5   : > { %3362 = vmatprep.subr.bf16.mxu1 %v3706_v2 }
0x2156   : > { %v2113_v50 = vpop.f32.mrf.mxu0 }
0x2157   : > { %v2114_v51 = vadd.f32 %v4164_v18, %v2113_v50  ;;  %v2192_v52 = vpop.f32.mrf.mxu1 }
0x2158   : > { %v2198_v55 = vadd.f32 %v2928_v49, %v2192_v52  ;;  %v3320_v56 = vpop.f32.mrf.mxu0 }
0x2159   : > { %3611 = vtanh.f32 %v2114_v51  ;;  %v3328_v57 = vpop.f32.mrf.mxu1  ;;  %v2926_v4 = vmul.f32 -1.442695, %v2114_v51 }
0x215a   : > { %3613 = vtanh.f32 %v2198_v55  ;;  %v2116_v58 = vpop.f32.mrf.mxu0  ;;  %v2930_v5 = vmul.f32 -1.442695, %v2198_v55 }
0x215b   : > { %v2195_v59 = vpop.f32.mrf.mxu1  ;;  %3615 = vpow2.f32 %v2926_v4 }
0x215c   : > { %v3321_v60 = vpop.f32.mrf.mxu0  ;;  %3617 = vpow2.f32 %v2930_v5 }
0x215d   : > { %v3329_v61 = vpop.f32.mrf.mxu1 }
0x2166   : > { %v3612_v62 = vpop.eup %3611 }
0x2167   : > { %v3614_v0 = vpop.eup %3613  ;;  %2128 = vrot.lane.b32.xlu0 %v3612_v62, %s3708_s29 }
0x2168   : > { %2208 = vrot.lane.b32.xlu1 %v3614_v0, %s3708_s29  ;;  %v3616_v7 = vpop.eup %3615 }
0x2169   : > { %v3618_v8 = vpop.eup %3617  ;;  %v2122_v9 = vadd.f32 1.0, %v3616_v7 }
0x216a   : > { %v2202_v14 = vadd.f32 1.0, %v3618_v8 }
0x216b   : > { %3619 = vrcp.f32 %v2122_v9 }
0x216c   : > { %3621 = vrcp.f32 %v2202_v14 }
0x2178   : > { %v3620_v15 = vpop.eup %3619 }
0x2179   : > { %v3622_v20 = vpop.eup %3621  ;;  %v2126_v25 = vmul.f32 %v3620_v15, %v4296_v35 }
0x217a   : > { %v2206_v30 = vmul.f32 %v3622_v20, %v4298_v37 }
0x21d9   : > { %v2129_v17 = vpop.permute.xlu0 %2128 }
0x21da   : > { %v2131_v21 = vmul.f32 %v3620_v15, %v2129_v17  ;;  %v2209_v22 = vpop.permute.xlu1 %2208 }
0x21db   : > { %v2211_v23 = vmul.f32 %v3622_v20, %v2209_v22 }
0x21dc   : > { %2133 = vrot.lane.b32.xlu0 %v2131_v21, %s3709_s30 }
0x21dd   : > { %2213 = vrot.lane.b32.xlu1 %v2211_v23, %s3709_s30 }
0x224e   : > { %v2134_v29 = vpop.permute.xlu0 %2133 }
0x224f   : > { %v4337_v31 = vadd.f32 %v2134_v29, %v2126_v25  ;;  %v2214_v33 = vpop.permute.xlu1 %2213 }
0x2250   : > { %v4339_v34 = vadd.f32 %v2214_v33, %v2206_v30 }
0x2251   : > { %3623 = vtanh.f32 %v4337_v31 }
0x2252   : > { %3625 = vtanh.f32 %v4339_v34 }
0x225e   : > { %v3624_v36 = vpop.eup %3623 }
0x225f   : > { %v3626_v38 = vpop.eup %3625  ;;  %2139 = vrot.lane.b32.xlu0 %v3624_v36, %s3708_s29 }
0x2260   : > { %2219 = vrot.lane.b32.xlu1 %v3626_v38, %s3708_s29 }
0x22d1   : > { %v2140_v1 = vpop.permute.xlu0 %2139 }
0x22d2   : > { %v4345_v35 = vmul.f32 %v3620_v15, %v2140_v1  ;;  %v2220_v28 = vpop.permute.xlu1 %2219 }
0x22d3   : > { %v2222_v37 = vmul.f32 %v3622_v20, %v2220_v28 }
0x22d4   : > { %2227 = vrot.lane.b32.xlu1 %v4345_v35, %s3708_s29 }
0x22d5   : > { %2224 = vrot.lane.b32.xlu0 %v2222_v37, %s3709_s30  ;;  %v2307_v40 = vpack.c.bf16 %v2222_v37, %v2222_v37 }
0x22d9   : > { %2309 = vrot.lane.b32.xlu0 %v2307_v40, %s3709_s30 }
0x2346   : > { %v2228_v39 = vpop.permute.xlu1 %2227 }
0x2347   : > { %v2225_v44 = vpop.permute.xlu0 %2224 }
0x2348   : > { %v2230_v45 = vsel %vm242_vm2, %v2225_v44, %v2228_v39 }
0x2349   : > { %v2231_v43 = vpack.c.bf16 %v2230_v45, %v2230_v45  ;;  %v3690_v45 = vld [vmem:[%s4547_s1 + $0x8] sm:$0xff]  }
0x234b   : > { %v2310_v46 = vpop.permute.xlu0 %2309  ;;  %3339 = vmatmul.mubr.msk.bf16.vlgmr.msra.gmra.mxu1 %vm355_vm3, %v2231_v43  ;;  %v3691_v43 = vld [vmem:[%s4547_s1] sm:$0xff]  }
0x234c   : > { %3347 = vmatmul.mubr.msk.bf16.vlgmr.msra.gmra.mxu0 %vm242_vm2, %v2310_v46  ;;  %3363 = vmatpush3.bf16.msra.mxu1 %v4078_v27  ;;  %v2934_v27 = vld [vmem:[%s3747_s21 + $0x1a] sm:$0x3] }
0x234d   : > { %3351 = vmatpush3.bf16.msra.mxu0 %v4127_v10  ;;  %3364 = vmatprep.subr.bf16.mxu1 %v3706_v2 }
0x234e   : > { %3352 = vmatprep.subr.bf16.mxu0 %v3706_v2  ;;  %3358 = vmatprep.mubr.msk.bf16.mxu0 %vm3707_vm1, %v3706_v2 }
0x234f   : > { %3366 = vmatprep.mubr.msk.bf16.mxu1 %vm3707_vm1, %v3706_v2 }
0x2350   : > { %3365 = vmatpush3.bf16.msra.mxu1 %v4091_v24 }
0x2351   : > { %3353 = vmatpush3.bf16.msra.mxu0 %v4140_v11  ;;  %3370 = vmatprep.subr.bf16.mxu1 %v3706_v2 }
0x2352   : > { %3354 = vmatprep.subr.bf16.mxu0 %v3706_v2 }
0x2355   : > { %3355 = vmatpush3.bf16.msra.mxu0 %v4149_v12 }
0x2356   : > { %3356 = vmatprep.subr.bf16.mxu0 %v3706_v2 }
0x2359   : > { %3357 = vmatpush3.bf16.msra.mxu0 %v4156_v13 }
0x235a   : > { %3382 = vmatprep.subr.bf16.mxu0 %v3706_v2 }
0x240b   : > { %v2269_v3 = vpop.f32.mrf.mxu1 }
0x240c   : > { %v2270_v48 = vadd.f32 %v4164_v18, %v2269_v3  ;;  %v2348_v49 = vpop.f32.mrf.mxu0 }
0x240d   : > { %v2354_v24 = vadd.f32 %v2934_v27, %v2348_v49  ;;  %v3340_v50 = vpop.f32.mrf.mxu1 }
0x240e   : > { %3627 = vtanh.f32 %v2270_v48  ;;  %v3348_v51 = vpop.f32.mrf.mxu0  ;;  %v2932_v60 = vmul.f32 -1.442695, %v2270_v48 }
0x240f   : > { %3629 = vtanh.f32 %v2354_v24  ;;  %v2272_v52 = vpop.f32.mrf.mxu1  ;;  %v2936_v61 = vmul.f32 -1.442695, %v2354_v24 }
0x2410   : > { %v2351_v55 = vpop.f32.mrf.mxu0  ;;  %3631 = vpow2.f32 %v2932_v60 }
0x2411   : > { %v3341_v56 = vpop.f32.mrf.mxu1  ;;  %3633 = vpow2.f32 %v2936_v61 }
0x2412   : > { %v3349_v57 = vpop.f32.mrf.mxu0 }
0x241b   : > { %v3628_v58 = vpop.eup %3627 }
0x241c   : > { %v3630_v59 = vpop.eup %3629  ;;  %2284 = vrot.lane.b32.xlu1 %v3628_v58, %s3708_s29 }
0x241d   : > { %2364 = vrot.lane.b32.xlu0 %v3630_v59, %s3708_s29  ;;  %v3632_v62 = vpop.eup %3631 }
0x241e   : > { %v3634_v0 = vpop.eup %3633  ;;  %v2278_v4 = vadd.f32 1.0, %v3632_v62 }
0x241f   : > { %v2358_v5 = vadd.f32 1.0, %v3634_v0 }
0x2420   : > { %3635 = vrcp.f32 %v2278_v4 }
0x2421   : > { %3637 = vrcp.f32 %v2358_v5 }
0x242d   : > { %v3636_v7 = vpop.eup %3635 }
0x242e   : > { %v3638_v9 = vpop.eup %3637  ;;  %v2282_v20 = vmul.f32 %v3636_v7, %v4337_v31 }
0x242f   : > { %v2362_v22 = vmul.f32 %v3638_v9, %v4339_v34 }
0x248e   : > { %v2285_v8 = vpop.permute.xlu1 %2284 }
0x248f   : > { %v2287_v14 = vmul.f32 %v3636_v7, %v2285_v8  ;;  %v2365_v15 = vpop.permute.xlu0 %2364 }
0x2490   : > { %v2367_v17 = vmul.f32 %v3638_v9, %v2365_v15 }
0x2491   : > { %2289 = vrot.lane.b32.xlu1 %v2287_v14, %s3709_s30 }
0x2492   : > { %2369 = vrot.lane.b32.xlu0 %v2367_v17, %s3709_s30 }
0x2503   : > { %v2290_v21 = vpop.permute.xlu1 %2289 }
0x2504   : > { %v4378_v23 = vadd.f32 %v2290_v21, %v2282_v20  ;;  %v2370_v25 = vpop.permute.xlu0 %2369 }
0x2505   : > { %v4380_v29 = vadd.f32 %v2370_v25, %v2362_v22 }
0x2506   : > { %3639 = vtanh.f32 %v4378_v23 }
0x2507   : > { %3641 = vtanh.f32 %v4380_v29 }
0x2513   : > { %v3640_v30 = vpop.eup %3639 }
0x2514   : > { %v3642_v33 = vpop.eup %3641  ;;  %2295 = vrot.lane.b32.xlu1 %v3640_v30, %s3708_s29 }
0x2515   : > { %2375 = vrot.lane.b32.xlu0 %v3642_v33, %s3708_s29 }
0x2586   : > { %v2296_v36 = vpop.permute.xlu1 %2295 }
0x2587   : > { %v4386_v31 = vmul.f32 %v3636_v7, %v2296_v36  ;;  %v2376_v38 = vpop.permute.xlu0 %2375 }
0x2588   : > { %v2378_v34 = vmul.f32 %v3638_v9, %v2376_v38 }
0x2589   : > { %2383 = vrot.lane.b32.xlu0 %v4386_v31, %s3708_s29 }
0x258a   : > { %2380 = vrot.lane.b32.xlu1 %v2378_v34, %s3709_s30  ;;  %v2463_v1 = vpack.c.bf16 %v2378_v34, %v2378_v34 }
0x258e   : > { %2465 = vrot.lane.b32.xlu1 %v2463_v1, %s3709_s30 }
0x25fb   : > { %v2384_v28 = vpop.permute.xlu0 %2383 }
0x25fc   : > { %v2381_v37 = vpop.permute.xlu1 %2380 }
0x25fd   : > { %v2386_v40 = vsel %vm242_vm2, %v2381_v37, %v2384_v28  ;;  %v3692_v28 = vld [vmem:[%s4548_s2 + $0x18] sm:$0xff]   ;;  %v3693_v37 = vld [vmem:[%s4548_s2 + $0x10] sm:$0xff]  }
0x25fe   : > { %v2387_v39 = vpack.c.bf16 %v2386_v40, %v2386_v40  ;;  %v3694_v40 = vld [vmem:[%s4548_s2 + $0x8] sm:$0xff]  }
0x2600   : > { %3359 = vmatmul.mubr.msk.bf16.vlgmr.msra.gmra.mxu0 %vm355_vm3, %v2387_v39  ;;  %v2466_v44 = vpop.permute.xlu1 %2465  ;;  %v3695_v39 = vld [vmem:[%s4548_s2] sm:$0xff]  }
0x2601   : > { %3367 = vmatmul.mubr.msk.bf16.vlgmr.msra.gmra.mxu1 %vm242_vm2, %v2466_v44  ;;  %3383 = vmatpush3.bf16.msra.mxu0 %v3690_v45  ;;  %v2946_v44 = vld [vmem:[%s3747_s21 + $0x1e] sm:$0x3] }
0x2602   : > { %3371 = vmatpush3.bf16.msra.mxu1 %v4127_v10  ;;  %3384 = vmatprep.subr.bf16.mxu0 %v3706_v2  ;;  %v2940_v10 = vld [vmem:[%s3747_s21 + $0x1c] sm:$0x3]  ;;  %s3710_s21 = smov 96  }
0x2603   : > { %3372 = vmatprep.subr.bf16.mxu1 %v3706_v2  ;;  %3378 = vmatprep.mubr.msk.bf16.mxu1 %vm3707_vm1, %v3706_v2 }
0x2604   : > { %3386 = vmatprep.mubr.msk.bf16.mxu0 %vm3707_vm1, %v3706_v2 }
0x2605   : > { %3385 = vmatpush3.bf16.msra.mxu0 %v3691_v43  ;;  %v3696_v43 = vld [vmem:[%s4549_s3] ss:$0 sm:$0xff] }
0x2606   : > { %3373 = vmatpush3.bf16.msra.mxu1 %v4140_v11  ;;  %3390 = vmatprep.subr.bf16.mxu0 %v3706_v2 }
0x2607   : > { %3374 = vmatprep.subr.bf16.mxu1 %v3706_v2 }
0x260a   : > { %3375 = vmatpush3.bf16.msra.mxu1 %v4149_v12 }
0x260b   : > { %3376 = vmatprep.subr.bf16.mxu1 %v3706_v2 }
0x260e   : > { %3377 = vmatpush3.bf16.msra.mxu1 %v4156_v13 }
0x26c0   : > { %v2425_v46 = vpop.f32.mrf.mxu0 }
0x26c1   : > { %v2426_v27 = vadd.f32 %v4164_v18, %v2425_v46  ;;  %v2504_v3 = vpop.f32.mrf.mxu1 }
0x26c2   : > { %v2510_v48 = vadd.f32 %v2940_v10, %v2504_v3  ;;  %v3360_v49 = vpop.f32.mrf.mxu0 }
0x26c3   : > { %3643 = vtanh.f32 %v2426_v27  ;;  %v3368_v24 = vpop.f32.mrf.mxu1  ;;  %v2938_v13 = vmul.f32 -1.442695, %v2426_v27 }
0x26c4   : > { %3645 = vtanh.f32 %v2510_v48  ;;  %v2428_v11 = vpop.f32.mrf.mxu0  ;;  %v2942_v56 = vmul.f32 -1.442695, %v2510_v48 }
0x26c5   : > { %v2507_v50 = vpop.f32.mrf.mxu1  ;;  %3647 = vpow2.f32 %v2938_v13 }
0x26c6   : > { %v3361_v51 = vpop.f32.mrf.mxu0  ;;  %3649 = vpow2.f32 %v2942_v56 }
0x26c7   : > { %v3369_v52 = vpop.f32.mrf.mxu1 }
0x26d0   : > { %v3644_v55 = vpop.eup %3643 }
0x26d1   : > { %v3646_v12 = vpop.eup %3645  ;;  %2440 = vrot.lane.b32.xlu0 %v3644_v55, %s3708_s29 }
0x26d2   : > { %2520 = vrot.lane.b32.xlu1 %v3646_v12, %s3708_s29  ;;  %v3648_v18 = vpop.eup %3647 }
0x26d3   : > { %v3650_v57 = vpop.eup %3649  ;;  %v2434_v58 = vadd.f32 1.0, %v3648_v18 }
0x26d4   : > { %v2514_v59 = vadd.f32 1.0, %v3650_v57 }
0x26d5   : > { %3651 = vrcp.f32 %v2434_v58 }
0x26d6   : > { %3653 = vrcp.f32 %v2514_v59 }
0x26e2   : > { %v3652_v60 = vpop.eup %3651 }
0x26e3   : > { %v3654_v62 = vpop.eup %3653  ;;  %v2438_v7 = vmul.f32 %v3652_v60, %v4378_v23 }
0x26e4   : > { %v2518_v9 = vmul.f32 %v3654_v62, %v4380_v29 }
0x2743   : > { %v2441_v61 = vpop.permute.xlu0 %2440 }
0x2744   : > { %v2443_v0 = vmul.f32 %v3652_v60, %v2441_v61  ;;  %v2521_v4 = vpop.permute.xlu1 %2520 }
0x2745   : > { %v2523_v5 = vmul.f32 %v3654_v62, %v2521_v4 }
0x2746   : > { %2445 = vrot.lane.b32.xlu0 %v2443_v0, %s3709_s30 }
0x2747   : > { %2525 = vrot.lane.b32.xlu1 %v2523_v5, %s3709_s30 }
0x27b8   : > { %v2446_v8 = vpop.permute.xlu0 %2445 }
0x27b9   : > { %v4422_v14 = vadd.f32 %v2446_v8, %v2438_v7  ;;  %v2526_v15 = vpop.permute.xlu1 %2525 }
0x27ba   : > { %v4424_v17 = vadd.f32 %v2526_v15, %v2518_v9 }
0x27bb   : > { %3655 = vtanh.f32 %v4422_v14 }
0x27bc   : > { %3657 = vtanh.f32 %v4424_v17 }
0x27c8   : > { %v3656_v20 = vpop.eup %3655 }
0x27c9   : > { %v3658_v21 = vpop.eup %3657  ;;  %2451 = vrot.lane.b32.xlu0 %v3656_v20, %s3708_s29 }
0x27ca   : > { %2531 = vrot.lane.b32.xlu1 %v3658_v21, %s3708_s29 }
0x283b   : > { %v2452_v22 = vpop.permute.xlu0 %2451 }
0x283c   : > { %v4430_v23 = vmul.f32 %v3652_v60, %v2452_v22  ;;  %v2532_v25 = vpop.permute.xlu1 %2531 }
0x283d   : > { %v2534_v29 = vmul.f32 %v3654_v62, %v2532_v25 }
0x283e   : > { %2539 = vrot.lane.b32.xlu1 %v4430_v23, %s3708_s29 }
0x283f   : > { %2536 = vrot.lane.b32.xlu0 %v2534_v29, %s3709_s30  ;;  %v2619_v30 = vpack.c.bf16 %v2534_v29, %v2534_v29 }
0x2843   : > { %2621 = vrot.lane.b32.xlu0 %v2619_v30, %s3709_s30 }
0x28b0   : > { %v2540_v33 = vpop.permute.xlu1 %2539 }
0x28b1   : > { %v2537_v36 = vpop.permute.xlu0 %2536 }
0x28b2   : > { %v2542_v38 = vsel %vm242_vm2, %v2537_v36, %v2540_v33 }
0x28b3   : > { %v2543_v34 = vpack.c.bf16 %v2542_v38, %v2542_v38 }
0x28b5   : > { %v2622_v1 = vpop.permute.xlu0 %2621  ;;  %3379 = vmatmul.mubr.msk.bf16.vlgmr.msra.gmra.mxu1 %vm355_vm3, %v2543_v34 }
0x28b6   : > { %3387 = vmatmul.mubr.msk.bf16.vlgmr.msra.gmra.mxu0 %vm242_vm2, %v2622_v1 }
0x28b7   : > { %3391 = vmatpush3.bf16.msra.mxu0 %v3692_v28  ;;  %3398 = vmatprep.mubr.msk.bf16.mxu0 %vm3707_vm1, %v3706_v2 }
0x28b8   : > { %3392 = vmatprep.subr.bf16.mxu0 %v3706_v2 }
0x28bb   : > { %3393 = vmatpush3.bf16.msra.mxu0 %v3693_v37 }
0x28bc   : > { %3394 = vmatprep.subr.bf16.mxu0 %v3706_v2 }
0x28bf   : > { %3395 = vmatpush3.bf16.msra.mxu0 %v3694_v40 }
0x28c0   : > { %3396 = vmatprep.subr.bf16.mxu0 %v3706_v2 }
0x28c3   : > { %3397 = vmatpush3.bf16.msra.mxu0 %v3695_v39 }
0x2975   : > { %v2581_v45 = vpop.f32.mrf.mxu1 }
0x2976   : > { %v2582_v10 = vadd.f32 %v3696_v43, %v2581_v45  ;;  %v2660_v46 = vpop.f32.mrf.mxu0 }
0x2977   : > { %v2666_v27 = vadd.f32 %v2946_v44, %v2660_v46  ;;  %v3380_v3 = vpop.f32.mrf.mxu1 }
0x2978   : > { %3659 = vtanh.f32 %v2582_v10  ;;  %v3388_v48 = vpop.f32.mrf.mxu0  ;;  %v2944_v52 = vmul.f32 -1.442695, %v2582_v10 }
0x2979   : > { %3661 = vtanh.f32 %v2666_v27  ;;  %v2584_v49 = vpop.f32.mrf.mxu1  ;;  %v2948_v55 = vmul.f32 -1.442695, %v2666_v27 }
0x297a   : > { %v2663_v2 = vpop.f32.mrf.mxu0  ;;  %3663 = vpow2.f32 %v2944_v52 }
0x297b   : > { %v3381_v24 = vpop.f32.mrf.mxu1  ;;  %3665 = vpow2.f32 %v2948_v55 }
0x297c   : > { %v3389_v11 = vpop.f32.mrf.mxu0 }
0x2985   : > { %v3660_v50 = vpop.eup %3659 }
0x2986   : > { %v3662_v51 = vpop.eup %3661  ;;  %2596 = vrot.lane.b32.xlu1 %v3660_v50, %s3708_s29 }
0x2987   : > { %2676 = vrot.lane.b32.xlu0 %v3662_v51, %s3708_s29  ;;  %v3664_v12 = vpop.eup %3663 }
0x2988   : > { %v3666_v13 = vpop.eup %3665  ;;  %v2590_v56 = vadd.f32 1.0, %v3664_v12 }
0x2989   : > { %v2670_v18 = vadd.f32 1.0, %v3666_v13 }
0x298a   : > { %3667 = vrcp.f32 %v2590_v56 }
0x298b   : > { %3669 = vrcp.f32 %v2670_v18 }
0x2997   : > { %v3668_v57 = vpop.eup %3667 }
0x2998   : > { %v3670_v59 = vpop.eup %3669  ;;  %v2594_v0 = vmul.f32 %v3668_v57, %v4422_v14 }
0x2999   : > { %v2674_v5 = vmul.f32 %v3670_v59, %v4424_v17 }
0x29f8   : > { %v2597_v58 = vpop.permute.xlu1 %2596 }
0x29f9   : > { %v2599_v60 = vmul.f32 %v3668_v57, %v2597_v58  ;;  %v2677_v61 = vpop.permute.xlu0 %2676 }
0x29fa   : > { %v2679_v62 = vmul.f32 %v3670_v59, %v2677_v61 }
0x29fb   : > { %2601 = vrot.lane.b32.xlu1 %v2599_v60, %s3709_s30 }
0x29fc   : > { %2681 = vrot.lane.b32.xlu0 %v2679_v62, %s3709_s30 }
0x2a6d   : > { %v2602_v4 = vpop.permute.xlu1 %2601 }
0x2a6e   : > { %v2604_v7 = vadd.f32 %v2602_v4, %v2594_v0  ;;  %v2682_v8 = vpop.permute.xlu0 %2681 }
0x2a6f   : > { %v2684_v9 = vadd.f32 %v2682_v8, %v2674_v5 }
0x2a70   : > { %3671 = vtanh.f32 %v2604_v7 }
0x2a71   : > { %3673 = vtanh.f32 %v2684_v9 }
0x2a7d   : > { %v3672_v15 = vpop.eup %3671 }
0x2a7e   : > { %v3674_v20 = vpop.eup %3673  ;;  %2607 = vrot.lane.b32.xlu1 %v3672_v15, %s3708_s29 }
0x2a7f   : > { %2687 = vrot.lane.b32.xlu0 %v3674_v20, %s3708_s29 }
0x2af0   : > { %v2608_v21 = vpop.permute.xlu1 %2607 }
0x2af1   : > { %v2610_v22 = vmul.f32 %v3668_v57, %v2608_v21  ;;  %v2688_v25 = vpop.permute.xlu0 %2687 }
0x2af2   : > { %v2690_v29 = vmul.f32 %v3670_v59, %v2688_v25 }
0x2af3   : > { %2695 = vrot.lane.b32.xlu0 %v2610_v22, %s3708_s29 }
0x2af4   : > { %2692 = vrot.lane.b32.xlu1 %v2690_v29, %s3709_s30 }
0x2b65   : > { %v2696_v14 = vpop.permute.xlu0 %2695 }
0x2b66   : > { %v2693_v17 = vpop.permute.xlu1 %2692 }
0x2b67   : > { %v2698_v30 = vsel %vm242_vm2, %v2693_v17, %v2696_v14  ;;  %2773 = vst.msk [vmem:[#allocation2] sm:$0x3] %vm431_vm4, %v2693_v17 }
0x2b68   : > { %v2699_v33 = vpack.c.bf16 %v2698_v30, %v2698_v30 }
0x2b6a   : > { %3399 = vmatmul.mubr.msk.bf16.vlgmr.msra.gmra.mxu0 %vm355_vm3, %v2699_v33 }
0x2c2a   : > { %v2737_v36 = vpop.f32.mrf.mxu0 }
0x2c2b   : > { %v2738_v38 = vadd.f32 %v3696_v43, %v2737_v36 }
0x2c2c   : > { %v3400_v34 = vpop.f32.mrf.mxu0 }
0x2c2d   : > { %3675 = vtanh.f32 %v2738_v38  ;;  %v2950_v40 = vmul.f32 -1.442695, %v2738_v38 }
0x2c2e   : > { %v2740_v1 = vpop.f32.mrf.mxu0 }
0x2c2f   : > { %3677 = vpow2.f32 %v2950_v40 }
0x2c30   : > { %v3401_v28 = vpop.f32.mrf.mxu0 }
0x2c3a   : > { %v3676_v37 = vpop.eup %3675 }
0x2c3b   : > { %2752 = vrot.lane.b32.xlu1 %v3676_v37, %s3708_s29 }
0x2c3c   : > { %v3678_v39 = vpop.eup %3677 }
0x2c3d   : > { %v2746_v44 = vadd.f32 1.0, %v3678_v39 }
0x2c3f   : > { %3679 = vrcp.f32 %v2746_v44 }
0x2c4c   : > { %v3680_v45 = vpop.eup %3679 }
0x2cad   : > { %v2753_v10 = vpop.permute.xlu1 %2752 }
0x2cae   : > { %v2755_v46 = vmul.f32 %v3680_v45, %v2753_v10 }
0x2cb0   : > { %2757 = vrot.lane.b32.xlu0 %v2755_v46, %s3709_s30 }
0x2cb4   : > { %428 = vrot.lane.b32.xlu0 %v3860_v19, %s3709_s30  ;;  %v2750_v19 = vmul.f32 %v3680_v45, %v2604_v7 }
0x2cb8   : > { %740 = vrot.lane.b32.xlu0 %v3942_v54, %s3709_s30 }
0x2cbc   : > { %1052 = vrot.lane.b32.xlu0 %v4024_v32, %s3709_s30 }
0x2cc0   : > { %1364 = vrot.lane.b32.xlu0 %v4115_v63, %s3709_s30 }
0x2cc4   : > { %1676 = vrot.lane.b32.xlu0 %v4222_v47, %s3709_s30 }
0x2cc8   : > { %1988 = vrot.lane.b32.xlu0 %v4304_v26, %s3709_s30 }
0x2ccc   : > { %2300 = vrot.lane.b32.xlu0 %v4386_v31, %s3709_s30 }
0x2cd0   : > { %2612 = vrot.lane.b32.xlu0 %v2610_v22, %s3709_s30 }
0x2cd4   : > { %2775 = vrot.lane.b32.xlu0 %v2684_v9, %s3710_s21 }
0x2d22   : > { %v2758_v54 = vpop.permute.xlu0 %2757 }
0x2d23   : > { %v2760_v32 = vadd.f32 %v2758_v54, %v2750_v19 }
0x2d25   : > { %3681 = vtanh.f32 %v2760_v32 }
0x2d26   : > { %v429_v63 = vpop.permute.xlu0 %428 }
0x2d27   : > { %432 = vst.msk [vmem:[%s3752_s24] sm:$0x3] %vm431_vm4, %v429_v63 }
0x2d2a   : > { %v741_v47 = vpop.permute.xlu0 %740 }
0x2d2b   : > { %2873 = vst.msk [vmem:[%s3752_s24 + $0x4] sm:$0x3] %vm431_vm4, %v741_v47 }
0x2d2e   : > { %v1053_v26 = vpop.permute.xlu0 %1052 }
0x2d2f   : > { %2885 = vst.msk [vmem:[%s3752_s24 + $0x8] sm:$0x3] %vm431_vm4, %v1053_v26 }
0x2d32   : > { %v3682_v31 = vpop.eup %3681  ;;  %v1365_v43 = vpop.permute.xlu0 %1364 }
0x2d33   : > { %2897 = vst.msk [vmem:[%s3752_s24 + $0xc] sm:$0x3] %vm431_vm4, %v1365_v43  ;;  %2763 = vrot.lane.b32.xlu1 %v3682_v31, %s3708_s29 }
0x2d36   : > { %v1677_v27 = vpop.permute.xlu0 %1676 }
0x2d37   : > { %2909 = vst.msk [vmem:[%s3752_s24 + $0x10] sm:$0x3] %vm431_vm4, %v1677_v27  ;;  %584 = vrot.lane.b32.xlu1 %v3901_v6, %s3709_s30 }
0x2d3a   : > { %v1989_v3 = vpop.permute.xlu0 %1988 }
0x2d3b   : > { %2921 = vst.msk [vmem:[%s3752_s24 + $0x14] sm:$0x3] %vm431_vm4, %v1989_v3  ;;  %896 = vrot.lane.b32.xlu1 %v3983_v42, %s3709_s30 }
0x2d3e   : > { %v2301_v48 = vpop.permute.xlu0 %2300 }
0x2d3f   : > { %2933 = vst.msk [vmem:[%s3752_s24 + $0x18] sm:$0x3] %vm431_vm4, %v2301_v48  ;;  %1208 = vrot.lane.b32.xlu1 %v4064_v16, %s3709_s30 }
0x2d42   : > { %v2613_v49 = vpop.permute.xlu0 %2612 }
0x2d43   : > { %2945 = vst.msk [vmem:[%s3752_s24 + $0x1c] sm:$0x3] %vm431_vm4, %v2613_v49  ;;  %1520 = vrot.lane.b32.xlu1 %v4181_v53, %s3709_s30 }
0x2d46   : > { %v2776_v6 = vpop.permute.xlu0 %2775 }
0x2d47   : > { %2778 = vst.msk [vmem:[#allocation3] sm:$0x3] %vm431_vm4, %v2776_v6  ;;  %1832 = vrot.lane.b32.xlu1 %v4263_v41, %s3709_s30 }
0x2d4b   : > { %2144 = vrot.lane.b32.xlu1 %v4345_v35, %s3709_s30 }
0x2d4f   : > { %2456 = vrot.lane.b32.xlu1 %v4430_v23, %s3709_s30 }
0x2da5   : > { %v2764_v42 = vpop.permute.xlu1 %2763 }
0x2da6   : > { %v2766_v16 = vmul.f32 %v3680_v45, %v2764_v42 }
0x2da8   : > { %2768 = vrot.lane.b32.xlu1 %v2766_v16, %s3709_s30 }
0x2da9   : > { %v585_v53 = vpop.permute.xlu1 %584 }
0x2daa   : > { %2867 = vst.msk [vmem:[%s3752_s24 + $0x2] sm:$0x3] %vm431_vm4, %v585_v53 }
0x2dac   : > { %2781 = vrot.lane.b32.xlu1 %v2760_v32, %s3710_s21 }
0x2dad   : > { %v897_v41 = vpop.permute.xlu1 %896 }
0x2dae   : > { %2879 = vst.msk [vmem:[%s3752_s24 + $0x6] sm:$0x3] %vm431_vm4, %v897_v41 }
0x2db1   : > { %v1209_v2 = vpop.permute.xlu1 %1208 }
0x2db2   : > { %2891 = vst.msk [vmem:[%s3752_s24 + $0xa] sm:$0x3] %vm431_vm4, %v1209_v2 }
0x2db5   : > { %v1521_v35 = vpop.permute.xlu1 %1520 }
0x2db6   : > { %2903 = vst.msk [vmem:[%s3752_s24 + $0xe] sm:$0x3] %vm431_vm4, %v1521_v35 }
0x2db9   : > { %v1833_v23 = vpop.permute.xlu1 %1832 }
0x2dba   : > { %2915 = vst.msk [vmem:[%s3752_s24 + $0x12] sm:$0x3] %vm431_vm4, %v1833_v23 }
0x2dbd   : > { %v2145_v24 = vpop.permute.xlu1 %2144 }
0x2dbe   : > { %2927 = vst.msk [vmem:[%s3752_s24 + $0x16] sm:$0x3] %vm431_vm4, %v2145_v24 }
0x2dc1   : > { %v2457_v11 = vpop.permute.xlu1 %2456 }
0x2dc2   : > { %2939 = vst.msk [vmem:[%s3752_s24 + $0x1a] sm:$0x3] %vm431_vm4, %v2457_v11 }
0x2e1a   : > { %v2769_v50 = vpop.permute.xlu1 %2768 }
0x2e1b   : > { %2951 = vst.msk [vmem:[%s3752_s24 + $0x1e] sm:$0x3] %vm431_vm4, %v2769_v50  ;;  %2779 = vst.msk [vmem:[#allocation4] sm:$0x3] %vm431_vm4, %v2769_v50 }
0x2e1e   : > { %v2782_v51 = vpop.permute.xlu1 %2781 }
0x2e1f   : > { %2784 = vst.msk [vmem:[#allocation5] sm:$0x3] %vm431_vm4, %v2782_v51 }
0x2e20 PF: > { %s14_s15 = sadd.s32 1, %s3703_s15  }
0x2e21   : > { %p11_p5 = scmp.ge.s32.totalorder %s14_s15, 5  }
0x2e23   :  { %13 = sbr.rel (!%p11_p5) target bundleno = 1 (0x1), region = 100 }

</bundles_post_ra>
